<compile_context>
chip_gen: v7x
topology: tpu7x:2x2x1
jax: 0.10.0
libtpu: 0.0.40
codegen_flags: <defaults>
</compile_context>

<pallas_src>
import functools

import jax
import jax.numpy as jnp
from jax.experimental import pallas as pl
from jax.experimental.pallas import tpu as pltpu

VMEM = pltpu.MemorySpace.VMEM
F32 = jnp.float32


# ----------------------------- Pallas kernels --------------------------------

def _apply_act(y, act):
    if act == "relu":
        return jnp.maximum(y, 0.0)
    if act == "tanh":
        return jnp.tanh(y)
    if act == "sigmoid":
        return jax.nn.sigmoid(y)
    return y


def _mm_kernel(x_ref, w_ref, o_ref, *, act):
    y = jnp.dot(x_ref[...], w_ref[...], preferred_element_type=jnp.float32)
    o_ref[...] = _apply_act(y, act).astype(o_ref.dtype)


def _mm_bias_kernel(x_ref, w_ref, b_ref, o_ref, *, act):
    y = jnp.dot(x_ref[...], w_ref[...], preferred_element_type=jnp.float32) + b_ref[...]
    o_ref[...] = _apply_act(y, act).astype(o_ref.dtype)


def mm_act(x, w, b=None, act="none"):
    """Fused (x @ w [+ b]) + activation on the MXU.  No synthetic zero-bias DMA."""
    m, k = x.shape
    k2, n = w.shape
    assert k == k2
    if b is None:
        return pl.pallas_call(
            functools.partial(_mm_kernel, act=act),
            out_shape=jax.ShapeDtypeStruct((m, n), F32),
            in_specs=[pl.BlockSpec(memory_space=VMEM)] * 2,
            out_specs=pl.BlockSpec(memory_space=VMEM),
        )(x.astype(F32), w.astype(F32))
    return pl.pallas_call(
        functools.partial(_mm_bias_kernel, act=act),
        out_shape=jax.ShapeDtypeStruct((m, n), F32),
        in_specs=[pl.BlockSpec(memory_space=VMEM)] * 3,
        out_specs=pl.BlockSpec(memory_space=VMEM),
    )(x.astype(F32), w.astype(F32), b.reshape(1, n).astype(F32))


def _gru_cell(x_t, h, wih, whh, bih, bhh, H):
    # PyTorch nn.GRU semantics, gate order r, z, n.
    gi = jnp.dot(x_t, wih, preferred_element_type=jnp.float32) + bih
    gh = jnp.dot(h, whh, preferred_element_type=jnp.float32) + bhh
    r = jax.nn.sigmoid(gi[:, 0:H] + gh[:, 0:H])
    z = jax.nn.sigmoid(gi[:, H:2 * H] + gh[:, H:2 * H])
    n = jnp.tanh(gi[:, 2 * H:3 * H] + r * gh[:, 2 * H:3 * H])
    return (1.0 - z) * n + z * h


def _gru_stack_kernel(x_ref, h0_ref, *refs, T, H, num_layers, out_act):
    # refs = 4*num_layers weight refs (wih, whh, bih, bhh per layer), then o_ref.
    w_refs, o_ref = refs[:-1], refs[-1]
    seq = [x_ref[t] for t in range(T)]                 # T is tiny (3) and static
    for l in range(num_layers):                        # all layers fused: no HBM trip
        wih = w_refs[4 * l][...]
        whh = w_refs[4 * l + 1][...]
        bih = w_refs[4 * l + 2][...]
        bhh = w_refs[4 * l + 3][...]
        h = h0_ref[l]
        new_seq = []
        for t in range(T):
            h = _gru_cell(seq[t], h, wih, whh, bih, bhh, H)
            new_seq.append(h)
        seq = new_seq
    for t in range(T):
        o_ref[t] = _apply_act(seq[t], out_act)         # output activation fused


def gru_stack(x2d, h0, layer_ws, *, T, nb, out_act="none"):
    """Multi-layer GRU. x2d rows are ordered as index = t*nb + b (matches the
    PyTorch reshape(batch, nb, H).transpose(0,1) / inverse), so the wrapper-side
    reshapes are free views.  Returns (T*nb, H)."""
    H = h0.shape[-1]
    L = h0.shape[0]
    x3 = x2d[: T * nb].reshape(T, nb, -1).astype(F32)
    out = pl.pallas_call(
        functools.partial(_gru_stack_kernel, T=T, H=H, num_layers=L, out_act=out_act),
        out_shape=jax.ShapeDtypeStruct((T, nb, H), F32),
        in_specs=[pl.BlockSpec(memory_space=VMEM)] * (2 + len(layer_ws)),
        out_specs=pl.BlockSpec(memory_space=VMEM),
    )(x3, h0, *layer_ws)
    return out.reshape(T * nb, H)


def _conve_kernel(head_ref, rel_ref, wch_ref, wcr_ref, fcw_ref, fcb_ref,
                  ent_t_ref, sb_ref, o_ref):
    # conv (lowered to dense matmul, bn0/bn1 folded) + relu
    y = (jnp.dot(head_ref[...], wch_ref[...], preferred_element_type=jnp.float32)
         + jnp.dot(rel_ref[...], wcr_ref[...], preferred_element_type=jnp.float32))
    y = jnp.maximum(y, 0.0)                                      # (bs, flat_sz) NCHW order
    # fc (bn2 folded) + relu
    z = jnp.dot(y, fcw_ref[...], preferred_element_type=jnp.float32) + fcb_ref[...]
    z = jnp.maximum(z, 0.0)                                      # (bs, H)
    # score against all entities + bias + sigmoid
    s = jnp.dot(z, ent_t_ref[...], preferred_element_type=jnp.float32) + sb_ref[...]
    o_ref[...] = jax.nn.sigmoid(s)


def conve_fwd(cp, head, rel, all_ent):
    """Whole ConvE predictor in one fused Pallas kernel (4 MXU matmuls)."""
    bs = head.shape[0]
    n_ent = all_ent.shape[0]
    pad = (-bs) % 8                                   # pad M to a full sublane tile
    if pad:
        head = jnp.pad(head, ((0, pad), (0, 0)))
        rel = jnp.pad(rel, ((0, pad), (0, 0)))
    out = pl.pallas_call(
        _conve_kernel,
        out_shape=jax.ShapeDtypeStruct((bs + pad, n_ent), F32),
        in_specs=[pl.BlockSpec(memory_space=VMEM)] * 8,
        out_specs=pl.BlockSpec(memory_space=VMEM),
    )(head.astype(F32), rel.astype(F32), cp["wc_head"], cp["wc_rel"],
      cp["fc_w"], cp["fc_b"], all_ent.T.astype(F32), cp["bias"])
    return out[:bs]


# ------------------------------ JAX glue layers -------------------------------

def segment_softmax(logits, seg_ids, num_segments):
    # dgl.ops.edge_softmax over destination nodes (numerically stabilized).
    mx = jax.ops.segment_max(logits, seg_ids, num_segments=num_segments)
    ex = jnp.exp(logits - mx[seg_ids])
    denom = jax.ops.segment_sum(ex, seg_ids, num_segments=num_segments)
    return ex / denom[seg_ids]


def structure_layer_fwd(p, ent_emb, rel_emb, src, dst, rel_id, n_ent, comp_op):
    h_src = ent_emb[src]
    e_rel = rel_emb[rel_id]
    comp = h_src * e_rel if comp_op == "mul" else h_src + e_rel          # u_*_e
    logit = jnp.sum(comp * ent_emb[dst], axis=-1, keepdims=True)          # e_dot_v
    alpha = segment_softmax(logit, dst, n_ent)                            # edge_softmax
    # TODO(synk): edge-softmax / scatter-sum aggregation stay in XLA (segment ops).
    neigh = jax.ops.segment_sum(comp * alpha, dst, num_segments=n_ent)
    # cfg.bn = False -> no BatchNorm; mm + tanh fused in Pallas.
    return mm_act(neigh, p["neigh_w"], act="tanh")


def rel_graph_conv(h, src, dst, rel_id, norm, w_cat, bias, n_ent, n_rel2, h_dim,
                   relu=False):
    # DGL RelGraphConv ('basis', num_bases == #relations -> one full W per relation),
    # no self-loop.  MXU path: transform every node against every relation weight in
    # one lane-dense matmul (N = n_rel2*h_dim lanes), then gather the per-edge slab.
    # TODO(synk): at real scale replace with a relation-grouped (MoE-style) matmul.
    node_all = mm_act(h, w_cat)                                   # Pallas (n_ent, R*H)
    msg = node_all.reshape(n_ent, n_rel2, h_dim)[src, rel_id]     # (E, H) gather
    agg = jax.ops.segment_sum(msg * norm, dst, num_segments=n_ent) + bias[None, :]
    return jnp.maximum(agg, 0.0) if relu else agg                 # ReLU fused by XLA


def semantic_layer_fwd(p, ent_emb, src, dst, rel_id, n_ent, h_dim, n_rel2, batch=3):
    deg = jax.ops.segment_sum(jnp.ones(dst.shape, F32), dst, num_segments=n_ent)
    norm = (1.0 / jnp.maximum(deg, 1.0))[dst][:, None]            # dgl.norm_by_dst
    nb = n_ent // batch
    h = gru_stack(ent_emb, p["h0"], p["gru_ws"], T=batch, nb=nb)  # fused 2-layer GRU
    h = rel_graph_conv(h, src, dst, rel_id, norm, p["conv1_wcat"], p["conv1_b"],
                       n_ent, n_rel2, h_dim)
    # dropout(p=0) in eval mode -> identity
    h = rel_graph_conv(h, src, dst, rel_id, norm, p["conv2_wcat"], p["conv2_b"],
                       n_ent, n_rel2, h_dim, relu=True)
    return h


def rel_layer_fwd(p, rel_emb, n_rel, h_dim, batch=3):
    nb = (2 * n_rel) // batch
    # single-layer GRU with the tanh epilogue fused into the kernel's output store
    return gru_stack(rel_emb, p["h0"], p["gru_ws"], T=batch, nb=nb, out_act="tanh")


def se_gnn_forward(prep, h_id, r_id, src, dst, rel_id, cfg):
    n_ent, h_dim = cfg["n_ent"], cfg["h_dim"]
    n_rel2 = 2 * cfg["n_rel"]
    ent_emb = prep["ent_emb"]
    rel_emb = prep["rel_emb"]
    # zip(semantic[L-1], structure[L], rel[L]) -> L-1 iterations (as in PyTorch code)
    for l in range(cfg["kg_n_layer"] - 1):
        # ent_drop / rel_drop: eval mode -> identity
        sem = semantic_layer_fwd(prep["semantic"][l], ent_emb, src, dst, rel_id,
                                 n_ent, h_dim, n_rel2)
        struct = structure_layer_fwd(prep["structure"][l], ent_emb, rel_emb,
                                     src, dst, rel_id, n_ent, cfg["comp_op"])
        ent_emb = ent_emb + sem + struct
        rel_emb = rel_emb + rel_layer_fwd(prep["rel"][l], rel_emb, cfg["n_rel"], h_dim)
    head = ent_emb[h_id]
    rel = rel_emb[r_id]
    return conve_fwd(prep["conve"], head, rel, ent_emb)


# ----------------------- parameter init & one-time prep ------------------------

def init_params(key, cfg):
    H = cfg["h_dim"]
    n_ent, n_rel = cfg["n_ent"], cfg["n_rel"]
    out_ch, ker = cfg["out_channel"], cfg["ker_sz"]
    OH, OW = 2 * cfg["k_h"] - ker + 1, cfg["k_w"] - ker + 1
    flat_sz = out_ch * OH * OW
    keys = iter(jax.random.split(key, 64))

    def nrm(shape, scale=0.1):
        return scale * jax.random.normal(next(keys), shape, F32)

    def uni(shape, k):
        return jax.random.uniform(next(keys), shape, F32, -k, k)

    def gru_params(in_dim, hid):
        k = 1.0 / float(hid) ** 0.5
        return (uni((3 * hid, in_dim), k), uni((3 * hid, hid), k),
                uni((3 * hid,), k), uni((3 * hid,), k))

    n_layer = cfg["kg_n_layer"]
    ent_nb = n_ent // 3
    rel_nb = (2 * n_rel) // 3
    return {
        "ent_emb": nrm((n_ent, H)),
        "rel_emb": nrm((2 * n_rel, H)),
        "semantic": [
            {"h0": nrm((2, ent_nb, H)),
             "gru_l0": gru_params(H, H), "gru_l1": gru_params(H, H),
             "conv1_w": nrm((2 * n_rel, H, H)), "conv1_b": nrm((H,)),
             "conv2_w": nrm((2 * n_rel, H, H)), "conv2_b": nrm((H,))}
            for _ in range(n_layer - 1)],
        "structure": [{"neigh_w": nrm((H, H))} for _ in range(n_layer)],
        "rel": [{"h0": nrm((1, rel_nb, H)), "gru_l0": gru_params(H, H)}
                for _ in range(n_layer)],
        "conve": {"conv_w": nrm((out_ch, 1, ker, ker)),
                  "fc_w": nrm((H, flat_sz)), "fc_b": nrm((H,)),
                  "bias": jnp.zeros((n_ent,), F32)},
    }


def prepare_params(params, cfg):
    """One-time weight re-layout so no .T / reshape / cast runs per forward call."""
    H = cfg["h_dim"]
    R = 2 * cfg["n_rel"]
    out_ch, ker, k_h, k_w = cfg["out_channel"], cfg["ker_sz"], cfg["k_h"], cfg["k_w"]
    OH, OW = 2 * k_h - ker + 1, k_w - ker + 1
    bn_s = 1.0 / jnp.sqrt(1.0 + 1e-5)   # eval BatchNorm with untrained running stats

    def prep_gru(t):
        w_ih, w_hh, b_ih, b_hh = t
        return (w_ih.T.astype(F32), w_hh.T.astype(F32),
                b_ih.reshape(1, -1).astype(F32), b_hh.reshape(1, -1).astype(F32))

    prep = {"ent_emb": params["ent_emb"].astype(F32),
            "rel_emb": params["rel_emb"].astype(F32)}

    prep["semantic"] = [{
        "h0": sp["h0"].astype(F32),
        "gru_ws": prep_gru(sp["gru_l0"]) + prep_gru(sp["gru_l1"]),
        # concat all relation weights along lanes: (H, R*H), lane-dense MXU operand
        "conv1_wcat": sp["conv1_w"].transpose(1, 0, 2).reshape(H, R * H).astype(F32),
        "conv1_b": sp["conv1_b"].astype(F32),
        "conv2_wcat": sp["conv2_w"].transpose(1, 0, 2).reshape(H, R * H).astype(F32),
        "conv2_b": sp["conv2_b"].astype(F32),
    } for sp in params["semantic"]]

    prep["structure"] = [{"neigh_w": p["neigh_w"].astype(F32)}
                         for p in params["structure"]]
    prep["rel"] = [{"h0": p["h0"].astype(F32), "gru_ws": prep_gru(p["gru_l0"])}
                   for p in params["rel"]]

    # ConvE: lower Conv2d(1, out_ch, ker, bias=False) to a dense
    # (2*k_h*k_w, out_ch*OH*OW) matrix whose output is already in NCHW-flatten
    # order; split rows into head/rel halves (the image interleave head0,rel0,...),
    # and fold the bn0/bn1/bn2 scalar eval-mode scales.
    cw = params["conve"]["conv_w"].astype(F32)
    rows, cols, ci, ki_l, kj_l = [], [], [], [], []
    for c in range(out_ch):
        for oh in range(OH):
            for ow in range(OW):
                for ki in range(ker):
                    for kj in range(ker):
                        rows.append((oh + ki) * k_w + (ow + kj))
                        cols.append(c * OH * OW + oh * OW + ow)
                        ci.append(c); ki_l.append(ki); kj_l.append(kj)
    vals = cw[jnp.array(ci), 0, jnp.array(ki_l), jnp.array(kj_l)]
    wc = jnp.zeros((2 * k_h * k_w, out_ch * OH * OW), F32)
    wc = wc.at[jnp.array(rows), jnp.array(cols)].add(vals) * (bn_s * bn_s)
    prep["conve"] = {
        "wc_head": wc[0::2, :],                       # image pixel 2*i   <- head[:, i]
        "wc_rel": wc[1::2, :],                        # image pixel 2*i+1 <- rel[:, i]
        "fc_w": (params["conve"]["fc_w"].T * bn_s).astype(F32),
        "fc_b": (params["conve"]["fc_b"] * bn_s).reshape(1, -1).astype(F32),
        "bias": params["conve"]["bias"].reshape(1, -1).astype(F32),
    }
    return prep


# ------------------------------------ main -------------------------------------

if __name__ == "__main__":
    cfg = dict(n_ent=96, n_rel=6, h_dim=32, out_dim=32, kg_n_layer=2,
               comp_op="mul", out_channel=8, ker_sz=3, k_h=4, k_w=8)

    key = jax.random.PRNGKey(0)
    kp, ks, kd, kr, kh, kq = jax.random.split(key, 6)
    params = init_params(kp, cfg)
    prep = prepare_params(params, cfg)            # one-time weight re-layout

    # synthetic knowledge graph: E edges (src, dst, rel_id), rel_id in [0, 2*n_rel)
    E = 240
    src = jax.random.randint(ks, (E,), 0, cfg["n_ent"])
    dst = jax.random.randint(kd, (E,), 0, cfg["n_ent"])
    rel_id = jax.random.randint(kr, (E,), 0, 2 * cfg["n_rel"])

    bs = 4
    h_id = jax.random.randint(kh, (bs,), 0, cfg["n_ent"])
    r_id = jax.random.randint(kq, (bs,), 0, 2 * cfg["n_rel"])

    fwd = jax.jit(functools.partial(se_gnn_forward, cfg=cfg))
    score = fwd(prep, h_id, r_id, src, dst, rel_id)
    score = jax.block_until_ready(score)
    assert score.shape == (bs, cfg["n_ent"])
    assert bool(jnp.all(jnp.isfinite(score)))
    print("KERNEL_OK")
</pallas_src>

<mosaic_0001>
module attributes {stable_mosaic.version = 11 : i64} {
  func.func private @main(%arg0: i32) attributes {dimension_semantics = [#tpu.dimension_semantics<core_parallel>], iteration_bounds = array<i64: 2>, tpu.core_type = #tpu.core_type<sc_scalar_subcore>, window_params = []} {
    return
  }
}

module attributes {stable_mosaic.version = 11 : i64} {
  func.func private @main(%arg0: i32) attributes {dimension_semantics = [#tpu.dimension_semantics<core_parallel>], iteration_bounds = array<i64: 2>, tpu.core_type = #tpu.core_type<sc_scalar_subcore>, window_params = []} {
    return
  }
}

module attributes {stable_mosaic.version = 11 : i64} {
  func.func @_mm_kernel(%arg0: memref<96x32xf32, #tpu.memory_space<vmem>>, %arg1: memref<32x384xf32, #tpu.memory_space<vmem>>, %arg2: memref<96x384xf32, #tpu.memory_space<vmem>>) attributes {dimension_semantics = [], scalar_prefetch = 0 : i64, scratch_operands = 0 : i64, tpu.core_type = #tpu.core_type<tc>} {
    %c0 = arith.constant 0 : index
    %c0_0 = arith.constant 0 : index
    %0 = vector.load %arg0[%c0, %c0_0] : memref<96x32xf32, #tpu.memory_space<vmem>>, vector<96x32xf32>
    %c0_1 = arith.constant 0 : index
    %c0_2 = arith.constant 0 : index
    %1 = vector.load %arg1[%c0_1, %c0_2] : memref<32x384xf32, #tpu.memory_space<vmem>>, vector<32x384xf32>
    %cst = arith.constant dense<0.000000e+00> : vector<96x384xf32>
    %2 = tpu.matmul %0, %1, %cst {dimension_numbers = #tpu.dot_dimension_numbers<[1], [0], [0], [1], [0, 0, 1, 1], [], []>} : vector<96x32xf32>, vector<32x384xf32>, vector<96x384xf32> -> vector<96x384xf32>
    %c0_3 = arith.constant 0 : index
    %c0_4 = arith.constant 0 : index
    %3 = vector.load %arg2[%c0_3, %c0_4] : memref<96x384xf32, #tpu.memory_space<vmem>>, vector<96x384xf32>
    tpu.vector_store %arg2[%c0_3, %c0_4], %2 {strides = array<i32>} : memref<96x384xf32, #tpu.memory_space<vmem>>, vector<96x384xf32>,
    return
  }
}

module attributes {stable_mosaic.version = 11 : i64} {
  func.func @_gru_stack_kernel(%arg0: memref<3x32x32xf32, #tpu.memory_space<vmem>>, %arg1: memref<2x32x32xf32, #tpu.memory_space<vmem>>, %arg2: memref<32x96xf32, #tpu.memory_space<vmem>>, %arg3: memref<32x96xf32, #tpu.memory_space<vmem>>, %arg4: memref<1x96xf32, #tpu.memory_space<vmem>>, %arg5: memref<1x96xf32, #tpu.memory_space<vmem>>, %arg6: memref<32x96xf32, #tpu.memory_space<vmem>>, %arg7: memref<32x96xf32, #tpu.memory_space<vmem>>, %arg8: memref<1x96xf32, #tpu.memory_space<vmem>>, %arg9: memref<1x96xf32, #tpu.memory_space<vmem>>, %arg10: memref<3x32x32xf32, #tpu.memory_space<vmem>>) attributes {dimension_semantics = [], scalar_prefetch = 0 : i64, scratch_operands = 0 : i64, tpu.core_type = #tpu.core_type<tc>} {
    %c0 = arith.constant 0 : index
    %c0_0 = arith.constant 0 : index
    %c0_1 = arith.constant 0 : index
    %0 = vector.load %arg0[%c0, %c0_0, %c0_1] : memref<3x32x32xf32, #tpu.memory_space<vmem>>, vector<1x32x32xf32>
    %1 = vector.shape_cast %0 : vector<1x32x32xf32> to vector<32x32xf32>
    %c1 = arith.constant 1 : index
    %c0_2 = arith.constant 0 : index
    %c0_3 = arith.constant 0 : index
    %2 = vector.load %arg0[%c1, %c0_2, %c0_3] : memref<3x32x32xf32, #tpu.memory_space<vmem>>, vector<1x32x32xf32>
    %3 = vector.shape_cast %2 : vector<1x32x32xf32> to vector<32x32xf32>
    %c2 = arith.constant 2 : index
    %c0_4 = arith.constant 0 : index
    %c0_5 = arith.constant 0 : index
    %4 = vector.load %arg0[%c2, %c0_4, %c0_5] : memref<3x32x32xf32, #tpu.memory_space<vmem>>, vector<1x32x32xf32>
    %5 = vector.shape_cast %4 : vector<1x32x32xf32> to vector<32x32xf32>
    %c0_6 = arith.constant 0 : index
    %c0_7 = arith.constant 0 : index
    %6 = vector.load %arg2[%c0_6, %c0_7] : memref<32x96xf32, #tpu.memory_space<vmem>>, vector<32x96xf32>
    %c0_8 = arith.constant 0 : index
    %c0_9 = arith.constant 0 : index
    %7 = vector.load %arg3[%c0_8, %c0_9] : memref<32x96xf32, #tpu.memory_space<vmem>>, vector<32x96xf32>
    %c0_10 = arith.constant 0 : index
    %c0_11 = arith.constant 0 : index
    %8 = vector.load %arg4[%c0_10, %c0_11] : memref<1x96xf32, #tpu.memory_space<vmem>>, vector<1x96xf32>
    %c0_12 = arith.constant 0 : index
    %c0_13 = arith.constant 0 : index
    %9 = vector.load %arg5[%c0_12, %c0_13] : memref<1x96xf32, #tpu.memory_space<vmem>>, vector<1x96xf32>
    %c0_14 = arith.constant 0 : index
    %c0_15 = arith.constant 0 : index
    %c0_16 = arith.constant 0 : index
    %10 = vector.load %arg1[%c0_14, %c0_15, %c0_16] : memref<2x32x32xf32, #tpu.memory_space<vmem>>, vector<1x32x32xf32>
    %11 = vector.shape_cast %10 : vector<1x32x32xf32> to vector<32x32xf32>
    %cst = arith.constant dense<0.000000e+00> : vector<32x96xf32>
    %12 = tpu.matmul %1, %6, %cst {dimension_numbers = #tpu.dot_dimension_numbers<[1], [0], [0], [1], [0, 0, 1, 1], [], []>} : vector<32x32xf32>, vector<32x96xf32>, vector<32x96xf32> -> vector<32x96xf32>
    %13 = vector.broadcast %8 : vector<1x96xf32> to vector<32x96xf32>
    %14 = arith.addf %12, %13 : vector<32x96xf32>
    %cst_17 = arith.constant dense<0.000000e+00> : vector<32x96xf32>
    %15 = tpu.matmul %11, %7, %cst_17 {dimension_numbers = #tpu.dot_dimension_numbers<[1], [0], [0], [1], [0, 0, 1, 1], [], []>} : vector<32x32xf32>, vector<32x96xf32>, vector<32x96xf32> -> vector<32x96xf32>
    %16 = vector.broadcast %9 : vector<1x96xf32> to vector<32x96xf32>
    %17 = arith.addf %15, %16 : vector<32x96xf32>
    %18 = vector.extract_strided_slice %14 {offsets = [0, 0], sizes = [32, 32], strides = [1, 1]} : vector<32x96xf32> to vector<32x32xf32>
    %19 = vector.extract_strided_slice %17 {offsets = [0, 0], sizes = [32, 32], strides = [1, 1]} : vector<32x96xf32> to vector<32x32xf32>
    %20 = arith.addf %18, %19 : vector<32x32xf32>
    %21 = arith.negf %20 : vector<32x32xf32>
    %22 = math.exp %21 : vector<32x32xf32>
    %cst_18 = arith.constant 1.000000e+00 : f32
    %23 = vector.broadcast %cst_18 : f32 to vector<32x32xf32>
    %24 = arith.addf %23, %22 : vector<32x32xf32>
    %25 = arith.divf %23, %24 : vector<32x32xf32>
    %26 = vector.extract_strided_slice %14 {offsets = [0, 32], sizes = [32, 32], strides = [1, 1]} : vector<32x96xf32> to vector<32x32xf32>
    %27 = vector.extract_strided_slice %17 {offsets = [0, 32], sizes = [32, 32], strides = [1, 1]} : vector<32x96xf32> to vector<32x32xf32>
    %28 = arith.addf %26, %27 : vector<32x32xf32>
    %29 = arith.negf %28 : vector<32x32xf32>
    %30 = math.exp %29 : vector<32x32xf32>
    %cst_19 = arith.constant 1.000000e+00 : f32
    %31 = vector.broadcast %cst_19 : f32 to vector<32x32xf32>
    %32 = arith.addf %31, %30 : vector<32x32xf32>
    %33 = arith.divf %31, %32 : vector<32x32xf32>
    %34 = vector.extract_strided_slice %14 {offsets = [0, 64], sizes = [32, 32], strides = [1, 1]} : vector<32x96xf32> to vector<32x32xf32>
    %35 = vector.extract_strided_slice %17 {offsets = [0, 64], sizes = [32, 32], strides = [1, 1]} : vector<32x96xf32> to vector<32x32xf32>
    %36 = arith.mulf %25, %35 : vector<32x32xf32>
    %37 = arith.addf %34, %36 : vector<32x32xf32>
    %38 = math.tanh %37 : vector<32x32xf32>
    %cst_20 = arith.constant 1.000000e+00 : f32
    %39 = vector.broadcast %cst_20 : f32 to vector<32x32xf32>
    %40 = arith.subf %39, %33 : vector<32x32xf32>
    %41 = arith.mulf %40, %38 : vector<32x32xf32>
    %42 = arith.mulf %33, %11 : vector<32x32xf32>
    %43 = arith.addf %41, %42 : vector<32x32xf32>
    %cst_21 = arith.constant dense<0.000000e+00> : vector<32x96xf32>
    %44 = tpu.matmul %3, %6, %cst_21 {dimension_numbers = #tpu.dot_dimension_numbers<[1], [0], [0], [1], [0, 0, 1, 1], [], []>} : vector<32x32xf32>, vector<32x96xf32>, vector<32x96xf32> -> vector<32x96xf32>
    %45 = vector.broadcast %8 : vector<1x96xf32> to vector<32x96xf32>
    %46 = arith.addf %44, %45 : vector<32x96xf32>
    %cst_22 = arith.constant dense<0.000000e+00> : vector<32x96xf32>
    %47 = tpu.matmul %43, %7, %cst_22 {dimension_numbers = #tpu.dot_dimension_numbers<[1], [0], [0], [1], [0, 0, 1, 1], [], []>} : vector<32x32xf32>, vector<32x96xf32>, vector<32x96xf32> -> vector<32x96xf32>
    %48 = vector.broadcast %9 : vector<1x96xf32> to vector<32x96xf32>
    %49 = arith.addf %47, %48 : vector<32x96xf32>
    %50 = vector.extract_strided_slice %46 {offsets = [0, 0], sizes = [32, 32], strides = [1, 1]} : vector<32x96xf32> to vector<32x32xf32>
    %51 = vector.extract_strided_slice %49 {offsets = [0, 0], sizes = [32, 32], strides = [1, 1]} : vector<32x96xf32> to vector<32x32xf32>
    %52 = arith.addf %50, %51 : vector<32x32xf32>
    %53 = arith.negf %52 : vector<32x32xf32>
    %54 = math.exp %53 : vector<32x32xf32>
    %cst_23 = arith.constant 1.000000e+00 : f32
    %55 = vector.broadcast %cst_23 : f32 to vector<32x32xf32>
    %56 = arith.addf %55, %54 : vector<32x32xf32>
    %57 = arith.divf %55, %56 : vector<32x32xf32>
    %58 = vector.extract_strided_slice %46 {offsets = [0, 32], sizes = [32, 32], strides = [1, 1]} : vector<32x96xf32> to vector<32x32xf32>
    %59 = vector.extract_strided_slice %49 {offsets = [0, 32], sizes = [32, 32], strides = [1, 1]} : vector<32x96xf32> to vector<32x32xf32>
    %60 = arith.addf %58, %59 : vector<32x32xf32>
    %61 = arith.negf %60 : vector<32x32xf32>
    %62 = math.exp %61 : vector<32x32xf32>
    %cst_24 = arith.constant 1.000000e+00 : f32
    %63 = vector.broadcast %cst_24 : f32 to vector<32x32xf32>
    %64 = arith.addf %63, %62 : vector<32x32xf32>
    %65 = arith.divf %63, %64 : vector<32x32xf32>
    %66 = vector.extract_strided_slice %46 {offsets = [0, 64], sizes = [32, 32], strides = [1, 1]} : vector<32x96xf32> to vector<32x32xf32>
    %67 = vector.extract_strided_slice %49 {offsets = [0, 64], sizes = [32, 32], strides = [1, 1]} : vector<32x96xf32> to vector<32x32xf32>
    %68 = arith.mulf %57, %67 : vector<32x32xf32>
    %69 = arith.addf %66, %68 : vector<32x32xf32>
    %70 = math.tanh %69 : vector<32x32xf32>
    %cst_25 = arith.constant 1.000000e+00 : f32
    %71 = vector.broadcast %cst_25 : f32 to vector<32x32xf32>
    %72 = arith.subf %71, %65 : vector<32x32xf32>
    %73 = arith.mulf %72, %70 : vector<32x32xf32>
    %74 = arith.mulf %65, %43 : vector<32x32xf32>
    %75 = arith.addf %73, %74 : vector<32x32xf32>
    %cst_26 = arith.constant dense<0.000000e+00> : vector<32x96xf32>
    %76 = tpu.matmul %5, %6, %cst_26 {dimension_numbers = #tpu.dot_dimension_numbers<[1], [0], [0], [1], [0, 0, 1, 1], [], []>} : vector<32x32xf32>, vector<32x96xf32>, vector<32x96xf32> -> vector<32x96xf32>
    %77 = vector.broadcast %8 : vector<1x96xf32> to vector<32x96xf32>
    %78 = arith.addf %76, %77 : vector<32x96xf32>
    %cst_27 = arith.constant dense<0.000000e+00> : vector<32x96xf32>
    %79 = tpu.matmul %75, %7, %cst_27 {dimension_numbers = #tpu.dot_dimension_numbers<[1], [0], [0], [1], [0, 0, 1, 1], [], []>} : vector<32x32xf32>, vector<32x96xf32>, vector<32x96xf32> -> vector<32x96xf32>
    %80 = vector.broadcast %9 : vector<1x96xf32> to vector<32x96xf32>
    %81 = arith.addf %79, %80 : vector<32x96xf32>
    %82 = vector.extract_strided_slice %78 {offsets = [0, 0], sizes = [32, 32], strides = [1, 1]} : vector<32x96xf32> to vector<32x32xf32>
    %83 = vector.extract_strided_slice %81 {offsets = [0, 0], sizes = [32, 32], strides = [1, 1]} : vector<32x96xf32> to vector<32x32xf32>
    %84 = arith.addf %82, %83 : vector<32x32xf32>
    %85 = arith.negf %84 : vector<32x32xf32>
    %86 = math.exp %85 : vector<32x32xf32>
    %cst_28 = arith.constant 1.000000e+00 : f32
    %87 = vector.broadcast %cst_28 : f32 to vector<32x32xf32>
    %88 = arith.addf %87, %86 : vector<32x32xf32>
    %89 = arith.divf %87, %88 : vector<32x32xf32>
    %90 = vector.extract_strided_slice %78 {offsets = [0, 32], sizes = [32, 32], strides = [1, 1]} : vector<32x96xf32> to vector<32x32xf32>
    %91 = vector.extract_strided_slice %81 {offsets = [0, 32], sizes = [32, 32], strides = [1, 1]} : vector<32x96xf32> to vector<32x32xf32>
    %92 = arith.addf %90, %91 : vector<32x32xf32>
    %93 = arith.negf %92 : vector<32x32xf32>
    %94 = math.exp %93 : vector<32x32xf32>
    %cst_29 = arith.constant 1.000000e+00 : f32
    %95 = vector.broadcast %cst_29 : f32 to vector<32x32xf32>
    %96 = arith.addf %95, %94 : vector<32x32xf32>
    %97 = arith.divf %95, %96 : vector<32x32xf32>
    %98 = vector.extract_strided_slice %78 {offsets = [0, 64], sizes = [32, 32], strides = [1, 1]} : vector<32x96xf32> to vector<32x32xf32>
    %99 = vector.extract_strided_slice %81 {offsets = [0, 64], sizes = [32, 32], strides = [1, 1]} : vector<32x96xf32> to vector<32x32xf32>
    %100 = arith.mulf %89, %99 : vector<32x32xf32>
    %101 = arith.addf %98, %100 : vector<32x32xf32>
    %102 = math.tanh %101 : vector<32x32xf32>
    %cst_30 = arith.constant 1.000000e+00 : f32
    %103 = vector.broadcast %cst_30 : f32 to vector<32x32xf32>
    %104 = arith.subf %103, %97 : vector<32x32xf32>
    %105 = arith.mulf %104, %102 : vector<32x32xf32>
    %106 = arith.mulf %97, %75 : vector<32x32xf32>
    %107 = arith.addf %105, %106 : vector<32x32xf32>
    %c0_31 = arith.constant 0 : index
    %c0_32 = arith.constant 0 : index
    %108 = vector.load %arg6[%c0_31, %c0_32] : memref<32x96xf32, #tpu.memory_space<vmem>>, vector<32x96xf32>
    %c0_33 = arith.constant 0 : index
    %c0_34 = arith.constant 0 : index
    %109 = vector.load %arg7[%c0_33, %c0_34] : memref<32x96xf32, #tpu.memory_space<vmem>>, vector<32x96xf32>
    %c0_35 = arith.constant 0 : index
    %c0_36 = arith.constant 0 : index
    %110 = vector.load %arg8[%c0_35, %c0_36] : memref<1x96xf32, #tpu.memory_space<vmem>>, vector<1x96xf32>
    %c0_37 = arith.constant 0 : index
    %c0_38 = arith.constant 0 : index
    %111 = vector.load %arg9[%c0_37, %c0_38] : memref<1x96xf32, #tpu.memory_space<vmem>>, vector<1x96xf32>
    %c1_39 = arith.constant 1 : index
    %c0_40 = arith.constant 0 : index
    %c0_41 = arith.constant 0 : index
    %112 = vector.load %arg1[%c1_39, %c0_40, %c0_41] : memref<2x32x32xf32, #tpu.memory_space<vmem>>, vector<1x32x32xf32>
    %113 = vector.shape_cast %112 : vector<1x32x32xf32> to vector<32x32xf32>
    %cst_42 = arith.constant dense<0.000000e+00> : vector<32x96xf32>
    %114 = tpu.matmul %43, %108, %cst_42 {dimension_numbers = #tpu.dot_dimension_numbers<[1], [0], [0], [1], [0, 0, 1, 1], [], []>} : vector<32x32xf32>, vector<32x96xf32>, vector<32x96xf32> -> vector<32x96xf32>
    %115 = vector.broadcast %110 : vector<1x96xf32> to vector<32x96xf32>
    %116 = arith.addf %114, %115 : vector<32x96xf32>
    %cst_43 = arith.constant dense<0.000000e+00> : vector<32x96xf32>
    %117 = tpu.matmul %113, %109, %cst_43 {dimension_numbers = #tpu.dot_dimension_numbers<[1], [0], [0], [1], [0, 0, 1, 1], [], []>} : vector<32x32xf32>, vector<32x96xf32>, vector<32x96xf32> -> vector<32x96xf32>
    %118 = vector.broadcast %111 : vector<1x96xf32> to vector<32x96xf32>
    %119 = arith.addf %117, %118 : vector<32x96xf32>
    %120 = vector.extract_strided_slice %116 {offsets = [0, 0], sizes = [32, 32], strides = [1, 1]} : vector<32x96xf32> to vector<32x32xf32>
    %121 = vector.extract_strided_slice %119 {offsets = [0, 0], sizes = [32, 32], strides = [1, 1]} : vector<32x96xf32> to vector<32x32xf32>
    %122 = arith.addf %120, %121 : vector<32x32xf32>
    %123 = arith.negf %122 : vector<32x32xf32>
    %124 = math.exp %123 : vector<32x32xf32>
    %cst_44 = arith.constant 1.000000e+00 : f32
    %125 = vector.broadcast %cst_44 : f32 to vector<32x32xf32>
    %126 = arith.addf %125, %124 : vector<32x32xf32>
    %127 = arith.divf %125, %126 : vector<32x32xf32>
    %128 = vector.extract_strided_slice %116 {offsets = [0, 32], sizes = [32, 32], strides = [1, 1]} : vector<32x96xf32> to vector<32x32xf32>
    %129 = vector.extract_strided_slice %119 {offsets = [0, 32], sizes = [32, 32], strides = [1, 1]} : vector<32x96xf32> to vector<32x32xf32>
    %130 = arith.addf %128, %129 : vector<32x32xf32>
    %131 = arith.negf %130 : vector<32x32xf32>
    %132 = math.exp %131 : vector<32x32xf32>
    %cst_45 = arith.constant 1.000000e+00 : f32
    %133 = vector.broadcast %cst_45 : f32 to vector<32x32xf32>
    %134 = arith.addf %133, %132 : vector<32x32xf32>
    %135 = arith.divf %133, %134 : vector<32x32xf32>
    %136 = vector.extract_strided_slice %116 {offsets = [0, 64], sizes = [32, 32], strides = [1, 1]} : vector<32x96xf32> to vector<32x32xf32>
    %137 = vector.extract_strided_slice %119 {offsets = [0, 64], sizes = [32, 32], strides = [1, 1]} : vector<32x96xf32> to vector<32x32xf32>
    %138 = arith.mulf %127, %137 : vector<32x32xf32>
    %139 = arith.addf %136, %138 : vector<32x32xf32>
    %140 = math.tanh %139 : vector<32x32xf32>
    %cst_46 = arith.constant 1.000000e+00 : f32
    %141 = vector.broadcast %cst_46 : f32 to vector<32x32xf32>
    %142 = arith.subf %141, %135 : vector<32x32xf32>
    %143 = arith.mulf %142, %140 : vector<32x32xf32>
    %144 = arith.mulf %135, %113 : vector<32x32xf32>
    %145 = arith.addf %143, %144 : vector<32x32xf32>
    %cst_47 = arith.constant dense<0.000000e+00> : vector<32x96xf32>
    %146 = tpu.matmul %75, %108, %cst_47 {dimension_numbers = #tpu.dot_dimension_numbers<[1], [0], [0], [1], [0, 0, 1, 1], [], []>} : vector<32x32xf32>, vector<32x96xf32>, vector<32x96xf32> -> vector<32x96xf32>
    %147 = vector.broadcast %110 : vector<1x96xf32> to vector<32x96xf32>
    %148 = arith.addf %146, %147 : vector<32x96xf32>
    %cst_48 = arith.constant dense<0.000000e+00> : vector<32x96xf32>
    %149 = tpu.matmul %145, %109, %cst_48 {dimension_numbers = #tpu.dot_dimension_numbers<[1], [0], [0], [1], [0, 0, 1, 1], [], []>} : vector<32x32xf32>, vector<32x96xf32>, vector<32x96xf32> -> vector<32x96xf32>
    %150 = vector.broadcast %111 : vector<1x96xf32> to vector<32x96xf32>
    %151 = arith.addf %149, %150 : vector<32x96xf32>
    %152 = vector.extract_strided_slice %148 {offsets = [0, 0], sizes = [32, 32], strides = [1, 1]} : vector<32x96xf32> to vector<32x32xf32>
    %153 = vector.extract_strided_slice %151 {offsets = [0, 0], sizes = [32, 32], strides = [1, 1]} : vector<32x96xf32> to vector<32x32xf32>
    %154 = arith.addf %152, %153 : vector<32x32xf32>
    %155 = arith.negf %154 : vector<32x32xf32>
    %156 = math.exp %155 : vector<32x32xf32>
    %cst_49 = arith.constant 1.000000e+00 : f32
    %157 = vector.broadcast %cst_49 : f32 to vector<32x32xf32>
    %158 = arith.addf %157, %156 : vector<32x32xf32>
    %159 = arith.divf %157, %158 : vector<32x32xf32>
    %160 = vector.extract_strided_slice %148 {offsets = [0, 32], sizes = [32, 32], strides = [1, 1]} : vector<32x96xf32> to vector<32x32xf32>
    %161 = vector.extract_strided_slice %151 {offsets = [0, 32], sizes = [32, 32], strides = [1, 1]} : vector<32x96xf32> to vector<32x32xf32>
    %162 = arith.addf %160, %161 : vector<32x32xf32>
    %163 = arith.negf %162 : vector<32x32xf32>
    %164 = math.exp %163 : vector<32x32xf32>
    %cst_50 = arith.constant 1.000000e+00 : f32
    %165 = vector.broadcast %cst_50 : f32 to vector<32x32xf32>
    %166 = arith.addf %165, %164 : vector<32x32xf32>
    %167 = arith.divf %165, %166 : vector<32x32xf32>
    %168 = vector.extract_strided_slice %148 {offsets = [0, 64], sizes = [32, 32], strides = [1, 1]} : vector<32x96xf32> to vector<32x32xf32>
    %169 = vector.extract_strided_slice %151 {offsets = [0, 64], sizes = [32, 32], strides = [1, 1]} : vector<32x96xf32> to vector<32x32xf32>
    %170 = arith.mulf %159, %169 : vector<32x32xf32>
    %171 = arith.addf %168, %170 : vector<32x32xf32>
    %172 = math.tanh %171 : vector<32x32xf32>
    %cst_51 = arith.constant 1.000000e+00 : f32
    %173 = vector.broadcast %cst_51 : f32 to vector<32x32xf32>
    %174 = arith.subf %173, %167 : vector<32x32xf32>
    %175 = arith.mulf %174, %172 : vector<32x32xf32>
    %176 = arith.mulf %167, %145 : vector<32x32xf32>
    %177 = arith.addf %175, %176 : vector<32x32xf32>
    %cst_52 = arith.constant dense<0.000000e+00> : vector<32x96xf32>
    %178 = tpu.matmul %107, %108, %cst_52 {dimension_numbers = #tpu.dot_dimension_numbers<[1], [0], [0], [1], [0, 0, 1, 1], [], []>} : vector<32x32xf32>, vector<32x96xf32>, vector<32x96xf32> -> vector<32x96xf32>
    %179 = vector.broadcast %110 : vector<1x96xf32> to vector<32x96xf32>
    %180 = arith.addf %178, %179 : vector<32x96xf32>
    %cst_53 = arith.constant dense<0.000000e+00> : vector<32x96xf32>
    %181 = tpu.matmul %177, %109, %cst_53 {dimension_numbers = #tpu.dot_dimension_numbers<[1], [0], [0], [1], [0, 0, 1, 1], [], []>} : vector<32x32xf32>, vector<32x96xf32>, vector<32x96xf32> -> vector<32x96xf32>
    %182 = vector.broadcast %111 : vector<1x96xf32> to vector<32x96xf32>
    %183 = arith.addf %181, %182 : vector<32x96xf32>
    %184 = vector.extract_strided_slice %180 {offsets = [0, 0], sizes = [32, 32], strides = [1, 1]} : vector<32x96xf32> to vector<32x32xf32>
    %185 = vector.extract_strided_slice %183 {offsets = [0, 0], sizes = [32, 32], strides = [1, 1]} : vector<32x96xf32> to vector<32x32xf32>
    %186 = arith.addf %184, %185 : vector<32x32xf32>
    %187 = arith.negf %186 : vector<32x32xf32>
    %188 = math.exp %187 : vector<32x32xf32>
    %cst_54 = arith.constant 1.000000e+00 : f32
    %189 = vector.broadcast %cst_54 : f32 to vector<32x32xf32>
    %190 = arith.addf %189, %188 : vector<32x32xf32>
    %191 = arith.divf %189, %190 : vector<32x32xf32>
    %192 = vector.extract_strided_slice %180 {offsets = [0, 32], sizes = [32, 32], strides = [1, 1]} : vector<32x96xf32> to vector<32x32xf32>
    %193 = vector.extract_strided_slice %183 {offsets = [0, 32], sizes = [32, 32], strides = [1, 1]} : vector<32x96xf32> to vector<32x32xf32>
    %194 = arith.addf %192, %193 : vector<32x32xf32>
    %195 = arith.negf %194 : vector<32x32xf32>
    %196 = math.exp %195 : vector<32x32xf32>
    %cst_55 = arith.constant 1.000000e+00 : f32
    %197 = vector.broadcast %cst_55 : f32 to vector<32x32xf32>
    %198 = arith.addf %197, %196 : vector<32x32xf32>
    %199 = arith.divf %197, %198 : vector<32x32xf32>
    %200 = vector.extract_strided_slice %180 {offsets = [0, 64], sizes = [32, 32], strides = [1, 1]} : vector<32x96xf32> to vector<32x32xf32>
    %201 = vector.extract_strided_slice %183 {offsets = [0, 64], sizes = [32, 32], strides = [1, 1]} : vector<32x96xf32> to vector<32x32xf32>
    %202 = arith.mulf %191, %201 : vector<32x32xf32>
    %203 = arith.addf %200, %202 : vector<32x32xf32>
    %204 = math.tanh %203 : vector<32x32xf32>
    %cst_56 = arith.constant 1.000000e+00 : f32
    %205 = vector.broadcast %cst_56 : f32 to vector<32x32xf32>
    %206 = arith.subf %205, %199 : vector<32x32xf32>
    %207 = arith.mulf %206, %204 : vector<32x32xf32>
    %208 = arith.mulf %199, %177 : vector<32x32xf32>
    %209 = arith.addf %207, %208 : vector<32x32xf32>
    %c0_57 = arith.constant 0 : index
    %c0_58 = arith.constant 0 : index
    %c0_59 = arith.constant 0 : index
    %210 = vector.load %arg10[%c0_57, %c0_58, %c0_59] : memref<3x32x32xf32, #tpu.memory_space<vmem>>, vector<1x32x32xf32>
    %211 = vector.shape_cast %210 : vector<1x32x32xf32> to vector<32x32xf32>
    %212 = vector.shape_cast %145 : vector<32x32xf32> to vector<1x32x32xf32>
    tpu.vector_store %arg10[%c0_57, %c0_58, %c0_59], %212 {strides = array<i32>} : memref<3x32x32xf32, #tpu.memory_space<vmem>>, vector<1x32x32xf32>,
    %c1_60 = arith.constant 1 : index
    %c0_61 = arith.constant 0 : index
    %c0_62 = arith.constant 0 : index
    %213 = vector.load %arg10[%c1_60, %c0_61, %c0_62] : memref<3x32x32xf32, #tpu.memory_space<vmem>>, vector<1x32x32xf32>
    %214 = vector.shape_cast %213 : vector<1x32x32xf32> to vector<32x32xf32>
    %215 = vector.shape_cast %177 : vector<32x32xf32> to vector<1x32x32xf32>
    tpu.vector_store %arg10[%c1_60, %c0_61, %c0_62], %215 {strides = array<i32>} : memref<3x32x32xf32, #tpu.memory_space<vmem>>, vector<1x32x32xf32>,
    %c2_63 = arith.constant 2 : index
    %c0_64 = arith.constant 0 : index
    %c0_65 = arith.constant 0 : index
    %216 = vector.load %arg10[%c2_63, %c0_64, %c0_65] : memref<3x32x32xf32, #tpu.memory_space<vmem>>, vector<1x32x32xf32>
    %217 = vector.shape_cast %216 : vector<1x32x32xf32> to vector<32x32xf32>
    %218 = vector.shape_cast %209 : vector<32x32xf32> to vector<1x32x32xf32>
    tpu.vector_store %arg10[%c2_63, %c0_64, %c0_65], %218 {strides = array<i32>} : memref<3x32x32xf32, #tpu.memory_space<vmem>>, vector<1x32x32xf32>,
    return
  }
}

module attributes {stable_mosaic.version = 11 : i64} {
  func.func @_gru_stack_kernel(%arg0: memref<3x4x32xf32, #tpu.memory_space<vmem>>, %arg1: memref<1x4x32xf32, #tpu.memory_space<vmem>>, %arg2: memref<32x96xf32, #tpu.memory_space<vmem>>, %arg3: memref<32x96xf32, #tpu.memory_space<vmem>>, %arg4: memref<1x96xf32, #tpu.memory_space<vmem>>, %arg5: memref<1x96xf32, #tpu.memory_space<vmem>>, %arg6: memref<3x4x32xf32, #tpu.memory_space<vmem>>) attributes {dimension_semantics = [], scalar_prefetch = 0 : i64, scratch_operands = 0 : i64, tpu.core_type = #tpu.core_type<tc>} {
    %c0 = arith.constant 0 : index
    %c0_0 = arith.constant 0 : index
    %c0_1 = arith.constant 0 : index
    %0 = vector.load %arg0[%c0, %c0_0, %c0_1] : memref<3x4x32xf32, #tpu.memory_space<vmem>>, vector<1x4x32xf32>
    %1 = vector.shape_cast %0 : vector<1x4x32xf32> to vector<4x32xf32>
    %c1 = arith.constant 1 : index
    %c0_2 = arith.constant 0 : index
    %c0_3 = arith.constant 0 : index
    %2 = vector.load %arg0[%c1, %c0_2, %c0_3] : memref<3x4x32xf32, #tpu.memory_space<vmem>>, vector<1x4x32xf32>
    %3 = vector.shape_cast %2 : vector<1x4x32xf32> to vector<4x32xf32>
    %c2 = arith.constant 2 : index
    %c0_4 = arith.constant 0 : index
    %c0_5 = arith.constant 0 : index
    %4 = vector.load %arg0[%c2, %c0_4, %c0_5] : memref<3x4x32xf32, #tpu.memory_space<vmem>>, vector<1x4x32xf32>
    %5 = vector.shape_cast %4 : vector<1x4x32xf32> to vector<4x32xf32>
    %c0_6 = arith.constant 0 : index
    %c0_7 = arith.constant 0 : index
    %6 = vector.load %arg2[%c0_6, %c0_7] : memref<32x96xf32, #tpu.memory_space<vmem>>, vector<32x96xf32>
    %c0_8 = arith.constant 0 : index
    %c0_9 = arith.constant 0 : index
    %7 = vector.load %arg3[%c0_8, %c0_9] : memref<32x96xf32, #tpu.memory_space<vmem>>, vector<32x96xf32>
    %c0_10 = arith.constant 0 : index
    %c0_11 = arith.constant 0 : index
    %8 = vector.load %arg4[%c0_10, %c0_11] : memref<1x96xf32, #tpu.memory_space<vmem>>, vector<1x96xf32>
    %c0_12 = arith.constant 0 : index
    %c0_13 = arith.constant 0 : index
    %9 = vector.load %arg5[%c0_12, %c0_13] : memref<1x96xf32, #tpu.memory_space<vmem>>, vector<1x96xf32>
    %c0_14 = arith.constant 0 : index
    %c0_15 = arith.constant 0 : index
    %c0_16 = arith.constant 0 : index
    %10 = vector.load %arg1[%c0_14, %c0_15, %c0_16] : memref<1x4x32xf32, #tpu.memory_space<vmem>>, vector<1x4x32xf32>
    %11 = vector.shape_cast %10 : vector<1x4x32xf32> to vector<4x32xf32>
    %cst = arith.constant dense<0.000000e+00> : vector<4x96xf32>
    %12 = tpu.matmul %1, %6, %cst {dimension_numbers = #tpu.dot_dimension_numbers<[1], [0], [0], [1], [0, 0, 1, 1], [], []>} : vector<4x32xf32>, vector<32x96xf32>, vector<4x96xf32> -> vector<4x96xf32>
    %13 = vector.broadcast %8 : vector<1x96xf32> to vector<4x96xf32>
    %14 = arith.addf %12, %13 : vector<4x96xf32>
    %cst_17 = arith.constant dense<0.000000e+00> : vector<4x96xf32>
    %15 = tpu.matmul %11, %7, %cst_17 {dimension_numbers = #tpu.dot_dimension_numbers<[1], [0], [0], [1], [0, 0, 1, 1], [], []>} : vector<4x32xf32>, vector<32x96xf32>, vector<4x96xf32> -> vector<4x96xf32>
    %16 = vector.broadcast %9 : vector<1x96xf32> to vector<4x96xf32>
    %17 = arith.addf %15, %16 : vector<4x96xf32>
    %18 = vector.extract_strided_slice %14 {offsets = [0, 0], sizes = [4, 32], strides = [1, 1]} : vector<4x96xf32> to vector<4x32xf32>
    %19 = vector.extract_strided_slice %17 {offsets = [0, 0], sizes = [4, 32], strides = [1, 1]} : vector<4x96xf32> to vector<4x32xf32>
    %20 = arith.addf %18, %19 : vector<4x32xf32>
    %21 = arith.negf %20 : vector<4x32xf32>
    %22 = math.exp %21 : vector<4x32xf32>
    %cst_18 = arith.constant 1.000000e+00 : f32
    %23 = vector.broadcast %cst_18 : f32 to vector<4x32xf32>
    %24 = arith.addf %23, %22 : vector<4x32xf32>
    %25 = arith.divf %23, %24 : vector<4x32xf32>
    %26 = vector.extract_strided_slice %14 {offsets = [0, 32], sizes = [4, 32], strides = [1, 1]} : vector<4x96xf32> to vector<4x32xf32>
    %27 = vector.extract_strided_slice %17 {offsets = [0, 32], sizes = [4, 32], strides = [1, 1]} : vector<4x96xf32> to vector<4x32xf32>
    %28 = arith.addf %26, %27 : vector<4x32xf32>
    %29 = arith.negf %28 : vector<4x32xf32>
    %30 = math.exp %29 : vector<4x32xf32>
    %cst_19 = arith.constant 1.000000e+00 : f32
    %31 = vector.broadcast %cst_19 : f32 to vector<4x32xf32>
    %32 = arith.addf %31, %30 : vector<4x32xf32>
    %33 = arith.divf %31, %32 : vector<4x32xf32>
    %34 = vector.extract_strided_slice %14 {offsets = [0, 64], sizes = [4, 32], strides = [1, 1]} : vector<4x96xf32> to vector<4x32xf32>
    %35 = vector.extract_strided_slice %17 {offsets = [0, 64], sizes = [4, 32], strides = [1, 1]} : vector<4x96xf32> to vector<4x32xf32>
    %36 = arith.mulf %25, %35 : vector<4x32xf32>
    %37 = arith.addf %34, %36 : vector<4x32xf32>
    %38 = math.tanh %37 : vector<4x32xf32>
    %cst_20 = arith.constant 1.000000e+00 : f32
    %39 = vector.broadcast %cst_20 : f32 to vector<4x32xf32>
    %40 = arith.subf %39, %33 : vector<4x32xf32>
    %41 = arith.mulf %40, %38 : vector<4x32xf32>
    %42 = arith.mulf %33, %11 : vector<4x32xf32>
    %43 = arith.addf %41, %42 : vector<4x32xf32>
    %cst_21 = arith.constant dense<0.000000e+00> : vector<4x96xf32>
    %44 = tpu.matmul %3, %6, %cst_21 {dimension_numbers = #tpu.dot_dimension_numbers<[1], [0], [0], [1], [0, 0, 1, 1], [], []>} : vector<4x32xf32>, vector<32x96xf32>, vector<4x96xf32> -> vector<4x96xf32>
    %45 = vector.broadcast %8 : vector<1x96xf32> to vector<4x96xf32>
    %46 = arith.addf %44, %45 : vector<4x96xf32>
    %cst_22 = arith.constant dense<0.000000e+00> : vector<4x96xf32>
    %47 = tpu.matmul %43, %7, %cst_22 {dimension_numbers = #tpu.dot_dimension_numbers<[1], [0], [0], [1], [0, 0, 1, 1], [], []>} : vector<4x32xf32>, vector<32x96xf32>, vector<4x96xf32> -> vector<4x96xf32>
    %48 = vector.broadcast %9 : vector<1x96xf32> to vector<4x96xf32>
    %49 = arith.addf %47, %48 : vector<4x96xf32>
    %50 = vector.extract_strided_slice %46 {offsets = [0, 0], sizes = [4, 32], strides = [1, 1]} : vector<4x96xf32> to vector<4x32xf32>
    %51 = vector.extract_strided_slice %49 {offsets = [0, 0], sizes = [4, 32], strides = [1, 1]} : vector<4x96xf32> to vector<4x32xf32>
    %52 = arith.addf %50, %51 : vector<4x32xf32>
    %53 = arith.negf %52 : vector<4x32xf32>
    %54 = math.exp %53 : vector<4x32xf32>
    %cst_23 = arith.constant 1.000000e+00 : f32
    %55 = vector.broadcast %cst_23 : f32 to vector<4x32xf32>
    %56 = arith.addf %55, %54 : vector<4x32xf32>
    %57 = arith.divf %55, %56 : vector<4x32xf32>
    %58 = vector.extract_strided_slice %46 {offsets = [0, 32], sizes = [4, 32], strides = [1, 1]} : vector<4x96xf32> to vector<4x32xf32>
    %59 = vector.extract_strided_slice %49 {offsets = [0, 32], sizes = [4, 32], strides = [1, 1]} : vector<4x96xf32> to vector<4x32xf32>
    %60 = arith.addf %58, %59 : vector<4x32xf32>
    %61 = arith.negf %60 : vector<4x32xf32>
    %62 = math.exp %61 : vector<4x32xf32>
    %cst_24 = arith.constant 1.000000e+00 : f32
    %63 = vector.broadcast %cst_24 : f32 to vector<4x32xf32>
    %64 = arith.addf %63, %62 : vector<4x32xf32>
    %65 = arith.divf %63, %64 : vector<4x32xf32>
    %66 = vector.extract_strided_slice %46 {offsets = [0, 64], sizes = [4, 32], strides = [1, 1]} : vector<4x96xf32> to vector<4x32xf32>
    %67 = vector.extract_strided_slice %49 {offsets = [0, 64], sizes = [4, 32], strides = [1, 1]} : vector<4x96xf32> to vector<4x32xf32>
    %68 = arith.mulf %57, %67 : vector<4x32xf32>
    %69 = arith.addf %66, %68 : vector<4x32xf32>
    %70 = math.tanh %69 : vector<4x32xf32>
    %cst_25 = arith.constant 1.000000e+00 : f32
    %71 = vector.broadcast %cst_25 : f32 to vector<4x32xf32>
    %72 = arith.subf %71, %65 : vector<4x32xf32>
    %73 = arith.mulf %72, %70 : vector<4x32xf32>
    %74 = arith.mulf %65, %43 : vector<4x32xf32>
    %75 = arith.addf %73, %74 : vector<4x32xf32>
    %cst_26 = arith.constant dense<0.000000e+00> : vector<4x96xf32>
    %76 = tpu.matmul %5, %6, %cst_26 {dimension_numbers = #tpu.dot_dimension_numbers<[1], [0], [0], [1], [0, 0, 1, 1], [], []>} : vector<4x32xf32>, vector<32x96xf32>, vector<4x96xf32> -> vector<4x96xf32>
    %77 = vector.broadcast %8 : vector<1x96xf32> to vector<4x96xf32>
    %78 = arith.addf %76, %77 : vector<4x96xf32>
    %cst_27 = arith.constant dense<0.000000e+00> : vector<4x96xf32>
    %79 = tpu.matmul %75, %7, %cst_27 {dimension_numbers = #tpu.dot_dimension_numbers<[1], [0], [0], [1], [0, 0, 1, 1], [], []>} : vector<4x32xf32>, vector<32x96xf32>, vector<4x96xf32> -> vector<4x96xf32>
    %80 = vector.broadcast %9 : vector<1x96xf32> to vector<4x96xf32>
    %81 = arith.addf %79, %80 : vector<4x96xf32>
    %82 = vector.extract_strided_slice %78 {offsets = [0, 0], sizes = [4, 32], strides = [1, 1]} : vector<4x96xf32> to vector<4x32xf32>
    %83 = vector.extract_strided_slice %81 {offsets = [0, 0], sizes = [4, 32], strides = [1, 1]} : vector<4x96xf32> to vector<4x32xf32>
    %84 = arith.addf %82, %83 : vector<4x32xf32>
    %85 = arith.negf %84 : vector<4x32xf32>
    %86 = math.exp %85 : vector<4x32xf32>
    %cst_28 = arith.constant 1.000000e+00 : f32
    %87 = vector.broadcast %cst_28 : f32 to vector<4x32xf32>
    %88 = arith.addf %87, %86 : vector<4x32xf32>
    %89 = arith.divf %87, %88 : vector<4x32xf32>
    %90 = vector.extract_strided_slice %78 {offsets = [0, 32], sizes = [4, 32], strides = [1, 1]} : vector<4x96xf32> to vector<4x32xf32>
    %91 = vector.extract_strided_slice %81 {offsets = [0, 32], sizes = [4, 32], strides = [1, 1]} : vector<4x96xf32> to vector<4x32xf32>
    %92 = arith.addf %90, %91 : vector<4x32xf32>
    %93 = arith.negf %92 : vector<4x32xf32>
    %94 = math.exp %93 : vector<4x32xf32>
    %cst_29 = arith.constant 1.000000e+00 : f32
    %95 = vector.broadcast %cst_29 : f32 to vector<4x32xf32>
    %96 = arith.addf %95, %94 : vector<4x32xf32>
    %97 = arith.divf %95, %96 : vector<4x32xf32>
    %98 = vector.extract_strided_slice %78 {offsets = [0, 64], sizes = [4, 32], strides = [1, 1]} : vector<4x96xf32> to vector<4x32xf32>
    %99 = vector.extract_strided_slice %81 {offsets = [0, 64], sizes = [4, 32], strides = [1, 1]} : vector<4x96xf32> to vector<4x32xf32>
    %100 = arith.mulf %89, %99 : vector<4x32xf32>
    %101 = arith.addf %98, %100 : vector<4x32xf32>
    %102 = math.tanh %101 : vector<4x32xf32>
    %cst_30 = arith.constant 1.000000e+00 : f32
    %103 = vector.broadcast %cst_30 : f32 to vector<4x32xf32>
    %104 = arith.subf %103, %97 : vector<4x32xf32>
    %105 = arith.mulf %104, %102 : vector<4x32xf32>
    %106 = arith.mulf %97, %75 : vector<4x32xf32>
    %107 = arith.addf %105, %106 : vector<4x32xf32>
    %108 = math.tanh %43 : vector<4x32xf32>
    %c0_31 = arith.constant 0 : index
    %c0_32 = arith.constant 0 : index
    %c0_33 = arith.constant 0 : index
    %109 = vector.load %arg6[%c0_31, %c0_32, %c0_33] : memref<3x4x32xf32, #tpu.memory_space<vmem>>, vector<1x4x32xf32>
    %110 = vector.shape_cast %109 : vector<1x4x32xf32> to vector<4x32xf32>
    %111 = vector.shape_cast %108 : vector<4x32xf32> to vector<1x4x32xf32>
    tpu.vector_store %arg6[%c0_31, %c0_32, %c0_33], %111 {strides = array<i32>} : memref<3x4x32xf32, #tpu.memory_space<vmem>>, vector<1x4x32xf32>,
    %112 = math.tanh %75 : vector<4x32xf32>
    %c1_34 = arith.constant 1 : index
    %c0_35 = arith.constant 0 : index
    %c0_36 = arith.constant 0 : index
    %113 = vector.load %arg6[%c1_34, %c0_35, %c0_36] : memref<3x4x32xf32, #tpu.memory_space<vmem>>, vector<1x4x32xf32>
    %114 = vector.shape_cast %113 : vector<1x4x32xf32> to vector<4x32xf32>
    %115 = vector.shape_cast %112 : vector<4x32xf32> to vector<1x4x32xf32>
    tpu.vector_store %arg6[%c1_34, %c0_35, %c0_36], %115 {strides = array<i32>} : memref<3x4x32xf32, #tpu.memory_space<vmem>>, vector<1x4x32xf32>,
    %116 = math.tanh %107 : vector<4x32xf32>
    %c2_37 = arith.constant 2 : index
    %c0_38 = arith.constant 0 : index
    %c0_39 = arith.constant 0 : index
    %117 = vector.load %arg6[%c2_37, %c0_38, %c0_39] : memref<3x4x32xf32, #tpu.memory_space<vmem>>, vector<1x4x32xf32>
    %118 = vector.shape_cast %117 : vector<1x4x32xf32> to vector<4x32xf32>
    %119 = vector.shape_cast %116 : vector<4x32xf32> to vector<1x4x32xf32>
    tpu.vector_store %arg6[%c2_37, %c0_38, %c0_39], %119 {strides = array<i32>} : memref<3x4x32xf32, #tpu.memory_space<vmem>>, vector<1x4x32xf32>,
    return
  }
}

module attributes {stable_mosaic.version = 11 : i64} {
  func.func @_mm_kernel(%arg0: memref<96x32xf32, #tpu.memory_space<vmem>>, %arg1: memref<32x32xf32, #tpu.memory_space<vmem>>, %arg2: memref<96x32xf32, #tpu.memory_space<vmem>>) attributes {dimension_semantics = [], scalar_prefetch = 0 : i64, scratch_operands = 0 : i64, tpu.core_type = #tpu.core_type<tc>} {
    %c0 = arith.constant 0 : index
    %c0_0 = arith.constant 0 : index
    %0 = vector.load %arg0[%c0, %c0_0] : memref<96x32xf32, #tpu.memory_space<vmem>>, vector<96x32xf32>
    %c0_1 = arith.constant 0 : index
    %c0_2 = arith.constant 0 : index
    %1 = vector.load %arg1[%c0_1, %c0_2] : memref<32x32xf32, #tpu.memory_space<vmem>>, vector<32x32xf32>
    %cst = arith.constant dense<0.000000e+00> : vector<96x32xf32>
    %2 = tpu.matmul %0, %1, %cst {dimension_numbers = #tpu.dot_dimension_numbers<[1], [0], [0], [1], [0, 0, 1, 1], [], []>} : vector<96x32xf32>, vector<32x32xf32>, vector<96x32xf32> -> vector<96x32xf32>
    %3 = math.tanh %2 : vector<96x32xf32>
    %c0_3 = arith.constant 0 : index
    %c0_4 = arith.constant 0 : index
    %4 = vector.load %arg2[%c0_3, %c0_4] : memref<96x32xf32, #tpu.memory_space<vmem>>, vector<96x32xf32>
    tpu.vector_store %arg2[%c0_3, %c0_4], %3 {strides = array<i32>} : memref<96x32xf32, #tpu.memory_space<vmem>>, vector<96x32xf32>,
    return
  }
}

module attributes {stable_mosaic.version = 11 : i64} {
  func.func @_conve_kernel(%arg0: memref<8x32xf32, #tpu.memory_space<vmem>>, %arg1: memref<8x32xf32, #tpu.memory_space<vmem>>, %arg2: memref<32x288xf32, #tpu.memory_space<vmem>>, %arg3: memref<32x288xf32, #tpu.memory_space<vmem>>, %arg4: memref<288x32xf32, #tpu.memory_space<vmem>>, %arg5: memref<1x32xf32, #tpu.memory_space<vmem>>, %arg6: memref<32x96xf32, #tpu.memory_space<vmem>>, %arg7: memref<1x96xf32, #tpu.memory_space<vmem>>, %arg8: memref<8x96xf32, #tpu.memory_space<vmem>>) attributes {dimension_semantics = [], scalar_prefetch = 0 : i64, scratch_operands = 0 : i64, tpu.core_type = #tpu.core_type<tc>} {
    %c0 = arith.constant 0 : index
    %c0_0 = arith.constant 0 : index
    %0 = vector.load %arg0[%c0, %c0_0] : memref<8x32xf32, #tpu.memory_space<vmem>>, vector<8x32xf32>
    %c0_1 = arith.constant 0 : index
    %c0_2 = arith.constant 0 : index
    %1 = vector.load %arg2[%c0_1, %c0_2] : memref<32x288xf32, #tpu.memory_space<vmem>>, vector<32x288xf32>
    %cst = arith.constant dense<0.000000e+00> : vector<8x288xf32>
    %2 = tpu.matmul %0, %1, %cst {dimension_numbers = #tpu.dot_dimension_numbers<[1], [0], [0], [1], [0, 0, 1, 1], [], []>} : vector<8x32xf32>, vector<32x288xf32>, vector<8x288xf32> -> vector<8x288xf32>
    %c0_3 = arith.constant 0 : index
    %c0_4 = arith.constant 0 : index
    %3 = vector.load %arg1[%c0_3, %c0_4] : memref<8x32xf32, #tpu.memory_space<vmem>>, vector<8x32xf32>
    %c0_5 = arith.constant 0 : index
    %c0_6 = arith.constant 0 : index
    %4 = vector.load %arg3[%c0_5, %c0_6] : memref<32x288xf32, #tpu.memory_space<vmem>>, vector<32x288xf32>
    %cst_7 = arith.constant dense<0.000000e+00> : vector<8x288xf32>
    %5 = tpu.matmul %3, %4, %cst_7 {dimension_numbers = #tpu.dot_dimension_numbers<[1], [0], [0], [1], [0, 0, 1, 1], [], []>} : vector<8x32xf32>, vector<32x288xf32>, vector<8x288xf32> -> vector<8x288xf32>
    %6 = arith.addf %2, %5 : vector<8x288xf32>
    %cst_8 = arith.constant 0.000000e+00 : f32
    %7 = vector.broadcast %cst_8 : f32 to vector<8x288xf32>
    %8 = arith.maximumf %6, %7 : vector<8x288xf32>
    %c0_9 = arith.constant 0 : index
    %c0_10 = arith.constant 0 : index
    %9 = vector.load %arg4[%c0_9, %c0_10] : memref<288x32xf32, #tpu.memory_space<vmem>>, vector<288x32xf32>
    %cst_11 = arith.constant dense<0.000000e+00> : vector<8x32xf32>
    %10 = tpu.matmul %8, %9, %cst_11 {dimension_numbers = #tpu.dot_dimension_numbers<[1], [0], [0], [1], [0, 0, 1, 1], [], []>} : vector<8x288xf32>, vector<288x32xf32>, vector<8x32xf32> -> vector<8x32xf32>
    %c0_12 = arith.constant 0 : index
    %c0_13 = arith.constant 0 : index
    %11 = vector.load %arg5[%c0_12, %c0_13] : memref<1x32xf32, #tpu.memory_space<vmem>>, vector<1x32xf32>
    %12 = vector.broadcast %11 : vector<1x32xf32> to vector<8x32xf32>
    %13 = arith.addf %10, %12 : vector<8x32xf32>
    %cst_14 = arith.constant 0.000000e+00 : f32
    %14 = vector.broadcast %cst_14 : f32 to vector<8x32xf32>
    %15 = arith.maximumf %13, %14 : vector<8x32xf32>
    %c0_15 = arith.constant 0 : index
    %c0_16 = arith.constant 0 : index
    %16 = vector.load %arg6[%c0_15, %c0_16] : memref<32x96xf32, #tpu.memory_space<vmem>>, vector<32x96xf32>
    %cst_17 = arith.constant dense<0.000000e+00> : vector<8x96xf32>
    %17 = tpu.matmul %15, %16, %cst_17 {dimension_numbers = #tpu.dot_dimension_numbers<[1], [0], [0], [1], [0, 0, 1, 1], [], []>} : vector<8x32xf32>, vector<32x96xf32>, vector<8x96xf32> -> vector<8x96xf32>
    %c0_18 = arith.constant 0 : index
    %c0_19 = arith.constant 0 : index
    %18 = vector.load %arg7[%c0_18, %c0_19] : memref<1x96xf32, #tpu.memory_space<vmem>>, vector<1x96xf32>
    %19 = vector.broadcast %18 : vector<1x96xf32> to vector<8x96xf32>
    %20 = arith.addf %17, %19 : vector<8x96xf32>
    %21 = arith.negf %20 : vector<8x96xf32>
    %22 = math.exp %21 : vector<8x96xf32>
    %cst_20 = arith.constant 1.000000e+00 : f32
    %23 = vector.broadcast %cst_20 : f32 to vector<8x96xf32>
    %24 = arith.addf %23, %22 : vector<8x96xf32>
    %25 = arith.divf %23, %24 : vector<8x96xf32>
    %c0_21 = arith.constant 0 : index
    %c0_22 = arith.constant 0 : index
    %26 = vector.load %arg8[%c0_21, %c0_22] : memref<8x96xf32, #tpu.memory_space<vmem>>, vector<8x96xf32>
    tpu.vector_store %arg8[%c0_21, %c0_22], %25 {strides = array<i32>} : memref<8x96xf32, #tpu.memory_space<vmem>>, vector<8x96xf32>,
    return
  }
}

</mosaic_0001>

<bundles_post_ra>
// kernel: se_gnn_forward.7
= control target key start
LH: loop header
LB: loop body
LE: loop exit
PB: predicated region body
PF: predicated region fallthrough
CT: control target
= control target key end

     0   :  { %v461_v3 = vmov 0.0   ;;  %vm35_vm0 = vcmask 261120   ;;  %s693_s1 = inlined_call_operand.vmem [shape: f32[32,384], index: 1, kind: input, shape index: {}]   ;;  %s694_s0 = inlined_call_operand.vmem [shape: f32[96,32], index: 0, kind: input, shape index: {}]   ;;  %s695_s2 = inlined_call_operand.vmem [shape: f32[96,384], index: 2, kind: output, shape index: {}]  }
   0x1   :  { %v24_v0 = vld [vmem:[%s693_s1 + $0x8] sm:$0xff]  ;;  %v27_v1 = vld [vmem:[%s693_s1 + $0x20] sm:$0xff]  ;;  %136 = vmatprep.mubr.f32.mxu0 %v461_v3  ;;  %190 = vmatprep.mubr.f32.mxu1 %v461_v3  ;;  %v26_v5 = vld [vmem:[%s693_s1 + $0x18] sm:$0xff] }
   0x2   :  { %v23_v2 = vld [vmem:[%s693_s1] sm:$0xff]  ;;  %v440_v4 = vpack.c.bf16 %v27_v1, %v24_v0  ;;  %v30_v6 = vld [vmem:[%s693_s1 + $0x38] sm:$0xff]  ;;  %v33_v7 = vld [vmem:[%s693_s1 + $0x50] sm:$0xff] }
   0x3   :  { %v442_v8 = vpack.c.bf16 %v26_v5, %v23_v2  ;;  %v444_v9 = vpack.c.bf16 %v33_v7, %v30_v6  ;;  %v29_v10 = vld [vmem:[%s693_s1 + $0x30] sm:$0xff]  ;;  %v32_v11 = vld [vmem:[%s693_s1 + $0x48] sm:$0xff]  ;;  %v31_v16 = vld [vmem:[%s693_s1 + $0x40] sm:$0xff] }
   0x4   :  { %441 = vmatprep.subr.bf16.mxu0 %v440_v4  ;;  %456 = vmatprep.subr.bf16.mxu1 %v440_v4  ;;  %v25_v12 = vld [vmem:[%s693_s1 + $0x10] sm:$0xff]  ;;  %v28_v13 = vld [vmem:[%s693_s1 + $0x28] sm:$0xff]  ;;  %v446_v14 = vpack.c.bf16 %v32_v11, %v29_v10  ;;  %v34_v17 = vld [vmem:[%s693_s1 + $0x58] sm:$0xff] }
   0x5   :  { %443 = vmatpush1.bf16.msra.mxu0 %v442_v8  ;;  %458 = vmatpush1.bf16.msra.mxu1 %v442_v8  ;;  %v448_v15 = vpack.c.bf16 %v28_v13, %v25_v12  ;;  %v11_v18 = vld [vmem:[%s694_s0] sm:$0xff]  ;;  %v20_v19 = vld [vmem:[%s694_s0 + $0x48] sm:$0xff]  ;;  %v452_v20 = vpack.c.bf16 %v34_v17, %v31_v16  ;;  %v21_v22 = vld [vmem:[%s694_s0 + $0x50] sm:$0xff] }
   0x6   :  { %445 = vmatprep.subr.bf16.mxu0 %v444_v9  ;;  %457 = vmatprep.subr.bf16.mxu1 %v444_v9  ;;  %v12_v21 = vld [vmem:[%s694_s0 + $0x8] sm:$0xff]  ;;  %v13_v23 = vld [vmem:[%s694_s0 + $0x10] sm:$0xff]  ;;  %v22_v24 = vld [vmem:[%s694_s0 + $0x58] sm:$0xff] }
   0x7   :  { %v14_v25 = vld [vmem:[%s694_s0 + $0x18] sm:$0xff]  ;;  %v15_v26 = vld [vmem:[%s694_s0 + $0x20] sm:$0xff]  ;;  %v16_v27 = vld [vmem:[%s694_s0 + $0x28] sm:$0xff] }
   0x8   :  { %v17_v28 = vld [vmem:[%s694_s0 + $0x30] sm:$0xff]  ;;  %v18_v29 = vld [vmem:[%s694_s0 + $0x38] sm:$0xff]  ;;  %v19_v30 = vld [vmem:[%s694_s0 + $0x40] sm:$0xff] }
   0x9   :  { %447 = vmatpush1.bf16.msra.mxu0 %v446_v14  ;;  %459 = vmatpush1.bf16.msra.mxu1 %v446_v14 }
   0xa   :  { %449 = vmatprep.subr.bf16.mxu1 %v448_v15 }
   0xc   :  { %374 = vmatmul.mubr.msk.f32.vlgmr.msra.gmra.mrb[0].mxu0 %vm35_vm0, %v11_v18  ;;  %383 = vmatmul.mubr.msk.f32.vlgmr.msra.gmra.mrb[0].mxu1 %vm35_vm0, %v20_v19 }
   0xd   :  { %451 = vmatpush3.bf16.msra.mxu1 %v448_v15  ;;  %142 = vmatprep.mubr.f32.mxu0 %v461_v3 }
   0xe   :  { %196 = vmatprep.mubr.f32.mxu1 %v461_v3  ;;  %453 = vmatprep.subr.bf16.mxu1 %v452_v20 }
  0x10   :  { %375 = vmatmul.mubr.msk.f32.gmra.mrb[2].mxu0 %vm35_vm0, %v12_v21  ;;  %384 = vmatmul.mubr.msk.f32.gmra.mrb[2].mxu1 %vm35_vm0, %v21_v22 }
  0x11   :  { %148 = vmatprep.mubr.f32.mxu0 %v461_v3  ;;  %202 = vmatprep.mubr.f32.mxu1 %v461_v3 }
  0x12   :  { %455 = vmatpush3.bf16.msra.mxu1 %v452_v20 }
  0x14   :  { %376 = vmatmul.mubr.msk.f32.gmra.mrb[4].mxu0 %vm35_vm0, %v13_v23  ;;  %385 = vmatmul.mubr.msk.f32.gmra.mrb[4].mxu1 %vm35_vm0, %v22_v24 }
  0x15   :  { %154 = vmatprep.mubr.f32.mxu0 %v461_v3  ;;  %422 = vmatprep.mubr.msk.f32.mxu1 %vm35_vm0, %v11_v18 }
  0x18   :  { %377 = vmatmul.mubr.msk.f32.gmra.mrb[6].mxu0 %vm35_vm0, %v14_v25  ;;  %423 = vmatmul.mubr.msk.f32.vlgmr.msra.gmra.mrb[6].mxu1 %vm35_vm0, %v12_v21 }
  0x19   :  { %160 = vmatprep.mubr.f32.mxu0 %v461_v3  ;;  %425 = vmatprep.mubr.msk.f32.mxu1 %vm35_vm0, %v13_v23 }
  0x1c   :  { %378 = vmatmul.mubr.msk.f32.gmra.mrb[8].mxu0 %vm35_vm0, %v15_v26  ;;  %426 = vmatmul.mubr.msk.f32.gmra.mrb[8].mxu1 %vm35_vm0, %v14_v25 }
  0x1d   :  { %166 = vmatprep.mubr.f32.mxu0 %v461_v3  ;;  %428 = vmatprep.mubr.msk.f32.mxu1 %vm35_vm0, %v15_v26 }
  0x20   :  { %379 = vmatmul.mubr.msk.f32.gmra.mrb[10].mxu0 %vm35_vm0, %v16_v27  ;;  %429 = vmatmul.mubr.msk.f32.gmra.mrb[10].mxu1 %vm35_vm0, %v16_v27 }
  0x21   :  { %172 = vmatprep.mubr.f32.mxu0 %v461_v3  ;;  %431 = vmatprep.mubr.msk.f32.mxu1 %vm35_vm0, %v17_v28 }
  0x24   :  { %380 = vmatmul.mubr.msk.f32.gmra.mrb[12].mxu0 %vm35_vm0, %v17_v28  ;;  %432 = vmatmul.mubr.msk.f32.gmra.mrb[12].mxu1 %vm35_vm0, %v18_v29 }
  0x25   :  { %178 = vmatprep.mubr.f32.mxu0 %v461_v3  ;;  %434 = vmatprep.mubr.msk.f32.mxu1 %vm35_vm0, %v19_v30 }
  0x28   :  { %381 = vmatmul.mubr.msk.f32.gmra.mrb[14].mxu0 %vm35_vm0, %v18_v29  ;;  %435 = vmatmul.mubr.msk.f32.gmra.mrb[14].mxu1 %vm35_vm0, %v20_v19 }
  0x29   :  { %184 = vmatprep.mubr.f32.mxu0 %v461_v3  ;;  %437 = vmatprep.mubr.msk.f32.mxu1 %vm35_vm0, %v21_v22 }
  0x2c   :  { %382 = vmatmul.mubr.msk.f32.gmra.mrb[16].mxu0 %vm35_vm0, %v19_v30  ;;  %438 = vmatmul.mubr.msk.f32.gmra.mrb[16].mxu1 %vm35_vm0, %v22_v24 }
  0xdf   :  { %v138_v31 = vpop.f32.mrb[0].mxu0  ;;  %v192_v32 = vpop.f32.mrb[0].mxu1 }
  0xe0   :  { %334 = vst [vmem:[%s695_s2] sm:$0xff] %v138_v31  ;;  %361 = vst [vmem:[%s695_s2 + $0xd8] sm:$0xff] %v192_v32  ;;  %v140_v33 = vpop.f32.mrb[1].mxu0  ;;  %v194_v34 = vpop.f32.mrb[1].mxu1 }
  0xe1   :  { %335 = vst [vmem:[%s695_s2 + $0x8] sm:$0xff] %v140_v33  ;;  %362 = vst [vmem:[%s695_s2 + $0xe0] sm:$0xff] %v194_v34 }
  0xe3   :  { %v144_v35 = vpop.f32.mrb[2].mxu0  ;;  %v198_v36 = vpop.f32.mrb[2].mxu1 }
  0xe4   :  { %337 = vst [vmem:[%s695_s2 + $0x18] sm:$0xff] %v144_v35  ;;  %364 = vst [vmem:[%s695_s2 + $0xf0] sm:$0xff] %v198_v36  ;;  %v146_v37 = vpop.f32.mrb[3].mxu0  ;;  %v200_v38 = vpop.f32.mrb[3].mxu1 }
  0xe5   :  { %338 = vst [vmem:[%s695_s2 + $0x20] sm:$0xff] %v146_v37  ;;  %365 = vst [vmem:[%s695_s2 + $0xf8] sm:$0xff] %v200_v38 }
  0xe7   :  { %v150_v39 = vpop.f32.mrb[4].mxu0  ;;  %v204_v40 = vpop.f32.mrb[4].mxu1 }
  0xe8   :  { %340 = vst [vmem:[%s695_s2 + $0x30] sm:$0xff] %v150_v39  ;;  %367 = vst [vmem:[%s695_s2 + $0x108] sm:$0xff] %v204_v40  ;;  %v152_v41 = vpop.f32.mrb[5].mxu0  ;;  %v206_v42 = vpop.f32.mrb[5].mxu1 }
  0xe9   :  { %341 = vst [vmem:[%s695_s2 + $0x38] sm:$0xff] %v152_v41  ;;  %368 = vst [vmem:[%s695_s2 + $0x110] sm:$0xff] %v206_v42 }
  0xeb   :  { %v156_v43 = vpop.f32.mrb[6].mxu0  ;;  %v424_v44 = vpop.f32.mrb[6].mxu1 }
  0xec   :  { %343 = vst [vmem:[%s695_s2 + $0x48] sm:$0xff] %v156_v43  ;;  %339 = vst [vmem:[%s695_s2 + $0x28] sm:$0xff] %v424_v44  ;;  %v158_v45 = vpop.f32.mrb[7].mxu0  ;;  %v275_v46 = vpop.f32.mrb[7].mxu1 }
  0xed   :  { %344 = vst [vmem:[%s695_s2 + $0x50] sm:$0xff] %v158_v45  ;;  %336 = vst [vmem:[%s695_s2 + $0x10] sm:$0xff] %v275_v46 }
  0xef   :  { %v162_v47 = vpop.f32.mrb[8].mxu0  ;;  %v427_v48 = vpop.f32.mrb[8].mxu1 }
  0xf0   :  { %346 = vst [vmem:[%s695_s2 + $0x60] sm:$0xff] %v162_v47  ;;  %345 = vst [vmem:[%s695_s2 + $0x58] sm:$0xff] %v427_v48  ;;  %v164_v49 = vpop.f32.mrb[9].mxu0  ;;  %v285_v50 = vpop.f32.mrb[9].mxu1 }
  0xf1   :  { %347 = vst [vmem:[%s695_s2 + $0x68] sm:$0xff] %v164_v49  ;;  %342 = vst [vmem:[%s695_s2 + $0x40] sm:$0xff] %v285_v50 }
  0xf3   :  { %v168_v51 = vpop.f32.mrb[10].mxu0  ;;  %v430_v52 = vpop.f32.mrb[10].mxu1 }
  0xf4   :  { %349 = vst [vmem:[%s695_s2 + $0x78] sm:$0xff] %v168_v51  ;;  %351 = vst [vmem:[%s695_s2 + $0x88] sm:$0xff] %v430_v52  ;;  %v170_v53 = vpop.f32.mrb[11].mxu0  ;;  %v295_v54 = vpop.f32.mrb[11].mxu1 }
  0xf5   :  { %350 = vst [vmem:[%s695_s2 + $0x80] sm:$0xff] %v170_v53  ;;  %348 = vst [vmem:[%s695_s2 + $0x70] sm:$0xff] %v295_v54 }
  0xf7   :  { %v174_v55 = vpop.f32.mrb[12].mxu0  ;;  %v433_v56 = vpop.f32.mrb[12].mxu1 }
  0xf8   :  { %352 = vst [vmem:[%s695_s2 + $0x90] sm:$0xff] %v174_v55  ;;  %357 = vst [vmem:[%s695_s2 + $0xb8] sm:$0xff] %v433_v56  ;;  %v176_v57 = vpop.f32.mrb[13].mxu0  ;;  %v305_v58 = vpop.f32.mrb[13].mxu1 }
  0xf9   :  { %353 = vst [vmem:[%s695_s2 + $0x98] sm:$0xff] %v176_v57  ;;  %354 = vst [vmem:[%s695_s2 + $0xa0] sm:$0xff] %v305_v58 }
  0xfb   :  { %v180_v59 = vpop.f32.mrb[14].mxu0  ;;  %v436_v60 = vpop.f32.mrb[14].mxu1 }
  0xfc   :  { %355 = vst [vmem:[%s695_s2 + $0xa8] sm:$0xff] %v180_v59  ;;  %363 = vst [vmem:[%s695_s2 + $0xe8] sm:$0xff] %v436_v60  ;;  %v182_v61 = vpop.f32.mrb[15].mxu0  ;;  %v315_v62 = vpop.f32.mrb[15].mxu1 }
  0xfd   :  { %356 = vst [vmem:[%s695_s2 + $0xb0] sm:$0xff] %v182_v61  ;;  %360 = vst [vmem:[%s695_s2 + $0xd0] sm:$0xff] %v315_v62 }
  0xff   :  { %v186_v63 = vpop.f32.mrb[16].mxu0  ;;  %v439_v0 = vpop.f32.mrb[16].mxu1 }
 0x100   :  { %358 = vst [vmem:[%s695_s2 + $0xc0] sm:$0xff] %v186_v63  ;;  %369 = vst [vmem:[%s695_s2 + $0x118] sm:$0xff] %v439_v0  ;;  %v188_v1 = vpop.f32.mrb[17].mxu0  ;;  %v325_v2 = vpop.f32.mrb[17].mxu1 }
 0x101   :  { %359 = vst [vmem:[%s695_s2 + $0xc8] sm:$0xff] %v188_v1  ;;  %366 = vst [vmem:[%s695_s2 + $0x100] sm:$0xff] %v325_v2 }

// kernel: se_gnn_forward.10
= control target key start
LH: loop header
LB: loop body
LE: loop exit
PB: predicated region body
PF: predicated region fallthrough
CT: control target
= control target key end

     0   :  { %v777_v0 = vmov 0.0|0.0   ;;  %vm778_vm0 = vmmov 0   ;;  %v779_v8 = vmov 0.0   ;;  %vm45_vm1 = vcmask 261120   ;;  %s780_s16 = smov 64   ;;  %s941_s2 = inlined_call_operand.vmem [shape: f32[32,96], index: 2, kind: input, shape index: {}]   ;;  %s942_s3 = inlined_call_operand.vmem [shape: f32[32,96], index: 3, kind: input, shape index: {}]   ;;  %s943_s0 = inlined_call_operand.vmem [shape: f32[3,4,32], index: 0, kind: input, shape index: {}]   ;;  %s944_s1 = inlined_call_operand.vmem [shape: f32[1,4,32], index: 1, kind: input, shape index: {}]   ;;  %s945_s5 = inlined_call_operand.vmem [shape: f32[1,96], index: 5, kind: input, shape index: {}]   ;;  %s946_s4 = inlined_call_operand.vmem [shape: f32[1,96], index: 4, kind: input, shape index: {}]   ;;  %s947_s6 = inlined_call_operand.vmem [shape: f32[3,4,32], index: 6, kind: output, shape index: {}]  }
   0x1   :  { %711 = vmatprep.subr.bf16.mxu0 %v777_v0  ;;  %717 = vmatprep.subr.bf16.mxu1 %v777_v0  ;;  %v28_v1 = vld [vmem:[%s941_s2] sm:$0xff]  ;;  %v29_v2 = vld [vmem:[%s941_s2 + $0x8] sm:$0xff]  ;;  %v30_v6 = vld [vmem:[%s941_s2 + $0x10] sm:$0xff]  ;;  %vm580_vm2 = vcmask 257024  }
   0x2   :  { %v32_v3 = vld [vmem:[%s942_s3] sm:$0xff]  ;;  %v829_v4 = vpack.c.bf16 %v29_v2, %v28_v1  ;;  %v33_v5 = vld [vmem:[%s942_s3 + $0x8] sm:$0xff]  ;;  %v31_v7 = vld [vmem:[%s941_s2 + $0x18] sm:$0xff]  ;;  %653 = vmatprep.mubr.msk.f32.mxu0 %vm778_vm0, %v779_v8  ;;  %664 = vmatprep.mubr.msk.f32.mxu1 %vm778_vm0, %v779_v8 }
   0x3   :  { %v844_v9 = vpack.c.bf16 %v33_v5, %v32_v3  ;;  %v34_v10 = vld [vmem:[%s942_s3 + $0x10] sm:$0xff]  ;;  %v35_v11 = vld [vmem:[%s942_s3 + $0x18] sm:$0xff]  ;;  %v715_v12 = vpack.c.bf16 %v31_v7, %v30_v6  ;;  %v23_v14 = vld [vmem:[%s943_s0] sm:$0xf] }
   0x4   :  { %713 = vmatpush3.bf16.msra.mxu0 %v829_v4  ;;  %v855_v13 = vpack.c.bf16 %v35_v11, %v34_v10  ;;  %v38_v15 = vld [vmem:[%s944_s1] sm:$0xf]  ;;  %v600_v34 = vld [vmem:[%s943_s0 + $0x4] sm:$0xf]  ;;  %v601_v58 = vld [vmem:[%s943_s0 + $0x8] sm:$0xf] }
   0x5   :  { %719 = vmatpush3.bf16.msra.mxu1 %v844_v9  ;;  %714 = vmatprep.subr.bf16.mxu0 %v777_v0  ;;  %v883_v16 = vld [vmem:[%s945_s5] ss:$0 sm:$0xff]  ;;  %s781_s5 = smov 96  }
   0x6   :  { %720 = vmatprep.subr.bf16.mxu1 %v777_v0  ;;  %v890_v22 = vld [vmem:[%s946_s4] ss:$0 sm:$0xff]  ;;  %s782_s4 = smov 32  }
   0x8   :  { %716 = vmatpush3.bf16.msra.mxu0 %v715_v12 }
   0x9   :  { %722 = vmatpush3.bf16.msra.mxu1 %v855_v13  ;;  %723 = vmatprep.subr.bf16.mxu0 %v777_v0 }
   0xa   :  { %729 = vmatprep.subr.bf16.mxu1 %v777_v0 }
   0xb   :  { %654 = vmatmul.mubr.msk.f32.vlgmr.msra.gmra.mrb[0].mxu0 %vm45_vm1, %v23_v14 }
   0xc   :  { %665 = vmatmul.mubr.msk.f32.vlgmr.msra.gmra.mrb[0].mxu1 %vm45_vm1, %v38_v15  ;;  %725 = vmatpush3.bf16.msra.mxu0 %v829_v4 }
   0xd   :  { %731 = vmatpush3.bf16.msra.mxu1 %v844_v9  ;;  %726 = vmatprep.subr.bf16.mxu0 %v777_v0 }
   0xe   :  { %732 = vmatprep.subr.bf16.mxu1 %v777_v0  ;;  %675 = vmatprep.mubr.msk.f32.mxu0 %vm778_vm0, %v779_v8 }
   0xf   :  { %686 = vmatprep.mubr.msk.f32.mxu1 %vm778_vm0, %v779_v8 }
  0x10   :  { %728 = vmatpush3.bf16.msra.mxu0 %v715_v12 }
  0x11   :  { %734 = vmatpush3.bf16.msra.mxu1 %v855_v13  ;;  %735 = vmatprep.subr.bf16.mxu0 %v777_v0 }
  0x12   :  { %741 = vmatprep.subr.bf16.mxu1 %v777_v0 }
  0x13   :  { %676 = vmatmul.mubr.msk.f32.vlgmr.msra.gmra.mrb[2].mxu0 %vm45_vm1, %v600_v34 }
  0x14   :  { %737 = vmatpush3.bf16.msra.mxu0 %v829_v4  ;;  %697 = vmatprep.mubr.msk.f32.mxu0 %vm778_vm0, %v779_v8 }
  0x15   :  { %738 = vmatprep.subr.bf16.mxu0 %v777_v0 }
  0x18   :  { %740 = vmatpush3.bf16.msra.mxu0 %v715_v12 }
  0x1b   :  { %698 = vmatmul.mubr.msk.f32.vlgmr.msra.gmra.mrb[4].mxu0 %vm45_vm1, %v601_v58 }
  0xde   :  { %v115_v17 = vpop.f32.mrb[0].mxu0 }
  0xdf   :  { %v194_v18 = vpop.f32.mrb[0].mxu1  ;;  %v655_v19 = vpop.f32.mrb[1].mxu0  ;;  %v116_v23 = vadd.f32 %v890_v22, %v115_v17 }
  0xe0   :  { %v195_v20 = vadd.f32 %v883_v16, %v194_v18  ;;  %v666_v21 = vpop.f32.mrb[1].mxu1 }
  0xe2   :  { %206 = vrot.lane.b32.xlu0 %v195_v20, %s780_s16  ;;  %v198_v24 = vadd.f32 %v195_v20, %v116_v23 }
  0xe4   :  { %v606_v25 = vmul.f32 -1.442695, %v198_v24 }
  0xe6   :  { %753 = vpow2.f32 %v606_v25  ;;  %v296_v42 = vpop.f32.mrb[2].mxu0 }
  0xe7   :  { %v677_v43 = vpop.f32.mrb[3].mxu0  ;;  %v297_v47 = vadd.f32 %v890_v22, %v296_v42 }
  0xee   :  { %v470_v1 = vpop.f32.mrb[4].mxu0 }
  0xef   :  { %v699_v2 = vpop.f32.mrb[5].mxu0  ;;  %v471_v6 = vadd.f32 %v890_v22, %v470_v1 }
  0xf0   :  { %v754_v26 = vpop.eup %753 }
  0xf1   :  { %v202_v27 = vadd.f32 1.0, %v754_v26 }
  0xf3   :  { %755 = vrcp.f32 %v202_v27 }
  0xfd   :  { %v756_v28 = vpop.eup %755 }
  0xfe   :  { %v216_v36 = vsub.f32 1.0, %v756_v28 }
 0x154   :  { %v207_v29 = vpop.permute.xlu0 %206 }
 0x155   :  { %v209_v30 = vmul.f32 %v756_v28, %v207_v29 }
 0x157   :  { %211 = vrot.lane.b32.xlu0 %v209_v30, %s780_s16 }
 0x1c9   :  { %v212_v31 = vpop.permute.xlu0 %211 }
 0x1ca   :  { %v214_v32 = vadd.f32 %v212_v31, %v116_v23 }
 0x1cc   :  { %757 = vtanh.f32 %v214_v32 }
 0x1d6   :  { %v758_v33 = vpop.eup %757 }
 0x1d7   :  { %218 = vrot.lane.b32.xlu1 %v758_v33, %s781_s5 }
 0x1db   :  { %222 = vrot.lane.b32.xlu1 %v38_v15, %s782_s4 }
 0x249   :  { %v219_v35 = vpop.permute.xlu1 %218 }
 0x24a   :  { %v221_v38 = vmul.f32 %v219_v35, %v216_v36 }
 0x24d   :  { %v223_v37 = vpop.permute.xlu1 %222 }
 0x24e   :  { %v225_v39 = vmul.f32 %v756_v28, %v223_v37 }
 0x250   :  { %v226_v40 = vadd.f32 %v225_v39, %v221_v38 }
 0x252   :  { %301 = vrot.lane.b32.xlu0 %v226_v40, %s781_s5 }
 0x2c4   :  { %v302_v41 = vpop.permute.xlu0 %301 }
 0x2c5   :  { %687 = vmatmul.mubr.msk.f32.vlgmr.msra.gmra.mrb[2].mxu1 %vm45_vm1, %v302_v41 }
 0x2c6   :  { %743 = vmatpush3.bf16.msra.mxu1 %v844_v9  ;;  %708 = vmatprep.mubr.msk.f32.mxu1 %vm778_vm0, %v779_v8 }
 0x2c7   :  { %744 = vmatprep.subr.bf16.mxu1 %v777_v0 }
 0x2ca   :  { %746 = vmatpush3.bf16.msra.mxu1 %v855_v13 }
 0x398   :  { %v371_v44 = vpop.f32.mrb[2].mxu1 }
 0x399   :  { %v372_v45 = vadd.f32 %v883_v16, %v371_v44  ;;  %v688_v46 = vpop.f32.mrb[3].mxu1 }
 0x39b   :  { %383 = vrot.lane.b32.xlu1 %v372_v45, %s780_s16  ;;  %v375_v48 = vadd.f32 %v372_v45, %v297_v47 }
 0x39d   :  { %v609_v49 = vmul.f32 -1.442695, %v375_v48 }
 0x39f   :  { %759 = vpow2.f32 %v609_v49 }
 0x3a9   :  { %v760_v50 = vpop.eup %759 }
 0x3aa   :  { %v379_v51 = vadd.f32 1.0, %v760_v50 }
 0x3ac   :  { %761 = vrcp.f32 %v379_v51 }
 0x3b6   :  { %v762_v52 = vpop.eup %761 }
 0x3b7   :  { %v393_v59 = vsub.f32 1.0, %v762_v52  ;;  %v399_v61 = vmul.f32 %v762_v52, %v226_v40 }
 0x40d   :  { %v384_v53 = vpop.permute.xlu1 %383 }
 0x40e   :  { %v386_v54 = vmul.f32 %v762_v52, %v384_v53 }
 0x410   :  { %388 = vrot.lane.b32.xlu0 %v386_v54, %s780_s16 }
 0x482   :  { %v389_v55 = vpop.permute.xlu0 %388 }
 0x483   :  { %v391_v56 = vadd.f32 %v389_v55, %v297_v47 }
 0x485   :  { %763 = vtanh.f32 %v391_v56 }
 0x48f   :  { %v764_v57 = vpop.eup %763 }
 0x490   :  { %395 = vrot.lane.b32.xlu1 %v764_v57, %s781_s5 }
 0x502   :  { %v396_v60 = vpop.permute.xlu1 %395 }
 0x503   :  { %v398_v62 = vmul.f32 %v396_v60, %v393_v59 }
 0x505   :  { %v400_v63 = vadd.f32 %v399_v61, %v398_v62 }
 0x507   :  { %475 = vrot.lane.b32.xlu0 %v400_v63, %s781_s5 }
 0x579   :  { %v476_v0 = vpop.permute.xlu0 %475 }
 0x57a   :  { %709 = vmatmul.mubr.msk.f32.vlgmr.msra.gmra.mrb[4].mxu1 %vm45_vm1, %v476_v0 }
 0x64d   :  { %v545_v3 = vpop.f32.mrb[4].mxu1 }
 0x64e   :  { %v546_v4 = vadd.f32 %v883_v16, %v545_v3  ;;  %v710_v5 = vpop.f32.mrb[5].mxu1 }
 0x650   :  { %557 = vrot.lane.b32.xlu1 %v546_v4, %s780_s16  ;;  %v549_v7 = vadd.f32 %v546_v4, %v471_v6 }
 0x652   :  { %v612_v8 = vmul.f32 -1.442695, %v549_v7 }
 0x654   :  { %765 = vpow2.f32 %v612_v8 }
 0x65e   :  { %v766_v9 = vpop.eup %765 }
 0x65f   :  { %v553_v10 = vadd.f32 1.0, %v766_v9 }
 0x661   :  { %767 = vrcp.f32 %v553_v10 }
 0x662   :  { %769 = vtanh.f32 %v226_v40 }
 0x66b   :  { %v768_v11 = vpop.eup %767 }
 0x66c   :  { %v770_v14 = vpop.eup %769  ;;  %v567_v20 = vsub.f32 1.0, %v768_v11  ;;  %v573_v22 = vmul.f32 %v768_v11, %v400_v63 }
 0x6c2   :  { %v558_v12 = vpop.permute.xlu1 %557 }
 0x6c3   :  { %v560_v13 = vmul.f32 %v768_v11, %v558_v12 }
 0x6c5   :  { %562 = vrot.lane.b32.xlu0 %v560_v13, %s780_s16 }
 0x6c9   :  { %577 = vrot.lane.b32.xlu0 %v770_v14, %s781_s5 }
 0x737   :  { %v563_v15 = vpop.permute.xlu0 %562 }
 0x738   :  { %v565_v16 = vadd.f32 %v563_v15, %v471_v6 }
 0x73a   :  { %771 = vtanh.f32 %v565_v16 }
 0x73b   :  { %v578_v17 = vpop.permute.xlu0 %577  ;;  %773 = vtanh.f32 %v400_v63 }
 0x73c   :  { %581 = vst.msk [vmem:[%s947_s6] sm:$0xf] %vm580_vm2, %v578_v17 }
 0x744   :  { %v772_v18 = vpop.eup %771 }
 0x745   :  { %569 = vrot.lane.b32.xlu1 %v772_v18, %s781_s5  ;;  %v774_v19 = vpop.eup %773 }
 0x749   :  { %584 = vrot.lane.b32.xlu1 %v774_v19, %s781_s5 }
 0x7b7   :  { %v570_v21 = vpop.permute.xlu1 %569 }
 0x7b8   :  { %v572_v23 = vmul.f32 %v570_v21, %v567_v20 }
 0x7ba   :  { %v574_v24 = vadd.f32 %v573_v22, %v572_v23 }
 0x7bb   :  { %v585_v25 = vpop.permute.xlu1 %584 }
 0x7bc   :  { %775 = vtanh.f32 %v574_v24  ;;  %613 = vst.msk [vmem:[%s947_s6 + $0x4] sm:$0xf] %vm580_vm2, %v585_v25 }
 0x7c6   :  { %v776_v26 = vpop.eup %775 }
 0x7c7   :  { %591 = vrot.lane.b32.xlu0 %v776_v26, %s781_s5 }
 0x839   :  { %v592_v27 = vpop.permute.xlu0 %591 }
 0x83a   :  { %614 = vst.msk [vmem:[%s947_s6 + $0x8] sm:$0xf] %vm580_vm2, %v592_v27 }

// kernel: se_gnn_forward.6
= control target key start
LH: loop header
LB: loop body
LE: loop exit
PB: predicated region body
PF: predicated region fallthrough
CT: control target
= control target key end

     0   :  { %vm69_vm0 = vcmask 261120   ;;  %s2576_s25 = smov 64   ;;  %s2578_s27 = smov 96   ;;  %s3310_s2 = inlined_call_operand.vmem [shape: f32[32,96], index: 2, kind: input, shape index: {}]   ;;  %s3311_s3 = inlined_call_operand.vmem [shape: f32[32,96], index: 3, kind: input, shape index: {}]   ;;  %s3312_s0 = inlined_call_operand.vmem [shape: f32[3,32,32], index: 0, kind: input, shape index: {}]   ;;  %s3313_s1 = inlined_call_operand.vmem [shape: f32[2,32,32], index: 1, kind: input, shape index: {}]   ;;  %s3314_s5 = inlined_call_operand.vmem [shape: f32[1,96], index: 5, kind: input, shape index: {}]   ;;  %s3315_s4 = inlined_call_operand.vmem [shape: f32[1,96], index: 4, kind: input, shape index: {}]   ;;  %s3316_s6 = inlined_call_operand.vmem [shape: f32[32,96], index: 6, kind: input, shape index: {}]   ;;  %s3317_s7 = inlined_call_operand.vmem [shape: f32[32,96], index: 7, kind: input, shape index: {}]   ;;  %s3318_s9 = inlined_call_operand.vmem [shape: f32[1,96], index: 9, kind: input, shape index: {}]   ;;  %s3319_s8 = inlined_call_operand.vmem [shape: f32[1,96], index: 8, kind: input, shape index: {}]   ;;  %s3320_s10 = inlined_call_operand.vmem [shape: f32[3,32,32], index: 10, kind: output, shape index: {}]  }
   0x1   :  { %v49_v0 = vld [vmem:[%s3310_s2] sm:$0xff]  ;;  %v50_v1 = vld [vmem:[%s3310_s2 + $0x8] sm:$0xff]  ;;  %v51_v5 = vld [vmem:[%s3310_s2 + $0x10] sm:$0xff] }
   0x2   :  { %v53_v2 = vld [vmem:[%s3311_s3] sm:$0xff]  ;;  %v2643_v3 = vpack.c.bf16 %v50_v1, %v49_v0  ;;  %v54_v4 = vld [vmem:[%s3311_s3 + $0x8] sm:$0xff]  ;;  %v52_v6 = vld [vmem:[%s3310_s2 + $0x18] sm:$0xff] }
   0x3   :  { %v2654_v7 = vpack.c.bf16 %v54_v4, %v53_v2  ;;  %v2656_v8 = vpack.c.bf16 %v52_v6, %v51_v5  ;;  %v55_v9 = vld [vmem:[%s3311_s3 + $0x10] sm:$0xff]  ;;  %v56_v10 = vld [vmem:[%s3311_s3 + $0x18] sm:$0xff]  ;;  %v35_v11 = vld [vmem:[%s3312_s0] sm:$0xff] }
   0x4   :  { %2334 = vmatprep.subr.bf16.mxu0 %v2643_v3  ;;  %v2668_v12 = vpack.c.bf16 %v56_v10, %v55_v9  ;;  %2173 = vmatprep.mubr.msk.f32.mxu0 %vm69_vm0, %v35_v11  ;;  %v2674_v13 = vld [vmem:[%s3313_s1] sm:$0xff]  ;;  %v36_v14 = vld [vmem:[%s3312_s0 + $0x8] sm:$0xff]  ;;  %v37_v16 = vld [vmem:[%s3312_s0 + $0x10] sm:$0xff] }
   0x5   :  { %2342 = vmatprep.subr.bf16.mxu1 %v2654_v7  ;;  %2336 = vmatpush3.bf16.msra.mxu0 %v2643_v3  ;;  %v2691_v15 = vld [vmem:[%s3313_s1 + $0x8] sm:$0xff]  ;;  %v2700_v17 = vld [vmem:[%s3313_s1 + $0x10] sm:$0xff]  ;;  %v38_v18 = vld [vmem:[%s3312_s0 + $0x18] sm:$0xff] }
   0x6   :  { %2344 = vmatpush3.bf16.msra.mxu1 %v2654_v7  ;;  %2338 = vmatprep.subr.bf16.mxu0 %v2656_v8  ;;  %v2715_v19 = vld [vmem:[%s3313_s1 + $0x18] sm:$0xff]  ;;  %v2731_v21 = vld [vmem:[%s3314_s5] ss:$0 sm:$0xff] }
   0x7   :  { %2346 = vmatprep.subr.bf16.mxu1 %v2668_v12  ;;  %2187 = vmatprep.mubr.msk.f32.mxu1 %vm69_vm0, %v2674_v13  ;;  %v2744_v33 = vld [vmem:[%s3315_s4] ss:$0 sm:$0xff]  ;;  %s2577_s4 = smov 32  }
   0x9   :  { %2340 = vmatpush3.bf16.msra.mxu0 %v2656_v8 }
   0xa   :  { %2348 = vmatpush3.bf16.msra.mxu1 %v2668_v12  ;;  %2350 = vmatprep.subr.bf16.mxu0 %v2643_v3 }
   0xb   :  { %2358 = vmatprep.subr.bf16.mxu1 %v2654_v7 }
   0xc   :  { %2174 = vmatmul.mubr.msk.f32.vlgmr.msra.gmra.mrb[0].mxu0 %vm69_vm0, %v36_v14 }
   0xd   :  { %2188 = vmatmul.mubr.msk.f32.vlgmr.msra.gmra.mrb[0].mxu1 %vm69_vm0, %v2691_v15  ;;  %2176 = vmatprep.mubr.msk.f32.mxu0 %vm69_vm0, %v37_v16  ;;  %v1973_v16 = vld [vmem:[%s3312_s0 + $0x20] sm:$0xff] }
   0xe   :  { %2190 = vmatprep.mubr.msk.f32.mxu1 %vm69_vm0, %v2700_v17  ;;  %2352 = vmatpush3.bf16.msra.mxu0 %v2643_v3 }
   0xf   :  { %2354 = vmatprep.subr.bf16.mxu0 %v2656_v8  ;;  %2360 = vmatpush3.bf16.msra.mxu1 %v2654_v7 }
  0x10   :  { %2177 = vmatmul.mubr.msk.f32.gmra.mrb[2].mxu0 %vm69_vm0, %v38_v18  ;;  %2362 = vmatprep.subr.bf16.mxu1 %v2668_v12  ;;  %v1975_v18 = vld [vmem:[%s3312_s0 + $0x30] sm:$0xff] }
  0x11   :  { %2191 = vmatmul.mubr.msk.f32.gmra.mrb[2].mxu1 %vm69_vm0, %v2715_v19  ;;  %2201 = vmatprep.mubr.msk.f32.mxu0 %vm69_vm0, %v1973_v16 }
  0x12   :  { %2356 = vmatpush3.bf16.msra.mxu0 %v2656_v8 }
  0x13   :  { %2366 = vmatprep.subr.bf16.mxu0 %v2643_v3  ;;  %2364 = vmatpush3.bf16.msra.mxu1 %v2668_v12 }
  0x14   :  { %2374 = vmatprep.subr.bf16.mxu1 %v2654_v7 }
  0xdf   :  { %v2175_v20 = vpop.f32.mrb[0].mxu0 }
  0xe0   :  { %v2189_v22 = vpop.f32.mrb[0].mxu1  ;;  %v148_v23 = vpop.f32.mrb[1].mxu0  ;;  %v154_v35 = vadd.f32 %v2175_v20, %v2744_v33  ;;  %v999_v20 = vld [vmem:[%s3316_s6 + $0x8] sm:$0xff] }
  0xe1   :  { %v251_v24 = vpop.f32.mrb[1].mxu1  ;;  %v257_v30 = vadd.f32 %v2189_v22, %v2731_v21  ;;  %v149_v34 = vadd.f32 %v2744_v33, %v148_v23  ;;  %v1976_v22 = vld [vmem:[%s3312_s0 + $0x38] sm:$0xff] }
  0xe2   :  { %v252_v25 = vadd.f32 %v2731_v21, %v251_v24  ;;  %v1977_v24 = vld [vmem:[%s3312_s0 + $0x40] sm:$0xff] }
  0xe3   :  { %v2178_v26 = vpop.f32.mrb[2].mxu0  ;;  %v271_v38 = vadd.f32 %v257_v30, %v154_v35 }
  0xe4   :  { %v2192_v27 = vpop.f32.mrb[2].mxu1  ;;  %302 = vrot.lane.b32.xlu0 %v252_v25, %s2576_s25  ;;  %v158_v28 = vpop.f32.mrb[3].mxu0  ;;  %v270_v36 = vadd.f32 %v252_v25, %v149_v34  ;;  %v164_v40 = vadd.f32 %v2178_v26, %v2744_v33 }
  0xe5   :  { %v261_v29 = vpop.f32.mrb[3].mxu1  ;;  %v267_v32 = vadd.f32 %v2192_v27, %v2731_v21  ;;  %v159_v37 = vadd.f32 %v2744_v33, %v158_v28  ;;  %v1992_v42 = vmul.f32 -1.442695, %v271_v38  ;;  %v1979_v27 = vld [vmem:[%s3312_s0 + $0x50] sm:$0xff] }
  0xe6   :  { %v262_v31 = vadd.f32 %v2731_v21, %v261_v29  ;;  %v1991_v39 = vmul.f32 -1.442695, %v270_v36  ;;  %v1000_v28 = vld [vmem:[%s3316_s6 + $0x10] sm:$0xff] }
  0xe7   :  { %v273_v43 = vadd.f32 %v267_v32, %v164_v40 }
  0xe8   :  { %306 = vrot.lane.b32.xlu1 %v262_v31, %s2576_s25  ;;  %304 = vrot.lane.b32.xlu0 %v257_v30, %s2576_s25  ;;  %v272_v41 = vadd.f32 %v262_v31, %v159_v37  ;;  %2432 = vpow2.f32 %v1991_v39  ;;  %v1001_v30 = vld [vmem:[%s3316_s6 + $0x18] sm:$0xff] }
  0xe9   :  { %2434 = vpow2.f32 %v1992_v42  ;;  %v1994_v45 = vmul.f32 -1.442695, %v273_v43  ;;  %v2829_v31 = vpack.c.bf16 %v1001_v30, %v1000_v28 }
  0xea   :  { %v1993_v44 = vmul.f32 -1.442695, %v272_v41 }
  0xec   :  { %308 = vrot.lane.b32.xlu1 %v267_v32, %s2576_s25  ;;  %2436 = vpow2.f32 %v1993_v44 }
  0xed   :  { %2438 = vpow2.f32 %v1994_v45 }
  0xf2   :  { %v2433_v46 = vpop.eup %2432 }
  0xf3   :  { %v2435_v47 = vpop.eup %2434  ;;  %v286_v48 = vadd.f32 1.0, %v2433_v46 }
  0xf4   :  { %v287_v50 = vadd.f32 1.0, %v2435_v47 }
  0xf5   :  { %2440 = vrcp.f32 %v286_v48 }
  0xf6   :  { %v2437_v49 = vpop.eup %2436  ;;  %2442 = vrcp.f32 %v287_v50 }
  0xf7   :  { %v288_v51 = vadd.f32 1.0, %v2437_v49  ;;  %v2439_v52 = vpop.eup %2438 }
  0xf8   :  { %v289_v53 = vadd.f32 1.0, %v2439_v52 }
  0xf9   :  { %2444 = vrcp.f32 %v288_v51 }
  0xfa   :  { %2446 = vrcp.f32 %v289_v53 }
  0xff   :  { %v2750_v54 = vpop.eup %2440 }
 0x100   :  { %v2753_v57 = vpop.eup %2442  ;;  %v342_v39 = vsub.f32 1.0, %v2750_v54 }
 0x103   :  { %v2756_v58 = vpop.eup %2444 }
 0x104   :  { %v2762_v63 = vpop.eup %2446  ;;  %v344_v45 = vsub.f32 1.0, %v2756_v58 }
 0x105   :  { %v345_v51 = vsub.f32 1.0, %v2762_v63 }
 0x156   :  { %v303_v55 = vpop.permute.xlu0 %302 }
 0x157   :  { %v314_v56 = vmul.f32 %v2750_v54, %v303_v55 }
 0x159   :  { %322 = vrot.lane.b32.xlu0 %v314_v56, %s2576_s25 }
 0x15a   :  { %v307_v59 = vpop.permute.xlu1 %306  ;;  %v305_v60 = vpop.permute.xlu0 %304 }
 0x15b   :  { %v316_v61 = vmul.f32 %v2756_v58, %v307_v59  ;;  %v315_v62 = vmul.f32 %v2753_v57, %v305_v60 }
 0x15d   :  { %324 = vrot.lane.b32.xlu1 %v315_v62, %s2576_s25  ;;  %326 = vrot.lane.b32.xlu0 %v316_v61, %s2576_s25 }
 0x15e   :  { %v309_v0 = vpop.permute.xlu1 %308 }
 0x15f   :  { %v317_v1 = vmul.f32 %v2762_v63, %v309_v0 }
 0x161   :  { %328 = vrot.lane.b32.xlu1 %v317_v1, %s2576_s25 }
 0x165   :  { %366 = vrot.lane.b32.xlu1 %v2674_v13, %s2577_s4 }
 0x169   :  { %368 = vrot.lane.b32.xlu1 %v2691_v15, %s2577_s4 }
 0x16d   :  { %370 = vrot.lane.b32.xlu1 %v2700_v17, %s2577_s4  ;;  %v1974_v17 = vld [vmem:[%s3312_s0 + $0x28] sm:$0xff] }
 0x16e   :  { %2202 = vmatmul.mubr.msk.f32.vlgmr.msra.gmra.mrb[4].mxu0 %vm69_vm0, %v1974_v17 }
 0x16f   :  { %2368 = vmatpush3.bf16.msra.mxu0 %v2643_v3  ;;  %2204 = vmatprep.mubr.msk.f32.mxu0 %vm69_vm0, %v1975_v18  ;;  %v1978_v3 = vld [vmem:[%s3312_s0 + $0x48] sm:$0xff] }
 0x170   :  { %2370 = vmatprep.subr.bf16.mxu0 %v2656_v8 }
 0x171   :  { %372 = vrot.lane.b32.xlu1 %v2715_v19, %s2577_s4  ;;  %v998_v19 = vld [vmem:[%s3316_s6] sm:$0xff] }
 0x172   :  { %v2802_v25 = vpack.c.bf16 %v999_v20, %v998_v19  ;;  %2205 = vmatmul.mubr.msk.f32.gmra.mrb[6].mxu0 %vm69_vm0, %v1976_v22 }
 0x173   :  { %2372 = vmatpush3.bf16.msra.mxu0 %v2656_v8  ;;  %2229 = vmatprep.mubr.msk.f32.mxu0 %vm69_vm0, %v1977_v24  ;;  %v1980_v8 = vld [vmem:[%s3312_s0 + $0x58] sm:$0xff] }
 0x174   :  { %2382 = vmatprep.subr.bf16.mxu0 %v2802_v25 }
 0x176   :  { %2230 = vmatmul.mubr.msk.f32.vlgmr.msra.gmra.mrb[8].mxu0 %vm69_vm0, %v1978_v3 }
 0x177   :  { %2384 = vmatpush3.bf16.msra.mxu0 %v2802_v25  ;;  %2232 = vmatprep.mubr.msk.f32.mxu0 %vm69_vm0, %v1979_v27 }
 0x178   :  { %2386 = vmatprep.subr.bf16.mxu0 %v2829_v31 }
 0x17a   :  { %2233 = vmatmul.mubr.msk.f32.gmra.mrb[10].mxu0 %vm69_vm0, %v1980_v8 }
 0x17b   :  { %2388 = vmatpush3.bf16.msra.mxu0 %v2829_v31 }
 0x17c   :  { %2398 = vmatprep.subr.bf16.mxu0 %v2802_v25 }
 0x1cb   :  { %v323_v2 = vpop.permute.xlu0 %322 }
 0x1cc   :  { %v334_v6 = vadd.f32 %v323_v2, %v149_v34  ;;  %v343_v34 = vsub.f32 1.0, %v2753_v57 }
 0x1cf   :  { %v325_v4 = vpop.permute.xlu1 %324  ;;  %v327_v9 = vpop.permute.xlu0 %326 }
 0x1d0   :  { %v335_v5 = vadd.f32 %v325_v4, %v154_v35  ;;  %v336_v10 = vadd.f32 %v327_v9, %v159_v37 }
 0x1d2   :  { %2448 = vtanh.f32 %v335_v5 }
 0x1d3   :  { %2450 = vtanh.f32 %v334_v6  ;;  %v329_v11 = vpop.permute.xlu1 %328 }
 0x1d4   :  { %2452 = vtanh.f32 %v336_v10  ;;  %v337_v13 = vadd.f32 %v329_v11, %v164_v40 }
 0x1d6   :  { %2454 = vtanh.f32 %v337_v13 }
 0x1d7   :  { %v367_v29 = vpop.permute.xlu1 %366 }
 0x1d8   :  { %v378_v42 = vmul.f32 %v2750_v54, %v367_v29 }
 0x1db   :  { %v369_v32 = vpop.permute.xlu1 %368 }
 0x1dc   :  { %v2449_v14 = vpop.eup %2448  ;;  %v379_v36 = vmul.f32 %v2753_v57, %v369_v32 }
 0x1dd   :  { %352 = vrot.lane.b32.xlu0 %v2449_v14, %s2578_s27  ;;  %v2451_v15 = vpop.eup %2450 }
 0x1de   :  { %v2453_v23 = vpop.eup %2452 }
 0x1df   :  { %v371_v40 = vpop.permute.xlu1 %370 }
 0x1e0   :  { %v2455_v26 = vpop.eup %2454  ;;  %v380_v47 = vmul.f32 %v2756_v58, %v371_v40 }
 0x1e1   :  { %350 = vrot.lane.b32.xlu0 %v2451_v15, %s2578_s27 }
 0x1e3   :  { %v373_v49 = vpop.permute.xlu1 %372 }
 0x1e4   :  { %v381_v53 = vmul.f32 %v2762_v63, %v373_v49 }
 0x1e5   :  { %354 = vrot.lane.b32.xlu0 %v2453_v23, %s2578_s27 }
 0x1e9   :  { %356 = vrot.lane.b32.xlu0 %v2455_v26, %s2578_s27 }
 0x241   :  { %v2203_v56 = vpop.f32.mrb[4].mxu0 }
 0x242   :  { %v464_v57 = vpop.f32.mrb[5].mxu0  ;;  %v470_v18 = vadd.f32 %v2203_v56, %v2744_v33 }
 0x243   :  { %v465_v19 = vadd.f32 %v2744_v33, %v464_v57 }
 0x245   :  { %v2206_v58 = vpop.f32.mrb[6].mxu0 }
 0x246   :  { %v474_v59 = vpop.f32.mrb[7].mxu0  ;;  %v480_v23 = vadd.f32 %v2206_v58, %v2744_v33 }
 0x247   :  { %v475_v24 = vadd.f32 %v2744_v33, %v474_v59 }
 0x249   :  { %v2858_v60 = vpop.f32.mrb[8].mxu0 }
 0x24a   :  { %v2860_v61 = vpop.f32.mrb[9].mxu0 }
 0x24f   :  { %v353_v35 = vpop.permute.xlu0 %352 }
 0x250   :  { %v363_v37 = vmul.f32 %v353_v35, %v343_v34 }
 0x252   :  { %v2836_v38 = vadd.f32 %v379_v36, %v363_v37 }
 0x253   :  { %v351_v41 = vpop.permute.xlu0 %350 }
 0x254   :  { %v362_v43 = vmul.f32 %v351_v41, %v342_v39  ;;  %489 = vrot.lane.b32.xlu1 %v2836_v38, %s2578_s27 }
 0x256   :  { %v2842_v44 = vadd.f32 %v378_v42, %v362_v43 }
 0x257   :  { %v355_v46 = vpop.permute.xlu0 %354 }
 0x258   :  { %v364_v48 = vmul.f32 %v355_v46, %v344_v45  ;;  %487 = vrot.lane.b32.xlu0 %v2842_v44, %s2578_s27 }
 0x25a   :  { %v2848_v50 = vadd.f32 %v380_v47, %v364_v48 }
 0x25b   :  { %v357_v52 = vpop.permute.xlu0 %356 }
 0x25c   :  { %v365_v54 = vmul.f32 %v357_v52, %v345_v51  ;;  %491 = vrot.lane.b32.xlu0 %v2848_v50, %s2578_s27 }
 0x25e   :  { %v2854_v55 = vadd.f32 %v381_v53, %v365_v54 }
 0x260   :  { %493 = vrot.lane.b32.xlu1 %v2854_v55, %s2578_s27 }
 0x2c6   :  { %v490_v0 = vpop.permute.xlu1 %489 }
 0x2ca   :  { %v488_v62 = vpop.permute.xlu0 %487 }
 0x2cb   :  { %2215 = vmatprep.mubr.msk.f32.mxu1 %vm69_vm0, %v488_v62  ;;  %2257 = vmatprep.mubr.msk.f32.mxu0 %vm69_vm0, %v488_v62 }
 0x2cc   :  { %2216 = vmatmul.mubr.msk.f32.vlgmr.msra.gmra.mrb[4].mxu1 %vm69_vm0, %v490_v0  ;;  %2258 = vmatmul.mubr.msk.f32.vlgmr.msra.gmra.mrb[12].mxu0 %vm69_vm0, %v490_v0 }
 0x2cd   :  { %2376 = vmatpush3.bf16.msra.mxu1 %v2654_v7  ;;  %2400 = vmatpush3.bf16.msra.mxu0 %v2802_v25  ;;  %v2877_v7 = vpop.f32.mrb[10].mxu0 }
 0x2ce   :  { %v492_v63 = vpop.permute.xlu0 %491  ;;  %2378 = vmatprep.subr.bf16.mxu1 %v2668_v12  ;;  %2402 = vmatprep.subr.bf16.mxu0 %v2829_v31  ;;  %v2879_v2 = vpop.f32.mrb[11].mxu0 }
 0x2cf   :  { %2218 = vmatprep.mubr.msk.f32.mxu1 %vm69_vm0, %v492_v63  ;;  %2260 = vmatprep.mubr.msk.f32.mxu0 %vm69_vm0, %v492_v63 }
 0x2d1   :  { %2380 = vmatpush3.bf16.msra.mxu1 %v2668_v12  ;;  %2404 = vmatpush3.bf16.msra.mxu0 %v2829_v31 }
 0x2d2   :  { %v494_v1 = vpop.permute.xlu1 %493  ;;  %2414 = vmatprep.subr.bf16.mxu0 %v2802_v25 }
 0x2d3   :  { %2219 = vmatmul.mubr.msk.f32.gmra.mrb[6].mxu1 %vm69_vm0, %v494_v1  ;;  %2261 = vmatmul.mubr.msk.f32.gmra.mrb[14].mxu0 %vm69_vm0, %v494_v1 }
 0x39f   :  { %v2217_v4 = vpop.f32.mrb[4].mxu1  ;;  %v2881_v5 = vpop.f32.mrb[12].mxu0 }
 0x3a0   :  { %v575_v6 = vadd.f32 %v2217_v4, %v2731_v21  ;;  %v569_v9 = vpop.f32.mrb[5].mxu1  ;;  %v2884_v12 = vpop.f32.mrb[13].mxu0 }
 0x3a1   :  { %v570_v10 = vadd.f32 %v2731_v21, %v569_v9 }
 0x3a2   :  { %622 = vrot.lane.b32.xlu1 %v575_v6, %s2576_s25  ;;  %v589_v20 = vadd.f32 %v575_v6, %v470_v18 }
 0x3a3   :  { %620 = vrot.lane.b32.xlu0 %v570_v10, %s2576_s25  ;;  %v588_v22 = vadd.f32 %v570_v10, %v465_v19 }
 0x3a4   :  { %v2004_v3 = vmul.f32 -1.442695, %v589_v20 }
 0x3a5   :  { %v2003_v26 = vmul.f32 -1.442695, %v588_v22 }
 0x3a6   :  { %v2220_v11 = vpop.f32.mrb[6].mxu1  ;;  %v2889_v13 = vpop.f32.mrb[14].mxu0  ;;  %2456 = vpow2.f32 %v2004_v3 }
 0x3a7   :  { %v585_v14 = vadd.f32 %v2220_v11, %v2731_v21  ;;  %v579_v15 = vpop.f32.mrb[7].mxu1  ;;  %v2892_v16 = vpop.f32.mrb[15].mxu0  ;;  %2458 = vpow2.f32 %v2003_v26  ;;  %v1002_v11 = vld [vmem:[%s3317_s7] sm:$0xff] }
 0x3a8   :  { %v580_v17 = vadd.f32 %v2731_v21, %v579_v15 }
 0x3a9   :  { %626 = vrot.lane.b32.xlu1 %v585_v14, %s2576_s25  ;;  %v591_v27 = vadd.f32 %v585_v14, %v480_v23  ;;  %v1003_v14 = vld [vmem:[%s3317_s7 + $0x8] sm:$0xff] }
 0x3aa   :  { %624 = vrot.lane.b32.xlu0 %v580_v17, %s2576_s25  ;;  %v590_v8 = vadd.f32 %v580_v17, %v475_v24  ;;  %v2915_v15 = vpack.c.bf16 %v1003_v14, %v1002_v11 }
 0x3ab   :  { %v2006_v28 = vmul.f32 -1.442695, %v591_v27 }
 0x3ac   :  { %v2005_v29 = vmul.f32 -1.442695, %v590_v8  ;;  %2390 = vmatprep.subr.bf16.mxu1 %v2915_v15 }
 0x3ad   :  { %2460 = vpow2.f32 %v2006_v28 }
 0x3ae   :  { %2462 = vpow2.f32 %v2005_v29 }
 0x3b0   :  { %v2457_v30 = vpop.eup %2456 }
 0x3b1   :  { %v2459_v32 = vpop.eup %2458  ;;  %v605_v34 = vadd.f32 1.0, %v2457_v30 }
 0x3b2   :  { %v604_v35 = vadd.f32 1.0, %v2459_v32 }
 0x3b3   :  { %2464 = vrcp.f32 %v605_v34 }
 0x3b4   :  { %2466 = vrcp.f32 %v604_v35 }
 0x3b7   :  { %v2461_v36 = vpop.eup %2460 }
 0x3b8   :  { %v2463_v37 = vpop.eup %2462  ;;  %v607_v39 = vadd.f32 1.0, %v2461_v36 }
 0x3b9   :  { %v606_v40 = vadd.f32 1.0, %v2463_v37  ;;  %v1004_v37 = vld [vmem:[%s3317_s7 + $0x10] sm:$0xff] }
 0x3ba   :  { %2468 = vrcp.f32 %v607_v39 }
 0x3bb   :  { %2470 = vrcp.f32 %v606_v40 }
 0x3bd   :  { %v2465_v41 = vpop.eup %2464 }
 0x3be   :  { %v2467_v43 = vpop.eup %2466  ;;  %v661_v17 = vsub.f32 1.0, %v2465_v41  ;;  %v685_v20 = vmul.f32 %v2465_v41, %v2836_v38 }
 0x3c4   :  { %v2469_v48 = vpop.eup %2468 }
 0x3c5   :  { %v2471_v51 = vpop.eup %2470  ;;  %v663_v8 = vsub.f32 1.0, %v2469_v48  ;;  %v687_v38 = vmul.f32 %v2469_v48, %v2854_v55  ;;  %v1005_v55 = vld [vmem:[%s3317_s7 + $0x18] sm:$0xff] }
 0x3c6   :  { %v662_v29 = vsub.f32 1.0, %v2471_v51  ;;  %v2944_v39 = vpack.c.bf16 %v1005_v55, %v1004_v37 }
 0x414   :  { %v623_v42 = vpop.permute.xlu1 %622 }
 0x415   :  { %v633_v45 = vmul.f32 %v2465_v41, %v623_v42  ;;  %v621_v46 = vpop.permute.xlu0 %620  ;;  %v2958_v42 = vld [vmem:[%s3313_s1 + $0x20] sm:$0xff] }
 0x416   :  { %v632_v47 = vmul.f32 %v2467_v43, %v621_v46 }
 0x417   :  { %642 = vrot.lane.b32.xlu1 %v633_v45, %s2576_s25  ;;  %v2985_v45 = vld [vmem:[%s3313_s1 + $0x38] sm:$0xff] }
 0x418   :  { %640 = vrot.lane.b32.xlu0 %v632_v47, %s2576_s25 }
 0x41b   :  { %v627_v49 = vpop.permute.xlu1 %626 }
 0x41c   :  { %v635_v52 = vmul.f32 %v2469_v48, %v627_v49  ;;  %v625_v53 = vpop.permute.xlu0 %624 }
 0x41d   :  { %v634_v54 = vmul.f32 %v2471_v51, %v625_v53 }
 0x41e   :  { %646 = vrot.lane.b32.xlu1 %v635_v52, %s2576_s25 }
 0x41f   :  { %644 = vrot.lane.b32.xlu0 %v634_v54, %s2576_s25 }
 0x489   :  { %v643_v56 = vpop.permute.xlu1 %642 }
 0x48a   :  { %v653_v57 = vadd.f32 %v643_v56, %v470_v18  ;;  %v641_v58 = vpop.permute.xlu0 %640  ;;  %v3012_v56 = vld [vmem:[%s3318_s9] ss:$0 sm:$0xff] }
 0x48b   :  { %v652_v59 = vadd.f32 %v641_v58, %v465_v19  ;;  %v660_v19 = vsub.f32 1.0, %v2467_v43 }
 0x48c   :  { %2472 = vtanh.f32 %v653_v57 }
 0x48d   :  { %2474 = vtanh.f32 %v652_v59 }
 0x490   :  { %v647_v62 = vpop.permute.xlu1 %646 }
 0x491   :  { %v655_v0 = vadd.f32 %v647_v62, %v480_v23  ;;  %v645_v63 = vpop.permute.xlu0 %644 }
 0x492   :  { %v654_v1 = vadd.f32 %v645_v63, %v475_v24  ;;  %v684_v24 = vmul.f32 %v2467_v43, %v2842_v44  ;;  %v686_v44 = vmul.f32 %v2471_v51, %v2848_v50 }
 0x493   :  { %2476 = vtanh.f32 %v655_v0 }
 0x494   :  { %2478 = vtanh.f32 %v654_v1 }
 0x496   :  { %v2473_v4 = vpop.eup %2472 }
 0x497   :  { %v2475_v6 = vpop.eup %2474  ;;  %670 = vrot.lane.b32.xlu1 %v2473_v4, %s2578_s27 }
 0x498   :  { %668 = vrot.lane.b32.xlu0 %v2475_v6, %s2578_s27  ;;  %v3025_v6 = vld [vmem:[%s3319_s8] ss:$0 sm:$0xff] }
 0x49d   :  { %v2477_v9 = vpop.eup %2476 }
 0x49e   :  { %v2479_v10 = vpop.eup %2478  ;;  %674 = vrot.lane.b32.xlu1 %v2477_v9, %s2578_s27  ;;  %v1091_v9 = vadd.f32 %v2881_v5, %v3025_v6 }
 0x49f   :  { %672 = vrot.lane.b32.xlu0 %v2479_v10, %s2578_s27  ;;  %v1086_v10 = vadd.f32 %v3025_v6, %v2884_v12 }
 0x509   :  { %v671_v18 = vpop.permute.xlu1 %670 }
 0x50a   :  { %v681_v22 = vmul.f32 %v671_v18, %v661_v17  ;;  %v669_v23 = vpop.permute.xlu0 %668  ;;  %v1101_v17 = vadd.f32 %v2889_v13, %v3025_v6  ;;  %v1096_v18 = vadd.f32 %v3025_v6, %v2892_v16 }
 0x50b   :  { %v680_v3 = vmul.f32 %v669_v23, %v660_v19 }
 0x50c   :  { %v2920_v26 = vadd.f32 %v685_v20, %v681_v22 }
 0x50d   :  { %v2922_v27 = vadd.f32 %v684_v24, %v680_v3 }
 0x50e   :  { %795 = vrot.lane.b32.xlu1 %v2920_v26, %s2578_s27 }
 0x50f   :  { %793 = vrot.lane.b32.xlu0 %v2922_v27, %s2578_s27 }
 0x510   :  { %v675_v28 = vpop.permute.xlu1 %674 }
 0x511   :  { %v683_v30 = vmul.f32 %v675_v28, %v663_v8  ;;  %v673_v32 = vpop.permute.xlu0 %672 }
 0x512   :  { %v682_v34 = vmul.f32 %v673_v32, %v662_v29 }
 0x513   :  { %v2930_v35 = vadd.f32 %v687_v38, %v683_v30 }
 0x514   :  { %v2932_v36 = vadd.f32 %v686_v44, %v682_v34 }
 0x515   :  { %799 = vrot.lane.b32.xlu1 %v2930_v35, %s2578_s27 }
 0x516   :  { %797 = vrot.lane.b32.xlu0 %v2932_v36, %s2578_s27 }
 0x580   :  { %v796_v40 = vpop.permute.xlu1 %795 }
 0x581   :  { %v794_v50 = vpop.permute.xlu0 %793 }
 0x582   :  { %2243 = vmatprep.mubr.msk.f32.mxu1 %vm69_vm0, %v794_v50  ;;  %2285 = vmatprep.mubr.msk.f32.mxu0 %vm69_vm0, %v794_v50 }
 0x583   :  { %2244 = vmatmul.mubr.msk.f32.vlgmr.msra.gmra.mrb[8].mxu1 %vm69_vm0, %v796_v40  ;;  %2286 = vmatmul.mubr.msk.f32.vlgmr.msra.gmra.mrb[16].mxu0 %vm69_vm0, %v796_v40 }
 0x584   :  { %2392 = vmatpush3.bf16.msra.mxu1 %v2915_v15  ;;  %2416 = vmatpush3.bf16.msra.mxu0 %v2802_v25  ;;  %v2970_v25 = vld [vmem:[%s3313_s1 + $0x28] sm:$0xff] }
 0x585   :  { %2394 = vmatprep.subr.bf16.mxu1 %v2944_v39  ;;  %2418 = vmatprep.subr.bf16.mxu0 %v2829_v31 }
 0x587   :  { %v800_v43 = vpop.permute.xlu1 %799 }
 0x588   :  { %v798_v41 = vpop.permute.xlu0 %797  ;;  %2396 = vmatpush3.bf16.msra.mxu1 %v2944_v39  ;;  %2420 = vmatpush3.bf16.msra.mxu0 %v2829_v31  ;;  %v2976_v31 = vld [vmem:[%s3313_s1 + $0x30] sm:$0xff] }
 0x589   :  { %2246 = vmatprep.mubr.msk.f32.mxu1 %vm69_vm0, %v798_v41  ;;  %2288 = vmatprep.mubr.msk.f32.mxu0 %vm69_vm0, %v798_v41 }
 0x58a   :  { %2247 = vmatmul.mubr.msk.f32.gmra.mrb[10].mxu1 %vm69_vm0, %v800_v43  ;;  %2289 = vmatmul.mubr.msk.f32.gmra.mrb[18].mxu0 %vm69_vm0, %v800_v43 }
 0x58b   :  { %2271 = vmatprep.mubr.msk.f32.mxu1 %vm69_vm0, %v2958_v42  ;;  %2406 = vmatprep.subr.bf16.mxu1 %v2915_v15 }
 0x58e   :  { %2272 = vmatmul.mubr.msk.f32.vlgmr.msra.gmra.mrb[12].mxu1 %vm69_vm0, %v2970_v25 }
 0x58f   :  { %2274 = vmatprep.mubr.msk.f32.mxu1 %vm69_vm0, %v2976_v31  ;;  %2408 = vmatpush3.bf16.msra.mxu1 %v2915_v15 }
 0x590   :  { %2410 = vmatprep.subr.bf16.mxu1 %v2944_v39 }
 0x592   :  { %2275 = vmatmul.mubr.msk.f32.gmra.mrb[14].mxu1 %vm69_vm0, %v2985_v45 }
 0x593   :  { %2412 = vmatpush3.bf16.msra.mxu1 %v2944_v39 }
 0x594   :  { %2422 = vmatprep.subr.bf16.mxu1 %v2915_v15 }
 0x656   :  { %v2993_v46 = vpop.f32.mrb[8].mxu1  ;;  %v2995_v47 = vpop.f32.mrb[16].mxu0 }
 0x657   :  { %v2997_v48 = vpop.f32.mrb[9].mxu1  ;;  %v2999_v49 = vpop.f32.mrb[17].mxu0 }
 0x65d   :  { %v3001_v51 = vpop.f32.mrb[10].mxu1  ;;  %v3003_v52 = vpop.f32.mrb[18].mxu0 }
 0x65e   :  { %v3005_v53 = vpop.f32.mrb[11].mxu1  ;;  %v3007_v54 = vpop.f32.mrb[19].mxu0 }
 0x661   :  { %v2273_v57 = vpop.f32.mrb[12].mxu1 }
 0x662   :  { %v1194_v58 = vadd.f32 %v2273_v57, %v3012_v56  ;;  %v1188_v59 = vpop.f32.mrb[13].mxu1 }
 0x663   :  { %v1189_v62 = vadd.f32 %v3012_v56, %v1188_v59 }
 0x664   :  { %1241 = vrot.lane.b32.xlu1 %v1194_v58, %s2576_s25  ;;  %v1208_v11 = vadd.f32 %v1194_v58, %v1091_v9 }
 0x665   :  { %v2276_v0 = vpop.f32.mrb[14].mxu1  ;;  %1239 = vrot.lane.b32.xlu0 %v1189_v62, %s2576_s25  ;;  %v1207_v14 = vadd.f32 %v1189_v62, %v1086_v10 }
 0x666   :  { %v1204_v63 = vadd.f32 %v2276_v0, %v3012_v56  ;;  %v1198_v1 = vpop.f32.mrb[15].mxu1  ;;  %v2034_v19 = vmul.f32 -1.442695, %v1208_v11 }
 0x667   :  { %v1199_v4 = vadd.f32 %v3012_v56, %v1198_v1  ;;  %v2033_v22 = vmul.f32 -1.442695, %v1207_v14 }
 0x668   :  { %1245 = vrot.lane.b32.xlu1 %v1204_v63, %s2576_s25  ;;  %v1210_v20 = vadd.f32 %v1204_v63, %v1101_v17  ;;  %2480 = vpow2.f32 %v2034_v19 }
 0x669   :  { %1243 = vrot.lane.b32.xlu0 %v1199_v4, %s2576_s25  ;;  %v1209_v23 = vadd.f32 %v1199_v4, %v1096_v18  ;;  %2482 = vpow2.f32 %v2033_v22 }
 0x66a   :  { %v2036_v24 = vmul.f32 -1.442695, %v1210_v20 }
 0x66b   :  { %v2035_v3 = vmul.f32 -1.442695, %v1209_v23 }
 0x66c   :  { %2484 = vpow2.f32 %v2036_v24 }
 0x66d   :  { %2486 = vpow2.f32 %v2035_v3 }
 0x672   :  { %v2481_v5 = vpop.eup %2480 }
 0x673   :  { %v2483_v12 = vpop.eup %2482  ;;  %v1224_v8 = vadd.f32 1.0, %v2481_v5 }
 0x674   :  { %v1223_v29 = vadd.f32 1.0, %v2483_v12 }
 0x675   :  { %2488 = vrcp.f32 %v1224_v8 }
 0x676   :  { %v2485_v28 = vpop.eup %2484  ;;  %2490 = vrcp.f32 %v1223_v29 }
 0x677   :  { %v2487_v38 = vpop.eup %2486  ;;  %v1226_v13 = vadd.f32 1.0, %v2485_v28 }
 0x678   :  { %v1225_v16 = vadd.f32 1.0, %v2487_v38 }
 0x679   :  { %2492 = vrcp.f32 %v1226_v13 }
 0x67a   :  { %2494 = vrcp.f32 %v1225_v16 }
 0x67f   :  { %v2489_v30 = vpop.eup %2488 }
 0x680   :  { %v2491_v44 = vpop.eup %2490  ;;  %v1280_v19 = vsub.f32 1.0, %v2489_v30 }
 0x681   :  { %v1279_v23 = vsub.f32 1.0, %v2491_v44 }
 0x683   :  { %v2493_v50 = vpop.eup %2492 }
 0x684   :  { %v2495_v41 = vpop.eup %2494 }
 0x685   :  { %v1281_v28 = vsub.f32 1.0, %v2495_v41 }
 0x6d6   :  { %v1242_v32 = vpop.permute.xlu1 %1241 }
 0x6d7   :  { %v1252_v34 = vmul.f32 %v2489_v30, %v1242_v32  ;;  %v1240_v37 = vpop.permute.xlu0 %1239  ;;  %v1282_v32 = vsub.f32 1.0, %v2493_v50 }
 0x6d8   :  { %v1251_v55 = vmul.f32 %v2491_v44, %v1240_v37 }
 0x6d9   :  { %1261 = vrot.lane.b32.xlu1 %v1252_v34, %s2576_s25 }
 0x6da   :  { %v1246_v40 = vpop.permute.xlu1 %1245  ;;  %1259 = vrot.lane.b32.xlu0 %v1251_v55, %s2576_s25 }
 0x6db   :  { %v1254_v43 = vmul.f32 %v2493_v50, %v1246_v40  ;;  %v1244_v57 = vpop.permute.xlu0 %1243 }
 0x6dc   :  { %v1253_v58 = vmul.f32 %v2495_v41, %v1244_v57 }
 0x6dd   :  { %1265 = vrot.lane.b32.xlu1 %v1254_v43, %s2576_s25 }
 0x6de   :  { %1263 = vrot.lane.b32.xlu0 %v1253_v58, %s2576_s25 }
 0x6e1   :  { %1303 = vrot.lane.b32.xlu1 %v2958_v42, %s2577_s4 }
 0x6e5   :  { %1305 = vrot.lane.b32.xlu1 %v2970_v25, %s2577_s4 }
 0x6e9   :  { %1307 = vrot.lane.b32.xlu1 %v2976_v31, %s2577_s4 }
 0x6ed   :  { %1309 = vrot.lane.b32.xlu1 %v2985_v45, %s2577_s4 }
 0x74b   :  { %v1262_v59 = vpop.permute.xlu1 %1261 }
 0x74c   :  { %v1272_v62 = vadd.f32 %v1262_v59, %v1091_v9  ;;  %v1260_v0 = vpop.permute.xlu0 %1259 }
 0x74d   :  { %v1271_v63 = vadd.f32 %v1260_v0, %v1086_v10 }
 0x74e   :  { %2496 = vtanh.f32 %v1272_v62 }
 0x74f   :  { %2498 = vtanh.f32 %v1271_v63  ;;  %v1266_v11 = vpop.permute.xlu1 %1265 }
 0x750   :  { %v1264_v1 = vpop.permute.xlu0 %1263  ;;  %v1274_v14 = vadd.f32 %v1266_v11, %v1101_v17  ;;  %v891_v11 = vadd.f32 %v3001_v51, %v2731_v21 }
 0x751   :  { %v1273_v4 = vadd.f32 %v1264_v1, %v1096_v18  ;;  %v881_v1 = vadd.f32 %v2993_v46, %v2731_v21  ;;  %v3112_v46 = vadd.f32 %v2995_v47, %v3025_v6  ;;  %v3130_v47 = vadd.f32 %v2858_v60, %v2744_v33 }
 0x752   :  { %v3145_v60 = vadd.f32 %v2744_v33, %v2879_v2 }
 0x753   :  { %2500 = vtanh.f32 %v1273_v4  ;;  %v1304_v9 = vpop.permute.xlu1 %1303  ;;  %v876_v4 = vadd.f32 %v2731_v21, %v2997_v48  ;;  %v3116_v48 = vadd.f32 %v3025_v6, %v2999_v49 }
 0x754   :  { %2502 = vtanh.f32 %v1274_v14  ;;  %v1315_v5 = vmul.f32 %v2491_v44, %v1304_v9  ;;  %v886_v14 = vadd.f32 %v2731_v21, %v3005_v53  ;;  %v3122_v21 = vadd.f32 %v3003_v52, %v3025_v6 }
 0x755   :  { %v3140_v52 = vadd.f32 %v2877_v7, %v2744_v33 }
 0x757   :  { %v1306_v10 = vpop.permute.xlu1 %1305 }
 0x758   :  { %v2497_v42 = vpop.eup %2496  ;;  %v1316_v20 = vmul.f32 %v2489_v30, %v1306_v10 }
 0x759   :  { %1289 = vrot.lane.b32.xlu0 %v2497_v42, %s2578_s27  ;;  %v2499_v25 = vpop.eup %2498 }
 0x75b   :  { %v1308_v24 = vpop.permute.xlu1 %1307 }
 0x75c   :  { %v1317_v38 = vmul.f32 %v2495_v41, %v1308_v24 }
 0x75d   :  { %1287 = vrot.lane.b32.xlu0 %v2499_v25, %s2578_s27  ;;  %v2501_v31 = vpop.eup %2500 }
 0x75e   :  { %v2503_v45 = vpop.eup %2502 }
 0x75f   :  { %v1310_v16 = vpop.permute.xlu1 %1309 }
 0x760   :  { %v1318_v37 = vmul.f32 %v2493_v50, %v1310_v16 }
 0x761   :  { %1291 = vrot.lane.b32.xlu0 %v2501_v31, %s2578_s27  ;;  %v3126_v31 = vadd.f32 %v3025_v6, %v3007_v54  ;;  %v895_v54 = vadd.f32 %v881_v1, %v3130_v47 }
 0x765   :  { %1293 = vrot.lane.b32.xlu0 %v2503_v45, %s2578_s27  ;;  %v3135_v45 = vadd.f32 %v2744_v33, %v2860_v61  ;;  %v2016_v61 = vmul.f32 -1.442695, %v895_v54 }
 0x7cb   :  { %v1290_v18 = vpop.permute.xlu0 %1289 }
 0x7cc   :  { %v1300_v17 = vmul.f32 %v1290_v18, %v1280_v19  ;;  %v894_v19 = vadd.f32 %v876_v4, %v3135_v45 }
 0x7ce   :  { %v3051_v22 = vadd.f32 %v1316_v20, %v1300_v17  ;;  %v897_v20 = vadd.f32 %v891_v11, %v3140_v52  ;;  %v2015_v17 = vmul.f32 -1.442695, %v894_v19 }
 0x7cf   :  { %v1288_v3 = vpop.permute.xlu0 %1287 }
 0x7d0   :  { %v1299_v12 = vmul.f32 %v1288_v3, %v1279_v23  ;;  %1414 = vrot.lane.b32.xlu1 %v3051_v22, %s2578_s27  ;;  %v896_v23 = vadd.f32 %v886_v14, %v3145_v60  ;;  %v2018_v3 = vmul.f32 -1.442695, %v897_v20 }
 0x7d2   :  { %v3055_v8 = vadd.f32 %v1315_v5, %v1299_v12  ;;  %v2017_v5 = vmul.f32 -1.442695, %v896_v23 }
 0x7d3   :  { %v1292_v29 = vpop.permute.xlu0 %1291 }
 0x7d4   :  { %v1301_v13 = vmul.f32 %v1292_v29, %v1281_v28  ;;  %1412 = vrot.lane.b32.xlu0 %v3055_v8, %s2578_s27 }
 0x7d6   :  { %v3059_v30 = vadd.f32 %v1317_v38, %v1301_v13 }
 0x7d7   :  { %v1294_v34 = vpop.permute.xlu0 %1293 }
 0x7d8   :  { %v1302_v44 = vmul.f32 %v1294_v34, %v1282_v32  ;;  %1416 = vrot.lane.b32.xlu0 %v3059_v30, %s2578_s27 }
 0x7da   :  { %v3063_v55 = vadd.f32 %v1318_v37, %v1302_v44 }
 0x7dc   :  { %1418 = vrot.lane.b32.xlu1 %v3063_v55, %s2578_s27 }
 0x842   :  { %v1415_v40 = vpop.permute.xlu1 %1414 }
 0x843   :  { %1936 = vst.msk [vmem:[%s3320_s10 + $0x8] sm:$0xff] %vm69_vm0, %v1415_v40 }
 0x846   :  { %v1413_v41 = vpop.permute.xlu0 %1412 }
 0x847   :  { %1935 = vst.msk [vmem:[%s3320_s10] sm:$0xff] %vm69_vm0, %v1413_v41  ;;  %2299 = vmatprep.mubr.msk.f32.mxu1 %vm69_vm0, %v1413_v41 }
 0x848   :  { %2300 = vmatmul.mubr.msk.f32.vlgmr.msra.gmra.mrb[16].mxu1 %vm69_vm0, %v1415_v40 }
 0x849   :  { %2424 = vmatpush3.bf16.msra.mxu1 %v2915_v15 }
 0x84a   :  { %v1417_v50 = vpop.permute.xlu0 %1416  ;;  %2426 = vmatprep.subr.bf16.mxu1 %v2944_v39 }
 0x84b   :  { %1937 = vst.msk [vmem:[%s3320_s10 + $0x10] sm:$0xff] %vm69_vm0, %v1417_v50  ;;  %2302 = vmatprep.mubr.msk.f32.mxu1 %vm69_vm0, %v1417_v50 }
 0x84d   :  { %2428 = vmatpush3.bf16.msra.mxu1 %v2944_v39 }
 0x84e   :  { %v1419_v43 = vpop.permute.xlu1 %1418 }
 0x84f   :  { %1938 = vst.msk [vmem:[%s3320_s10 + $0x18] sm:$0xff] %vm69_vm0, %v1419_v43  ;;  %2303 = vmatmul.mubr.msk.f32.gmra.mrb[18].mxu1 %vm69_vm0, %v1419_v43 }
 0x91b   :  { %v2301_v15 = vpop.f32.mrb[16].mxu1 }
 0x91c   :  { %v1500_v57 = vadd.f32 %v2301_v15, %v3012_v56  ;;  %v1494_v58 = vpop.f32.mrb[17].mxu1 }
 0x91d   :  { %v1495_v59 = vadd.f32 %v3012_v56, %v1494_v58 }
 0x91e   :  { %1547 = vrot.lane.b32.xlu1 %v1500_v57, %s2576_s25  ;;  %v1514_v42 = vadd.f32 %v1500_v57, %v3112_v46 }
 0x91f   :  { %1545 = vrot.lane.b32.xlu0 %v1495_v59, %s2576_s25  ;;  %v1513_v25 = vadd.f32 %v1495_v59, %v3116_v48 }
 0x920   :  { %v2046_v51 = vmul.f32 -1.442695, %v1514_v42 }
 0x921   :  { %v2045_v53 = vmul.f32 -1.442695, %v1513_v25 }
 0x922   :  { %v2304_v62 = vpop.f32.mrb[18].mxu1  ;;  %2504 = vpow2.f32 %v2046_v51 }
 0x923   :  { %v1510_v39 = vadd.f32 %v2304_v62, %v3012_v56  ;;  %v1504_v0 = vpop.f32.mrb[19].mxu1  ;;  %2506 = vpow2.f32 %v2045_v53 }
 0x924   :  { %v1505_v63 = vadd.f32 %v3012_v56, %v1504_v0 }
 0x925   :  { %1551 = vrot.lane.b32.xlu1 %v1510_v39, %s2576_s25  ;;  %v1516_v49 = vadd.f32 %v1510_v39, %v3122_v21 }
 0x926   :  { %1549 = vrot.lane.b32.xlu0 %v1505_v63, %s2576_s25  ;;  %v1515_v9 = vadd.f32 %v1505_v63, %v3126_v31 }
 0x927   :  { %v2048_v10 = vmul.f32 -1.442695, %v1516_v49 }
 0x928   :  { %v2047_v18 = vmul.f32 -1.442695, %v1515_v9 }
 0x929   :  { %928 = vrot.lane.b32.xlu1 %v881_v1, %s2576_s25  ;;  %2508 = vpow2.f32 %v2048_v10 }
 0x92a   :  { %926 = vrot.lane.b32.xlu0 %v876_v4, %s2576_s25  ;;  %2510 = vpow2.f32 %v2047_v18 }
 0x92b   :  { %2512 = vpow2.f32 %v2016_v61 }
 0x92c   :  { %v2505_v7 = vpop.eup %2504  ;;  %2514 = vpow2.f32 %v2015_v17 }
 0x92d   :  { %932 = vrot.lane.b32.xlu1 %v891_v11, %s2576_s25  ;;  %v2507_v24 = vpop.eup %2506  ;;  %v1530_v12 = vadd.f32 1.0, %v2505_v7  ;;  %2516 = vpow2.f32 %v2018_v3 }
 0x92e   :  { %930 = vrot.lane.b32.xlu0 %v886_v14, %s2576_s25  ;;  %v1529_v33 = vadd.f32 1.0, %v2507_v24  ;;  %2518 = vpow2.f32 %v2017_v5 }
 0x92f   :  { %2520 = vrcp.f32 %v1530_v12 }
 0x930   :  { %2522 = vrcp.f32 %v1529_v33 }
 0x933   :  { %v2509_v2 = vpop.eup %2508 }
 0x934   :  { %v2511_v28 = vpop.eup %2510  ;;  %v1532_v29 = vadd.f32 1.0, %v2509_v2 }
 0x935   :  { %v2513_v38 = vpop.eup %2512  ;;  %v1531_v13 = vadd.f32 1.0, %v2511_v28 }
 0x936   :  { %v2515_v16 = vpop.eup %2514  ;;  %v911_v32 = vadd.f32 1.0, %v2513_v38  ;;  %2524 = vrcp.f32 %v1532_v29 }
 0x937   :  { %v2517_v34 = vpop.eup %2516  ;;  %v910_v37 = vadd.f32 1.0, %v2515_v16  ;;  %2526 = vrcp.f32 %v1531_v13 }
 0x938   :  { %v2519_v44 = vpop.eup %2518  ;;  %2528 = vrcp.f32 %v911_v32  ;;  %v913_v43 = vadd.f32 1.0, %v2517_v34 }
 0x939   :  { %v3150_v40 = vpop.eup %2520  ;;  %2530 = vrcp.f32 %v910_v37  ;;  %v912_v58 = vadd.f32 1.0, %v2519_v44 }
 0x93a   :  { %v3152_v50 = vpop.eup %2522  ;;  %2532 = vrcp.f32 %v913_v43  ;;  %v1610_v44 = vmul.f32 %v3150_v40, %v3051_v22 }
 0x93b   :  { %2534 = vrcp.f32 %v912_v58  ;;  %v1585_v37 = vsub.f32 1.0, %v3152_v50 }
 0x940   :  { %v3158_v62 = vpop.eup %2524 }
 0x941   :  { %v3160_v0 = vpop.eup %2526 }
 0x942   :  { %v3165_v11 = vpop.eup %2528  ;;  %v1587_v22 = vsub.f32 1.0, %v3160_v0 }
 0x943   :  { %v3168_v42 = vpop.eup %2530 }
 0x944   :  { %v3173_v49 = vpop.eup %2532 }
 0x945   :  { %v3176_v54 = vpop.eup %2534 }
 0x990   :  { %v1548_v41 = vpop.permute.xlu1 %1547 }
 0x991   :  { %v1558_v15 = vmul.f32 %v3150_v40, %v1548_v41  ;;  %v1546_v57 = vpop.permute.xlu0 %1545 }
 0x992   :  { %v1557_v59 = vmul.f32 %v3152_v50, %v1546_v57 }
 0x993   :  { %1567 = vrot.lane.b32.xlu1 %v1558_v15, %s2576_s25  ;;  %v1609_v15 = vmul.f32 %v3152_v50, %v3055_v8 }
 0x994   :  { %1565 = vrot.lane.b32.xlu0 %v1557_v59, %s2576_s25 }
 0x997   :  { %v1552_v39 = vpop.permute.xlu1 %1551 }
 0x998   :  { %v1560_v63 = vmul.f32 %v3158_v62, %v1552_v39  ;;  %v1550_v1 = vpop.permute.xlu0 %1549  ;;  %v1588_v39 = vsub.f32 1.0, %v3158_v62 }
 0x999   :  { %v1559_v4 = vmul.f32 %v3160_v0, %v1550_v1  ;;  %v1611_v1 = vmul.f32 %v3160_v0, %v3059_v30  ;;  %v990_v30 = vmul.f32 %v3168_v42, %v2922_v27  ;;  %v992_v27 = vmul.f32 %v3176_v54, %v2932_v36 }
 0x99a   :  { %1571 = vrot.lane.b32.xlu1 %v1560_v63, %s2576_s25 }
 0x99b   :  { %v929_v14 = vpop.permute.xlu1 %928  ;;  %1569 = vrot.lane.b32.xlu0 %v1559_v4, %s2576_s25 }
 0x99c   :  { %v939_v25 = vmul.f32 %v3165_v11, %v929_v14  ;;  %v927_v51 = vpop.permute.xlu0 %926 }
 0x99d   :  { %v938_v53 = vmul.f32 %v3168_v42, %v927_v51 }
 0x99e   :  { %948 = vrot.lane.b32.xlu1 %v939_v25, %s2576_s25  ;;  %v967_v25 = vsub.f32 1.0, %v3165_v11 }
 0x99f   :  { %v933_v9 = vpop.permute.xlu1 %932  ;;  %946 = vrot.lane.b32.xlu0 %v938_v53, %s2576_s25 }
 0x9a0   :  { %v941_v10 = vmul.f32 %v3173_v49, %v933_v9  ;;  %v931_v19 = vpop.permute.xlu0 %930  ;;  %v966_v9 = vsub.f32 1.0, %v3168_v42 }
 0x9a1   :  { %v940_v18 = vmul.f32 %v3176_v54, %v931_v19 }
 0x9a2   :  { %952 = vrot.lane.b32.xlu1 %v941_v10, %s2576_s25  ;;  %v991_v10 = vmul.f32 %v3165_v11, %v2920_v26  ;;  %v993_v26 = vmul.f32 %v3173_v49, %v2930_v35 }
 0x9a3   :  { %950 = vrot.lane.b32.xlu0 %v940_v18, %s2576_s25  ;;  %v969_v18 = vsub.f32 1.0, %v3173_v49 }
 0xa05   :  { %v1568_v61 = vpop.permute.xlu1 %1567 }
 0xa06   :  { %v1578_v20 = vadd.f32 %v1568_v61, %v3112_v46  ;;  %v1566_v17 = vpop.permute.xlu0 %1565 }
 0xa07   :  { %v1577_v23 = vadd.f32 %v1566_v17, %v3116_v48  ;;  %v968_v17 = vsub.f32 1.0, %v3176_v54 }
 0xa08   :  { %2536 = vtanh.f32 %v1578_v20 }
 0xa09   :  { %2538 = vtanh.f32 %v1577_v23 }
 0xa0c   :  { %v1572_v7 = vpop.permute.xlu1 %1571 }
 0xa0d   :  { %v1580_v24 = vadd.f32 %v1572_v7, %v3122_v21  ;;  %v1570_v3 = vpop.permute.xlu0 %1569 }
 0xa0e   :  { %v1579_v5 = vadd.f32 %v1570_v3, %v3126_v31 }
 0xa0f   :  { %2540 = vtanh.f32 %v1580_v24 }
 0xa10   :  { %2542 = vtanh.f32 %v1579_v5  ;;  %v949_v12 = vpop.permute.xlu1 %948 }
 0xa11   :  { %v959_v33 = vadd.f32 %v949_v12, %v3130_v47  ;;  %v947_v2 = vpop.permute.xlu0 %946 }
 0xa12   :  { %v2537_v28 = vpop.eup %2536  ;;  %v958_v46 = vadd.f32 %v947_v2, %v3135_v45 }
 0xa13   :  { %v2539_v29 = vpop.eup %2538  ;;  %2544 = vtanh.f32 %v959_v33  ;;  %1595 = vrot.lane.b32.xlu1 %v2537_v28, %s2578_s27 }
 0xa14   :  { %2546 = vtanh.f32 %v958_v46  ;;  %v953_v48 = vpop.permute.xlu1 %952  ;;  %1593 = vrot.lane.b32.xlu0 %v2539_v29, %s2578_s27 }
 0xa15   :  { %v961_v21 = vadd.f32 %v953_v48, %v3140_v52  ;;  %v951_v31 = vpop.permute.xlu0 %950  ;;  %v1586_v52 = vsub.f32 1.0, %v3150_v40  ;;  %v1612_v40 = vmul.f32 %v3158_v62, %v3063_v55 }
 0xa16   :  { %v960_v38 = vadd.f32 %v951_v31, %v3145_v60 }
 0xa17   :  { %2548 = vtanh.f32 %v961_v21 }
 0xa18   :  { %2550 = vtanh.f32 %v960_v38 }
 0xa19   :  { %v2541_v47 = vpop.eup %2540 }
 0xa1a   :  { %v2543_v13 = vpop.eup %2542  ;;  %1599 = vrot.lane.b32.xlu1 %v2541_v47, %s2578_s27 }
 0xa1b   :  { %1597 = vrot.lane.b32.xlu0 %v2543_v13, %s2578_s27 }
 0xa1d   :  { %v2545_v45 = vpop.eup %2544 }
 0xa1e   :  { %v2547_v16 = vpop.eup %2546  ;;  %976 = vrot.lane.b32.xlu1 %v2545_v45, %s2578_s27 }
 0xa1f   :  { %974 = vrot.lane.b32.xlu0 %v2547_v16, %s2578_s27 }
 0xa21   :  { %v2549_v32 = vpop.eup %2548 }
 0xa22   :  { %v2551_v34 = vpop.eup %2550  ;;  %980 = vrot.lane.b32.xlu1 %v2549_v32, %s2578_s27 }
 0xa23   :  { %978 = vrot.lane.b32.xlu0 %v2551_v34, %s2578_s27 }
 0xa85   :  { %v1596_v60 = vpop.permute.xlu1 %1595 }
 0xa86   :  { %v1606_v41 = vmul.f32 %v1596_v60, %v1586_v52  ;;  %v1594_v43 = vpop.permute.xlu0 %1593 }
 0xa87   :  { %v1605_v57 = vmul.f32 %v1594_v43, %v1585_v37 }
 0xa88   :  { %v3204_v58 = vadd.f32 %v1610_v44, %v1606_v41 }
 0xa89   :  { %v3206_v59 = vadd.f32 %v1609_v15, %v1605_v57 }
 0xa8a   :  { %1728 = vrot.lane.b32.xlu1 %v3204_v58, %s2578_s27 }
 0xa8b   :  { %1726 = vrot.lane.b32.xlu0 %v3206_v59, %s2578_s27 }
 0xa8c   :  { %v1600_v63 = vpop.permute.xlu1 %1599 }
 0xa8d   :  { %v1608_v8 = vmul.f32 %v1600_v63, %v1588_v39  ;;  %v1598_v50 = vpop.permute.xlu0 %1597 }
 0xa8e   :  { %v1607_v4 = vmul.f32 %v1598_v50, %v1587_v22 }
 0xa8f   :  { %v3218_v14 = vadd.f32 %v1612_v40, %v1608_v8 }
 0xa90   :  { %v3221_v51 = vadd.f32 %v1611_v1, %v1607_v4  ;;  %v977_v53 = vpop.permute.xlu1 %976 }
 0xa91   :  { %v987_v19 = vmul.f32 %v977_v53, %v967_v25  ;;  %1732 = vrot.lane.b32.xlu1 %v3218_v14, %s2578_s27  ;;  %v975_v55 = vpop.permute.xlu0 %974 }
 0xa92   :  { %v986_v62 = vmul.f32 %v975_v55, %v966_v9  ;;  %1730 = vrot.lane.b32.xlu0 %v3221_v51, %s2578_s27 }
 0xa93   :  { %v995_v0 = vadd.f32 %v991_v10, %v987_v19 }
 0xa94   :  { %v994_v61 = vadd.f32 %v990_v30, %v986_v62  ;;  %v981_v20 = vpop.permute.xlu1 %980 }
 0xa95   :  { %v989_v11 = vmul.f32 %v981_v20, %v969_v18  ;;  %1623 = vrot.lane.b32.xlu1 %v995_v0, %s2578_s27  ;;  %v979_v23 = vpop.permute.xlu0 %978 }
 0xa96   :  { %v988_v42 = vmul.f32 %v979_v23, %v968_v17  ;;  %1621 = vrot.lane.b32.xlu0 %v994_v61, %s2578_s27 }
 0xa97   :  { %v997_v7 = vadd.f32 %v993_v26, %v989_v11 }
 0xa98   :  { %v996_v24 = vadd.f32 %v992_v27, %v988_v42 }
 0xa99   :  { %1627 = vrot.lane.b32.xlu1 %v997_v7, %s2578_s27 }
 0xa9a   :  { %1625 = vrot.lane.b32.xlu0 %v996_v24, %s2578_s27 }
 0xafc   :  { %v1729_v3 = vpop.permute.xlu1 %1728 }
 0xafd   :  { %2062 = vst.msk [vmem:[%s3320_s10 + $0x28] sm:$0xff] %vm69_vm0, %v1729_v3  ;;  %v1727_v35 = vpop.permute.xlu0 %1726 }
 0xafe   :  { %2061 = vst.msk [vmem:[%s3320_s10 + $0x20] sm:$0xff] %vm69_vm0, %v1727_v35  ;;  %2327 = vmatprep.mubr.msk.f32.mxu1 %vm69_vm0, %v1727_v35 }
 0xaff   :  { %2328 = vmatmul.mubr.msk.f32.vlgmr.msra.gmra.mrb[20].mxu1 %vm69_vm0, %v1729_v3 }
 0xb03   :  { %v1733_v36 = vpop.permute.xlu1 %1732 }
 0xb04   :  { %2064 = vst.msk [vmem:[%s3320_s10 + $0x38] sm:$0xff] %vm69_vm0, %v1733_v36  ;;  %v1731_v49 = vpop.permute.xlu0 %1730 }
 0xb05   :  { %2063 = vst.msk [vmem:[%s3320_s10 + $0x30] sm:$0xff] %vm69_vm0, %v1731_v49  ;;  %2330 = vmatprep.mubr.msk.f32.mxu1 %vm69_vm0, %v1731_v49 }
 0xb06   :  { %2331 = vmatmul.mubr.msk.f32.gmra.mrb[22].mxu1 %vm69_vm0, %v1733_v36 }
 0xb07   :  { %v1624_v54 = vpop.permute.xlu1 %1623 }
 0xb08   :  { %v1622_v5 = vpop.permute.xlu0 %1621 }
 0xb09   :  { %2313 = vmatprep.mubr.msk.f32.mxu0 %vm69_vm0, %v1622_v5 }
 0xb0a   :  { %2314 = vmatmul.mubr.msk.f32.vlgmr.msra.gmra.mrb[20].mxu0 %vm69_vm0, %v1624_v54 }
 0xb0b   :  { %v1628_v33 = vpop.permute.xlu1 %1627 }
 0xb0c   :  { %v1626_v12 = vpop.permute.xlu0 %1625 }
 0xb0d   :  { %2316 = vmatprep.mubr.msk.f32.mxu0 %vm69_vm0, %v1626_v12 }
 0xb0e   :  { %2317 = vmatmul.mubr.msk.f32.gmra.mrb[22].mxu0 %vm69_vm0, %v1628_v33 }
 0xbd2   :  { %v2329_v2 = vpop.f32.mrb[20].mxu1 }
 0xbd3   :  { %v1814_v28 = vadd.f32 %v2329_v2, %v3012_v56  ;;  %v1808_v46 = vpop.f32.mrb[21].mxu1 }
 0xbd4   :  { %v1809_v29 = vadd.f32 %v3012_v56, %v1808_v46 }
 0xbd5   :  { %1861 = vrot.lane.b32.xlu1 %v1814_v28, %s2576_s25 }
 0xbd6   :  { %1859 = vrot.lane.b32.xlu0 %v1809_v29, %s2576_s25 }
 0xbd9   :  { %v2332_v48 = vpop.f32.mrb[22].mxu1 }
 0xbda   :  { %v1824_v21 = vadd.f32 %v2332_v48, %v3012_v56  ;;  %v1818_v31 = vpop.f32.mrb[23].mxu1 }
 0xbdb   :  { %v1819_v38 = vadd.f32 %v3012_v56, %v1818_v31 }
 0xbdc   :  { %1865 = vrot.lane.b32.xlu1 %v1824_v21, %s2576_s25 }
 0xbdd   :  { %1863 = vrot.lane.b32.xlu0 %v1819_v38, %s2576_s25  ;;  %v2315_v47 = vpop.f32.mrb[20].mxu0 }
 0xbde   :  { %v1703_v13 = vpop.f32.mrb[21].mxu0  ;;  %v1709_v32 = vadd.f32 %v2315_v47, %v3025_v6 }
 0xbdf   :  { %v1704_v34 = vadd.f32 %v3025_v6, %v1703_v13 }
 0xbe0   :  { %v1828_v52 = vadd.f32 %v1814_v28, %v1709_v32 }
 0xbe1   :  { %v2318_v45 = vpop.f32.mrb[22].mxu0  ;;  %v1827_v60 = vadd.f32 %v1809_v29, %v1704_v34 }
 0xbe2   :  { %v1713_v16 = vpop.f32.mrb[23].mxu0  ;;  %v1719_v37 = vadd.f32 %v2318_v45, %v3025_v6  ;;  %v2058_v44 = vmul.f32 -1.442695, %v1828_v52 }
 0xbe3   :  { %v1714_v41 = vadd.f32 %v3025_v6, %v1713_v16  ;;  %v2057_v56 = vmul.f32 -1.442695, %v1827_v60 }
 0xbe4   :  { %v1830_v43 = vadd.f32 %v1824_v21, %v1719_v37  ;;  %2552 = vpow2.f32 %v2058_v44 }
 0xbe5   :  { %v1829_v15 = vadd.f32 %v1819_v38, %v1714_v41  ;;  %2554 = vpow2.f32 %v2057_v56 }
 0xbe6   :  { %v2060_v57 = vmul.f32 -1.442695, %v1830_v43 }
 0xbe7   :  { %v2059_v39 = vmul.f32 -1.442695, %v1829_v15 }
 0xbe8   :  { %2556 = vpow2.f32 %v2060_v57 }
 0xbe9   :  { %2558 = vpow2.f32 %v2059_v39 }
 0xbee   :  { %v2553_v63 = vpop.eup %2552 }
 0xbef   :  { %v2555_v22 = vpop.eup %2554  ;;  %v1844_v40 = vadd.f32 1.0, %v2553_v63 }
 0xbf0   :  { %v1843_v8 = vadd.f32 1.0, %v2555_v22 }
 0xbf1   :  { %2560 = vrcp.f32 %v1844_v40 }
 0xbf2   :  { %v2557_v50 = vpop.eup %2556  ;;  %2562 = vrcp.f32 %v1843_v8 }
 0xbf3   :  { %v2559_v1 = vpop.eup %2558  ;;  %v1846_v4 = vadd.f32 1.0, %v2557_v50 }
 0xbf4   :  { %v1845_v25 = vadd.f32 1.0, %v2559_v1 }
 0xbf5   :  { %2564 = vrcp.f32 %v1846_v4 }
 0xbf6   :  { %2566 = vrcp.f32 %v1845_v25 }
 0xbfb   :  { %v2561_v6 = vpop.eup %2560 }
 0xbfc   :  { %v2563_v9 = vpop.eup %2562  ;;  %v1900_v54 = vsub.f32 1.0, %v2561_v6  ;;  %v1924_v33 = vmul.f32 %v2561_v6, %v3204_v58 }
 0xbfd   :  { %v1899_v12 = vsub.f32 1.0, %v2563_v9  ;;  %v1923_v46 = vmul.f32 %v2563_v9, %v3206_v59 }
 0xbff   :  { %v2565_v30 = vpop.eup %2564 }
 0xc00   :  { %v2567_v0 = vpop.eup %2566  ;;  %v1902_v31 = vsub.f32 1.0, %v2565_v30  ;;  %v1926_v13 = vmul.f32 %v2565_v30, %v3218_v14 }
 0xc01   :  { %v1901_v47 = vsub.f32 1.0, %v2567_v0  ;;  %v1925_v58 = vmul.f32 %v2567_v0, %v3221_v51 }
 0xc47   :  { %v1862_v53 = vpop.permute.xlu1 %1861 }
 0xc48   :  { %v1872_v10 = vmul.f32 %v2561_v6, %v1862_v53  ;;  %v1860_v19 = vpop.permute.xlu0 %1859 }
 0xc49   :  { %v1871_v55 = vmul.f32 %v2563_v9, %v1860_v19 }
 0xc4a   :  { %1881 = vrot.lane.b32.xlu1 %v1872_v10, %s2576_s25 }
 0xc4b   :  { %1879 = vrot.lane.b32.xlu0 %v1871_v55, %s2576_s25 }
 0xc4e   :  { %v1866_v62 = vpop.permute.xlu1 %1865 }
 0xc4f   :  { %v1874_v18 = vmul.f32 %v2565_v30, %v1866_v62  ;;  %v1864_v61 = vpop.permute.xlu0 %1863 }
 0xc50   :  { %v1873_v20 = vmul.f32 %v2567_v0, %v1864_v61 }
 0xc51   :  { %1885 = vrot.lane.b32.xlu1 %v1874_v18, %s2576_s25 }
 0xc52   :  { %1883 = vrot.lane.b32.xlu0 %v1873_v20, %s2576_s25 }
 0xcbc   :  { %v1882_v17 = vpop.permute.xlu1 %1881 }
 0xcbd   :  { %v1892_v26 = vadd.f32 %v1882_v17, %v1709_v32  ;;  %v1880_v11 = vpop.permute.xlu0 %1879 }
 0xcbe   :  { %v1891_v23 = vadd.f32 %v1880_v11, %v1704_v34 }
 0xcbf   :  { %2568 = vtanh.f32 %v1892_v26 }
 0xcc0   :  { %2570 = vtanh.f32 %v1891_v23 }
 0xcc3   :  { %v1886_v27 = vpop.permute.xlu1 %1885 }
 0xcc4   :  { %v1894_v42 = vadd.f32 %v1886_v27, %v1719_v37  ;;  %v1884_v7 = vpop.permute.xlu0 %1883 }
 0xcc5   :  { %v1893_v24 = vadd.f32 %v1884_v7, %v1714_v41 }
 0xcc6   :  { %2572 = vtanh.f32 %v1894_v42 }
 0xcc7   :  { %2574 = vtanh.f32 %v1893_v24 }
 0xcc9   :  { %v2569_v3 = vpop.eup %2568 }
 0xcca   :  { %v2571_v35 = vpop.eup %2570  ;;  %1909 = vrot.lane.b32.xlu1 %v2569_v3, %s2578_s27 }
 0xccb   :  { %1907 = vrot.lane.b32.xlu0 %v2571_v35, %s2578_s27 }
 0xcd0   :  { %v2573_v36 = vpop.eup %2572 }
 0xcd1   :  { %v2575_v49 = vpop.eup %2574  ;;  %1913 = vrot.lane.b32.xlu1 %v2573_v36, %s2578_s27 }
 0xcd2   :  { %1911 = vrot.lane.b32.xlu0 %v2575_v49, %s2578_s27 }
 0xd3c   :  { %v1910_v5 = vpop.permute.xlu1 %1909 }
 0xd3d   :  { %v1920_v2 = vmul.f32 %v1910_v5, %v1900_v54  ;;  %v1908_v28 = vpop.permute.xlu0 %1907 }
 0xd3e   :  { %v1919_v29 = vmul.f32 %v1908_v28, %v1899_v12 }
 0xd3f   :  { %v1928_v48 = vadd.f32 %v1924_v33, %v1920_v2 }
 0xd40   :  { %v1927_v21 = vadd.f32 %v1923_v46, %v1919_v29 }
 0xd41   :  { %1954 = vrot.lane.b32.xlu1 %v1928_v48, %s2578_s27 }
 0xd42   :  { %1952 = vrot.lane.b32.xlu0 %v1927_v21, %s2578_s27 }
 0xd43   :  { %v1914_v38 = vpop.permute.xlu1 %1913 }
 0xd44   :  { %v1922_v45 = vmul.f32 %v1914_v38, %v1902_v31  ;;  %v1912_v16 = vpop.permute.xlu0 %1911 }
 0xd45   :  { %v1921_v32 = vmul.f32 %v1912_v16, %v1901_v47 }
 0xd46   :  { %v1930_v34 = vadd.f32 %v1926_v13, %v1922_v45 }
 0xd47   :  { %v1929_v52 = vadd.f32 %v1925_v58, %v1921_v32 }
 0xd48   :  { %1958 = vrot.lane.b32.xlu1 %v1930_v34, %s2578_s27 }
 0xd49   :  { %1956 = vrot.lane.b32.xlu0 %v1929_v52, %s2578_s27 }
 0xdb3   :  { %v1955_v59 = vpop.permute.xlu1 %1954 }
 0xdb4   :  { %2066 = vst.msk [vmem:[%s3320_s10 + $0x48] sm:$0xff] %vm69_vm0, %v1955_v59  ;;  %v1953_v60 = vpop.permute.xlu0 %1952 }
 0xdb5   :  { %2065 = vst.msk [vmem:[%s3320_s10 + $0x40] sm:$0xff] %vm69_vm0, %v1953_v60 }
 0xdba   :  { %v1959_v14 = vpop.permute.xlu1 %1958 }
 0xdbb   :  { %2068 = vst.msk [vmem:[%s3320_s10 + $0x58] sm:$0xff] %vm69_vm0, %v1959_v14  ;;  %v1957_v51 = vpop.permute.xlu0 %1956 }
 0xdbc   :  { %2067 = vst.msk [vmem:[%s3320_s10 + $0x50] sm:$0xff] %vm69_vm0, %v1957_v51 }

// kernel: div.6
= control target key start
LH: loop header
LB: loop body
LE: loop exit
PB: predicated region body
PF: predicated region fallthrough
CT: control target
= control target key end

     0   :  { %s37_s0 = inlined_call_operand.vmem [shape: f32[240], index: 0, kind: input, shape index: {}]   ;;  %s38_s1 = inlined_call_operand.vmem [shape: f32[240], index: 1, kind: input, shape index: {}]   ;;  %s39_s2 = inlined_call_operand.vmem [shape: f32[240], index: 2, kind: output, shape index: {}]  }
   0x1   :  { %v4_v0 = vld [vmem:[%s38_s1] sm:$0x3] }
   0x2   :  { %11 = vrcp.f32 %v4_v0  ;;  %v3_v1 = vld [vmem:[%s37_s0] sm:$0x3] }
   0xc   :  { %v12_v2 = vpop.eup %11 }
   0xd   :  { %v8_v3 = vmul.f32 %v12_v2, %v3_v1 }
   0xf   :  { %10 = vst [vmem:[%s39_s2] sm:$0x3] %v8_v3 }

// kernel: se_gnn_forward.9
= control target key start
LH: loop header
LB: loop body
LE: loop exit
PB: predicated region body
PF: predicated region fallthrough
CT: control target
= control target key end

     0   :  { %vm27_vm0 = vcmask 261120   ;;  %s430_s1 = inlined_call_operand.vmem [shape: f32[32,32], index: 1, kind: input, shape index: {}]   ;;  %s431_s0 = inlined_call_operand.vmem [shape: f32[96,32], index: 0, kind: input, shape index: {}]   ;;  %s432_s2 = inlined_call_operand.vmem [shape: f32[96,32], index: 2, kind: output, shape index: {}]  }
   0x1   :  { %v23_v0 = vld [vmem:[%s430_s1] sm:$0xff]  ;;  %v24_v1 = vld [vmem:[%s430_s1 + $0x8] sm:$0xff]  ;;  %v25_v2 = vld [vmem:[%s430_s1 + $0x10] sm:$0xff] }
   0x2   :  { %v271_v3 = vpack.c.bf16 %v24_v1, %v23_v0  ;;  %v26_v4 = vld [vmem:[%s430_s1 + $0x18] sm:$0xff]  ;;  %v11_v5 = vld [vmem:[%s431_s0] sm:$0xff]  ;;  %v17_v6 = vld [vmem:[%s431_s0 + $0x30] sm:$0xff] }
   0x3   :  { %v275_v7 = vpack.c.bf16 %v26_v4, %v25_v2  ;;  %253 = vmatprep.mubr.msk.f32.mxu0 %vm27_vm0, %v11_v5  ;;  %262 = vmatprep.mubr.msk.f32.mxu1 %vm27_vm0, %v17_v6  ;;  %v12_v8 = vld [vmem:[%s431_s0 + $0x8] sm:$0xff]  ;;  %v18_v9 = vld [vmem:[%s431_s0 + $0x38] sm:$0xff]  ;;  %v13_v10 = vld [vmem:[%s431_s0 + $0x10] sm:$0xff] }
   0x4   :  { %272 = vmatprep.subr.bf16.mxu0 %v271_v3  ;;  %279 = vmatprep.subr.bf16.mxu1 %v271_v3  ;;  %v19_v11 = vld [vmem:[%s431_s0 + $0x40] sm:$0xff]  ;;  %v14_v12 = vld [vmem:[%s431_s0 + $0x18] sm:$0xff]  ;;  %v20_v13 = vld [vmem:[%s431_s0 + $0x48] sm:$0xff] }
   0x5   :  { %274 = vmatpush3.bf16.msra.mxu0 %v271_v3  ;;  %281 = vmatpush3.bf16.msra.mxu1 %v271_v3  ;;  %v15_v14 = vld [vmem:[%s431_s0 + $0x20] sm:$0xff]  ;;  %v21_v15 = vld [vmem:[%s431_s0 + $0x50] sm:$0xff]  ;;  %v16_v16 = vld [vmem:[%s431_s0 + $0x28] sm:$0xff] }
   0x6   :  { %276 = vmatprep.subr.bf16.mxu0 %v275_v7  ;;  %280 = vmatprep.subr.bf16.mxu1 %v275_v7  ;;  %v22_v17 = vld [vmem:[%s431_s0 + $0x58] sm:$0xff] }
   0x9   :  { %278 = vmatpush3.bf16.msra.mxu0 %v275_v7  ;;  %282 = vmatpush3.bf16.msra.mxu1 %v275_v7 }
   0xc   :  { %254 = vmatmul.mubr.msk.f32.vlgmr.msra.gmra.mrb[0].mxu0 %vm27_vm0, %v12_v8  ;;  %263 = vmatmul.mubr.msk.f32.vlgmr.msra.gmra.mrb[0].mxu1 %vm27_vm0, %v18_v9 }
   0xd   :  { %256 = vmatprep.mubr.msk.f32.mxu0 %vm27_vm0, %v13_v10  ;;  %265 = vmatprep.mubr.msk.f32.mxu1 %vm27_vm0, %v19_v11 }
  0x10   :  { %257 = vmatmul.mubr.msk.f32.gmra.mrb[2].mxu0 %vm27_vm0, %v14_v12  ;;  %266 = vmatmul.mubr.msk.f32.gmra.mrb[2].mxu1 %vm27_vm0, %v20_v13 }
  0x11   :  { %259 = vmatprep.mubr.msk.f32.mxu0 %vm27_vm0, %v15_v14  ;;  %268 = vmatprep.mubr.msk.f32.mxu1 %vm27_vm0, %v21_v15 }
  0x14   :  { %260 = vmatmul.mubr.msk.f32.gmra.mrb[4].mxu0 %vm27_vm0, %v16_v16  ;;  %269 = vmatmul.mubr.msk.f32.gmra.mrb[4].mxu1 %vm27_vm0, %v22_v17 }
  0xdf   :  { %v255_v18 = vpop.f32.mrb[0].mxu0  ;;  %v264_v19 = vpop.f32.mrb[0].mxu1 }
  0xe0   :  { %283 = vtanh.f32 %v255_v18  ;;  %v130_v20 = vpop.f32.mrb[1].mxu0  ;;  %v160_v21 = vpop.f32.mrb[1].mxu1 }
  0xe1   :  { %285 = vtanh.f32 %v264_v19 }
  0xe2   :  { %287 = vtanh.f32 %v130_v20 }
  0xe3   :  { %289 = vtanh.f32 %v160_v21  ;;  %v258_v22 = vpop.f32.mrb[2].mxu0  ;;  %v267_v23 = vpop.f32.mrb[2].mxu1 }
  0xe4   :  { %291 = vtanh.f32 %v258_v22  ;;  %v140_v24 = vpop.f32.mrb[3].mxu0  ;;  %v170_v25 = vpop.f32.mrb[3].mxu1 }
  0xe5   :  { %293 = vtanh.f32 %v267_v23 }
  0xe6   :  { %295 = vtanh.f32 %v140_v24 }
  0xe7   :  { %297 = vtanh.f32 %v170_v25  ;;  %v261_v26 = vpop.f32.mrb[4].mxu0  ;;  %v270_v27 = vpop.f32.mrb[4].mxu1 }
  0xe8   :  { %299 = vtanh.f32 %v261_v26  ;;  %v150_v28 = vpop.f32.mrb[5].mxu0  ;;  %v180_v29 = vpop.f32.mrb[5].mxu1 }
  0xe9   :  { %301 = vtanh.f32 %v270_v27 }
  0xea   :  { %v284_v30 = vpop.eup %283  ;;  %303 = vtanh.f32 %v150_v28 }
  0xeb   :  { %v286_v31 = vpop.eup %285  ;;  %202 = vst.msk [vmem:[%s432_s2 + $0x8] sm:$0xff] %vm27_vm0, %v284_v30  ;;  %305 = vtanh.f32 %v180_v29 }
  0xec   :  { %v288_v32 = vpop.eup %287  ;;  %208 = vst.msk [vmem:[%s432_s2 + $0x38] sm:$0xff] %vm27_vm0, %v286_v31 }
  0xed   :  { %v290_v33 = vpop.eup %289  ;;  %201 = vst.msk [vmem:[%s432_s2] sm:$0xff] %vm27_vm0, %v288_v32 }
  0xee   :  { %v292_v34 = vpop.eup %291  ;;  %207 = vst.msk [vmem:[%s432_s2 + $0x30] sm:$0xff] %vm27_vm0, %v290_v33 }
  0xef   :  { %v294_v35 = vpop.eup %293  ;;  %204 = vst.msk [vmem:[%s432_s2 + $0x18] sm:$0xff] %vm27_vm0, %v292_v34 }
  0xf0   :  { %v296_v36 = vpop.eup %295  ;;  %210 = vst.msk [vmem:[%s432_s2 + $0x48] sm:$0xff] %vm27_vm0, %v294_v35 }
  0xf1   :  { %v298_v37 = vpop.eup %297  ;;  %203 = vst.msk [vmem:[%s432_s2 + $0x10] sm:$0xff] %vm27_vm0, %v296_v36 }
  0xf2   :  { %v300_v38 = vpop.eup %299  ;;  %209 = vst.msk [vmem:[%s432_s2 + $0x40] sm:$0xff] %vm27_vm0, %v298_v37 }
  0xf3   :  { %v302_v39 = vpop.eup %301  ;;  %206 = vst.msk [vmem:[%s432_s2 + $0x28] sm:$0xff] %vm27_vm0, %v300_v38 }
  0xf4   :  { %v304_v40 = vpop.eup %303  ;;  %212 = vst.msk [vmem:[%s432_s2 + $0x58] sm:$0xff] %vm27_vm0, %v302_v39 }
  0xf5   :  { %v306_v41 = vpop.eup %305  ;;  %205 = vst.msk [vmem:[%s432_s2 + $0x20] sm:$0xff] %vm27_vm0, %v304_v40 }
  0xf6   :  { %211 = vst.msk [vmem:[%s432_s2 + $0x50] sm:$0xff] %vm27_vm0, %v306_v41 }

// kernel: se_gnn_forward.11
= control target key start
LH: loop header
LB: loop body
LE: loop exit
PB: predicated region body
PF: predicated region fallthrough
CT: control target
= control target key end

     0   :  { %v821_v3 = vmov 0.0   ;;  %vm55_vm0 = vcmask 261120   ;;  %v822_v33 = vmov 0.0|0.0   ;;  %vm823_vm1 = vmmov 0   ;;  %s1104_s3 = inlined_call_operand.vmem [shape: f32[32,288], index: 3, kind: input, shape index: {}]   ;;  %s1105_s2 = inlined_call_operand.vmem [shape: f32[32,288], index: 2, kind: input, shape index: {}]   ;;  %s1106_s1 = inlined_call_operand.vmem [shape: f32[8,32], index: 1, kind: input, shape index: {}]   ;;  %s1107_s0 = inlined_call_operand.vmem [shape: f32[8,32], index: 0, kind: input, shape index: {}]   ;;  %s1108_s4 = inlined_call_operand.vmem [shape: f32[288,32], index: 4, kind: input, shape index: {}]   ;;  %s1109_s6 = inlined_call_operand.vmem [shape: f32[32,96], index: 6, kind: input, shape index: {}]   ;;  %s1110_s5 = inlined_call_operand.vmem [shape: f32[1,32], index: 5, kind: input, shape index: {}]   ;;  %s1111_s7 = inlined_call_operand.vmem [shape: f32[1,96], index: 7, kind: input, shape index: {}]   ;;  %s1112_s8 = inlined_call_operand.vmem [shape: f32[8,96], index: 8, kind: output, shape index: {}]  }
   0x1   :  { %v44_v0 = vld [vmem:[%s1104_s3 + $0x8] sm:$0xff]  ;;  %v47_v1 = vld [vmem:[%s1104_s3 + $0x20] sm:$0xff]  ;;  %123 = vmatprep.mubr.f32.mxu1 %v821_v3  ;;  %267 = vmatprep.mubr.f32.mxu0 %v821_v3  ;;  %v46_v7 = vld [vmem:[%s1104_s3 + $0x18] sm:$0xff]  ;;  %vm624_vm2 = vcmask 785408  }
   0x2   :  { %v31_v2 = vld [vmem:[%s1105_s2 + $0x8] sm:$0xff]  ;;  %v738_v4 = vpack.c.bf16 %v47_v1, %v44_v0  ;;  %v34_v5 = vld [vmem:[%s1105_s2 + $0x20] sm:$0xff]  ;;  %v33_v11 = vld [vmem:[%s1105_s2 + $0x18] sm:$0xff] }
   0x3   :  { %v43_v6 = vld [vmem:[%s1104_s3] sm:$0xff]  ;;  %v752_v8 = vpack.c.bf16 %v34_v5, %v31_v2  ;;  %v50_v12 = vld [vmem:[%s1104_s3 + $0x38] sm:$0xff]  ;;  %v53_v14 = vld [vmem:[%s1104_s3 + $0x50] sm:$0xff] }
   0x4   :  { %v740_v9 = vpack.c.bf16 %v46_v7, %v43_v6  ;;  %v30_v10 = vld [vmem:[%s1105_s2] sm:$0xff]  ;;  %739 = vmatprep.subr.bf16.mxu1 %v738_v4  ;;  %v37_v15 = vld [vmem:[%s1105_s2 + $0x38] sm:$0xff]  ;;  %v40_v16 = vld [vmem:[%s1105_s2 + $0x50] sm:$0xff]  ;;  %v742_v17 = vpack.c.bf16 %v53_v14, %v50_v12 }
   0x5   :  { %v754_v13 = vpack.c.bf16 %v33_v11, %v30_v10  ;;  %753 = vmatprep.subr.bf16.mxu0 %v752_v8  ;;  %v756_v18 = vpack.c.bf16 %v40_v16, %v37_v15  ;;  %v49_v19 = vld [vmem:[%s1104_s3 + $0x30] sm:$0xff]  ;;  %v52_v20 = vld [vmem:[%s1104_s3 + $0x48] sm:$0xff]  ;;  %v42_v27 = vld [vmem:[%s1106_s1] sm:$0xff] }
   0x6   :  { %741 = vmatpush1.bf16.msra.mxu1 %v740_v9  ;;  %v36_v21 = vld [vmem:[%s1105_s2 + $0x30] sm:$0xff]  ;;  %v744_v22 = vpack.c.bf16 %v52_v20, %v49_v19  ;;  %v39_v23 = vld [vmem:[%s1105_s2 + $0x48] sm:$0xff]  ;;  %v931_v28 = vld [vmem:[%s1107_s0] sm:$0xff] }
   0x7   :  { %755 = vmatpush1.bf16.msra.mxu0 %v754_v13  ;;  %743 = vmatprep.subr.bf16.mxu1 %v742_v17  ;;  %v758_v24 = vpack.c.bf16 %v39_v23, %v36_v21  ;;  %v45_v25 = vld [vmem:[%s1104_s3 + $0x10] sm:$0xff]  ;;  %v48_v26 = vld [vmem:[%s1104_s3 + $0x28] sm:$0xff]  ;;  %v51_v30 = vld [vmem:[%s1104_s3 + $0x40] sm:$0xff] }
   0x8   :  { %757 = vmatprep.subr.bf16.mxu0 %v756_v18  ;;  %v747_v29 = vpack.c.bf16 %v48_v26, %v45_v25  ;;  %v54_v31 = vld [vmem:[%s1104_s3 + $0x58] sm:$0xff]  ;;  %v363_v32 = vld [vmem:[%s1108_s4 + $0x80] sm:$0xff]  ;;  %v364_v34 = vld [vmem:[%s1108_s4 + $0x88] sm:$0xff] }
   0x9   :  { %v347_v35 = vld [vmem:[%s1108_s4] sm:$0xff]  ;;  %v348_v36 = vld [vmem:[%s1108_s4 + $0x8] sm:$0xff]  ;;  %v766_v37 = vpack.c.bf16 %v364_v34, %v363_v32  ;;  %v365_v38 = vld [vmem:[%s1108_s4 + $0x90] sm:$0xff]  ;;  %v750_v41 = vpack.c.bf16 %v54_v31, %v51_v30 }
   0xa   :  { %745 = vmatpush1.bf16.msra.mxu1 %v744_v22  ;;  %v366_v39 = vld [vmem:[%s1108_s4 + $0x98] sm:$0xff]  ;;  %v768_v40 = vpack.c.bf16 %v348_v36, %v347_v35  ;;  %v349_v43 = vld [vmem:[%s1108_s4 + $0x10] sm:$0xff]  ;;  %v35_v46 = vld [vmem:[%s1105_s2 + $0x28] sm:$0xff] }
   0xb   :  { %759 = vmatpush1.bf16.msra.mxu0 %v758_v24  ;;  %746 = vmatprep.subr.bf16.mxu1 %v822_v33  ;;  %v770_v42 = vpack.c.bf16 %v366_v39, %v365_v38  ;;  %v350_v44 = vld [vmem:[%s1108_s4 + $0x18] sm:$0xff]  ;;  %v32_v45 = vld [vmem:[%s1105_s2 + $0x10] sm:$0xff]  ;;  %v367_v47 = vld [vmem:[%s1108_s4 + $0xa0] sm:$0xff] }
   0xc   :  { %767 = vmatprep.subr.bf16.mxu0 %v766_v37  ;;  %v368_v48 = vld [vmem:[%s1108_s4 + $0xa8] sm:$0xff]  ;;  %v772_v49 = vpack.c.bf16 %v350_v44, %v349_v43  ;;  %v761_v50 = vpack.c.bf16 %v35_v46, %v32_v45  ;;  %v38_v51 = vld [vmem:[%s1105_s2 + $0x40] sm:$0xff]  ;;  %v41_v54 = vld [vmem:[%s1105_s2 + $0x58] sm:$0xff] }
   0xd   :  { %630 = vmatmul.mubr.msk.f32.vlgmr.msra.gmra.mrb[0].mxu1 %vm55_vm0, %v42_v27  ;;  %v351_v52 = vld [vmem:[%s1108_s4 + $0x20] sm:$0xff]  ;;  %v352_v53 = vld [vmem:[%s1108_s4 + $0x28] sm:$0xff]  ;;  %v774_v55 = vpack.c.bf16 %v368_v48, %v367_v47  ;;  %v369_v56 = vld [vmem:[%s1108_s4 + $0xb0] sm:$0xff]  ;;  %v764_v59 = vpack.c.bf16 %v41_v54, %v38_v51 }
   0xe   :  { %632 = vmatmul.mubr.msk.f32.vlgmr.msra.gmra.mrb[0].mxu0 %vm55_vm0, %v931_v28  ;;  %748 = vmatpush3.bf16.msra.mxu1 %v747_v29  ;;  %v370_v57 = vld [vmem:[%s1108_s4 + $0xb8] sm:$0xff]  ;;  %v776_v58 = vpack.c.bf16 %v352_v53, %v351_v52  ;;  %v353_v61 = vld [vmem:[%s1108_s4 + $0x30] sm:$0xff]  ;;  %v371_v63 = vld [vmem:[%s1108_s4 + $0xc0] sm:$0xff] }
   0xf   :  { %749 = vmatprep.subr.bf16.mxu1 %v822_v33  ;;  %702 = vmatprep.mubr.msk.f32.mxu1 %vm823_vm1, %v821_v3  ;;  %v778_v60 = vpack.c.bf16 %v370_v57, %v369_v56  ;;  %v354_v62 = vld [vmem:[%s1108_s4 + $0x38] sm:$0xff]  ;;  %v372_v0 = vld [vmem:[%s1108_s4 + $0xc8] sm:$0xff]  ;;  %v355_v4 = vld [vmem:[%s1108_s4 + $0x40] sm:$0xff] }
  0x10   :  { %769 = vmatpush3.bf16.msra.mxu0 %v768_v40  ;;  %v780_v1 = vpack.c.bf16 %v354_v62, %v353_v61  ;;  %v782_v2 = vpack.c.bf16 %v372_v0, %v371_v63  ;;  %v356_v5 = vld [vmem:[%s1108_s4 + $0x48] sm:$0xff]  ;;  %v373_v6 = vld [vmem:[%s1108_s4 + $0xd0] sm:$0xff]  ;;  %v374_v7 = vld [vmem:[%s1108_s4 + $0xd8] sm:$0xff] }
  0x11   :  { %771 = vmatprep.subr.bf16.mxu0 %v770_v42  ;;  %v784_v8 = vpack.c.bf16 %v356_v5, %v355_v4  ;;  %v786_v9 = vpack.c.bf16 %v374_v7, %v373_v6  ;;  %v357_v10 = vld [vmem:[%s1108_s4 + $0x50] sm:$0xff]  ;;  %v358_v11 = vld [vmem:[%s1108_s4 + $0x58] sm:$0xff]  ;;  %v375_v12 = vld [vmem:[%s1108_s4 + $0xe0] sm:$0xff] }
  0x12   :  { %751 = vmatpush3.bf16.msra.mxu1 %v750_v41  ;;  %v376_v13 = vld [vmem:[%s1108_s4 + $0xe8] sm:$0xff]  ;;  %v788_v14 = vpack.c.bf16 %v358_v11, %v357_v10  ;;  %v359_v16 = vld [vmem:[%s1108_s4 + $0x60] sm:$0xff]  ;;  %v377_v19 = vld [vmem:[%s1108_s4 + $0xf0] sm:$0xff] }
  0x13   :  { %760 = vmatprep.subr.bf16.mxu1 %v822_v33  ;;  %v790_v15 = vpack.c.bf16 %v376_v13, %v375_v12  ;;  %v360_v17 = vld [vmem:[%s1108_s4 + $0x68] sm:$0xff]  ;;  %v378_v20 = vld [vmem:[%s1108_s4 + $0xf8] sm:$0xff]  ;;  %v361_v22 = vld [vmem:[%s1108_s4 + $0x70] sm:$0xff] }
  0x14   :  { %773 = vmatpush3.bf16.msra.mxu0 %v772_v49  ;;  %v792_v18 = vpack.c.bf16 %v360_v17, %v359_v16  ;;  %v794_v21 = vpack.c.bf16 %v378_v20, %v377_v19  ;;  %v362_v23 = vld [vmem:[%s1108_s4 + $0x78] sm:$0xff]  ;;  %v379_v25 = vld [vmem:[%s1108_s4 + $0x100] sm:$0xff]  ;;  %v380_v26 = vld [vmem:[%s1108_s4 + $0x108] sm:$0xff] }
  0x15   :  { %703 = vmatmul.mubr.msk.f32.vlgmr.msra.gmra.mrb[2].mxu1 %vm55_vm0, %v42_v27  ;;  %775 = vmatprep.subr.bf16.mxu0 %v774_v55  ;;  %v796_v24 = vpack.c.bf16 %v362_v23, %v361_v22  ;;  %v799_v27 = vpack.c.bf16 %v380_v26, %v379_v25  ;;  %v382_v29 = vld [vmem:[%s1108_s4 + $0x118] sm:$0xff]  ;;  %v534_v43 = vld [vmem:[%s1109_s6] sm:$0xff]  ;;  %v535_v44 = vld [vmem:[%s1109_s6 + $0x8] sm:$0xff] }
  0x16   :  { %762 = vmatpush3.bf16.msra.mxu1 %v761_v50  ;;  %713 = vmatprep.mubr.msk.f32.mxu1 %vm823_vm1, %v821_v3  ;;  %v805_v45 = vpack.c.bf16 %v535_v44, %v534_v43  ;;  %v536_v46 = vld [vmem:[%s1109_s6 + $0x10] sm:$0xff]  ;;  %v634_v51 = vld [vmem:[%s1110_s5] ss:$0 sm:$0xff] }
  0x17   :  { %763 = vmatprep.subr.bf16.mxu1 %v822_v33  ;;  %v636_v56 = vld [vmem:[%s1111_s7] ss:$0 sm:$0xff] }
  0x18   :  { %777 = vmatpush3.bf16.msra.mxu0 %v776_v58 }
  0x19   :  { %779 = vmatprep.subr.bf16.mxu0 %v778_v60 }
  0x1a   :  { %765 = vmatpush3.bf16.msra.mxu1 %v764_v59 }
  0x1b   :  { %798 = vmatprep.subr.bf16.mxu1 %v822_v33 }
  0x1c   :  { %781 = vmatpush3.bf16.msra.mxu0 %v780_v1 }
  0x1d   :  { %714 = vmatmul.mubr.msk.f32.vlgmr.msra.gmra.mrb[2].mxu1 %vm55_vm0, %v931_v28  ;;  %783 = vmatprep.subr.bf16.mxu0 %v782_v2  ;;  %v381_v28 = vld [vmem:[%s1108_s4 + $0x110] sm:$0xff] }
  0x1e   :  { %724 = vmatprep.mubr.msk.f32.mxu1 %vm823_vm1, %v821_v3  ;;  %800 = vmatpush3.bf16.msra.mxu1 %v799_v27  ;;  %v802_v30 = vpack.c.bf16 %v382_v29, %v381_v28 }
  0x1f   :  { %801 = vmatprep.subr.bf16.mxu1 %v822_v33 }
  0x20   :  { %785 = vmatpush3.bf16.msra.mxu0 %v784_v8 }
  0x21   :  { %787 = vmatprep.subr.bf16.mxu0 %v786_v9 }
  0x22   :  { %803 = vmatpush3.bf16.msra.mxu1 %v802_v30 }
  0x23   :  { %804 = vmatprep.subr.bf16.mxu1 %v822_v33 }
  0x24   :  { %789 = vmatpush3.bf16.msra.mxu0 %v788_v14 }
  0x25   :  { %791 = vmatprep.subr.bf16.mxu0 %v790_v15 }
  0x28   :  { %793 = vmatpush3.bf16.msra.mxu0 %v792_v18 }
  0x29   :  { %795 = vmatprep.subr.bf16.mxu0 %v794_v21 }
  0x2c   :  { %797 = vmatpush3.bf16.msra.mxu0 %v796_v24 }
  0xe0   :  { %v125_v31 = vpop.f32.mrb[0].mxu1 }
  0xe1   :  { %v269_v32 = vpop.f32.mrb[0].mxu0  ;;  %v127_v34 = vpop.f32.mrb[1].mxu1 }
  0xe2   :  { %v270_v35 = vadd.f32 %v269_v32, %v125_v31  ;;  %v271_v36 = vpop.f32.mrb[1].mxu0 }
  0xe3   :  { %v272_v37 = vadd.f32 %v271_v36, %v127_v34 }
  0xe4   :  { %v344_v38 = vmax.f32 %v270_v35, 0.0 }
  0xe5   :  { %v345_v39 = vmax.f32 %v272_v37, 0.0 }
  0xe7   :  { %457 = vmatprep.mubr.f32.mxu0 %v345_v39 }
  0xe8   :  { %458 = vmatmul.mubr.f32.vlgmr.msra.gmra.mrb[2].mxu0 %v344_v38 }
  0xf0   :  { %v340_v40 = vpop.f32.mrb[2].mxu1 }
  0xf1   :  { %v346_v41 = vmax.f32 %v340_v40, 0.0  ;;  %v715_v42 = vpop.f32.mrb[3].mxu1 }
  0xf3   :  { %725 = vmatmul.mubr.msk.f32.vlgmr.msra.gmra.mrb[4].mxu1 %vm55_vm0, %v346_v41 }
  0xf4   :  { %735 = vmatprep.mubr.msk.f32.mxu1 %vm823_vm1, %v821_v3  ;;  %806 = vmatpush3.bf16.msra.mxu1 %v805_v45  ;;  %v537_v3 = vld [vmem:[%s1109_s6 + $0x18] sm:$0xff] }
  0xf5   :  { %807 = vmatprep.subr.bf16.mxu1 %v822_v33  ;;  %v808_v47 = vpack.c.bf16 %v537_v3, %v536_v46 }
  0xf8   :  { %809 = vmatpush3.bf16.msra.mxu1 %v808_v47 }
 0x1bb   :  { %v681_v48 = vpop.f32.mrb[2].mxu0 }
 0x1bc   :  { %v682_v49 = vpop.f32.mrb[3].mxu0 }
 0x1bd   :  { %v683_v50 = vadd.f32 %v682_v49, %v681_v48 }
 0x1bf   :  { %v460_v52 = vadd.f32 %v683_v50, %v634_v51 }
 0x1c6   :  { %v529_v53 = vpop.f32.mrb[4].mxu1 }
 0x1c7   :  { %v530_v33 = vadd.f32 %v529_v53, %v460_v52  ;;  %v726_v54 = vpop.f32.mrb[5].mxu1 }
 0x1c9   :  { %v533_v55 = vmax.f32 %v530_v33, 0.0 }
 0x1cb   :  { %736 = vmatmul.mubr.msk.f32.vlgmr.msra.gmra.mrb[6].mxu1 %vm55_vm0, %v533_v55 }
 0x29e   :  { %v614_v57 = vpop.f32.mrb[6].mxu1 }
 0x29f   :  { %v615_v58 = vadd.f32 %v636_v56, %v614_v57  ;;  %v737_v59 = vpop.f32.mrb[7].mxu1 }
 0x2a1   :  { %v638_v60 = vmul.f32 -1.442695, %v615_v58 }
 0x2a3   :  { %817 = vpow2.f32 %v638_v60 }
 0x2ad   :  { %v818_v61 = vpop.eup %817 }
 0x2ae   :  { %v621_v62 = vadd.f32 1.0, %v818_v61 }
 0x2b0   :  { %819 = vrcp.f32 %v621_v62 }
 0x2ba   :  { %v820_v63 = vpop.eup %819 }
 0x2bb   :  { %625 = vst.msk [vmem:[%s1112_s8] sm:$0xff] %vm624_vm2, %v820_v63 }

</bundles_post_ra>
